<compile_context>
chip_gen: v5e
topology: v5e:2x2
jax: 0.10.0
libtpu: 0.0.40
codegen_flags: <defaults>
</compile_context>

<pallas_src>
import functools

import jax
import jax.numpy as jnp
from jax.experimental import pallas as pl
from jax.experimental.pallas import tpu as pltpu


def ncf_mlp_kernel(ue_ref, ie_ref,
                   w0u_ref, w0i_ref, b0_ref,
                   w1_ref, b1_ref,
                   w2_ref, b2_ref,
                   wo_ref, bo_ref,
                   out_ref):
    """Fused MLP for one (TILE_B, E) batch tile.

    ue/ie:   (TILE_B, E)  compute dtype (f32 or bf16), streamed per grid step
    w0u/w0i: (E, 64)      compute dtype, grid-resident
    w1:      (64, 32)     compute dtype, grid-resident
    w2:      (32, 16)     compute dtype, grid-resident
    b0/b1/b2:(1, L)       f32, grid-resident
    wo:      (1, 16)      f32 row layout for the VPU reduce, grid-resident
    bo:      (1, 1)       f32 scalar in SMEM
    out:     (TILE_B, 1)  f32
    """
    cdt = w1_ref.dtype  # matmul compute dtype (f32 or bf16)

    # layer 0: split-weight matmuls replace the lane-axis concat.
    h = jnp.dot(ue_ref[...], w0u_ref[...], preferred_element_type=jnp.float32)
    h = h + jnp.dot(ie_ref[...], w0i_ref[...], preferred_element_type=jnp.float32)
    h = jnp.maximum(h + b0_ref[...], 0.0)                       # (TILE_B, 64) f32

    # layer 1
    h = jnp.dot(h.astype(cdt), w1_ref[...], preferred_element_type=jnp.float32)
    h = jnp.maximum(h + b1_ref[...], 0.0)                       # (TILE_B, 32) f32

    # layer 2
    h = jnp.dot(h.astype(cdt), w2_ref[...], preferred_element_type=jnp.float32)
    h = jnp.maximum(h + b2_ref[...], 0.0)                       # (TILE_B, 16) f32

    # output layer: VPU multiply + 16-lane reduce instead of an N=1 MXU matmul.
    z = jnp.sum(h * wo_ref[...], axis=-1, keepdims=True) + bo_ref[0, 0]
    out_ref[...] = jax.nn.sigmoid(z)                            # (TILE_B, 1) f32


@functools.partial(jax.jit, static_argnames=("tile_b",))
def ncf_forward(user_idx, item_idx, params, *, tile_b=512):
    """Full NCF forward: embedding gather in XLA, fused MLP in Pallas."""
    ue = jnp.take(params["user_embedding"], user_idx, axis=0)   # (B, E)
    ie = jnp.take(params["item_embedding"], item_idx, axis=0)   # (B, E)
    B, E = ue.shape
    cdt = ue.dtype

    # Pad batch up to a multiple of tile_b; padded rows are dropped at the end.
    bp = ((B + tile_b - 1) // tile_b) * tile_b
    if bp != B:
        ue = jnp.pad(ue, ((0, bp - B), (0, 0)))
        ie = jnp.pad(ie, ((0, bp - B), (0, 0)))
    num_tiles = bp // tile_b

    l0 = params["w0"].shape[1]
    l1 = params["w1"].shape[1]
    l2 = params["w2"].shape[1]

    # Split w0 so the kernel never concatenates along lanes.
    w0u = params["w0"][:E].astype(cdt)              # (E, 64)
    w0i = params["w0"][E:].astype(cdt)              # (E, 64)
    w1 = params["w1"].astype(cdt)                   # (64, 32)
    w2 = params["w2"].astype(cdt)                   # (32, 16)
    b0 = params["b0"].astype(jnp.float32)           # (1, 64)
    b1 = params["b1"].astype(jnp.float32)           # (1, 32)
    b2 = params["b2"].astype(jnp.float32)           # (1, 16)
    wo_row = params["wo"].astype(jnp.float32).T     # (1, 16)
    bo = params["bo"].astype(jnp.float32)           # (1, 1) -> SMEM

    emb_spec = pl.BlockSpec((tile_b, E), lambda i: (i, 0))
    # Full-array blocks with a constant index_map: loaded once, kept resident.
    res = lambda shape: pl.BlockSpec(shape, lambda i: (0, 0))
    smem_spec = pl.BlockSpec(memory_space=pltpu.MemorySpace.SMEM)

    itemsize = ue.dtype.itemsize
    weight_bytes = (2 * E * l0 + l0 * l1 + l1 * l2) * itemsize \
        + (l0 + l1 + l2 + l2 + 1) * 4
    cost = pl.CostEstimate(
        flops=2 * bp * (2 * E * l0 + l0 * l1 + l1 * l2 + l2),
        transcendentals=bp,
        bytes_accessed=bp * (2 * E * itemsize + 4) + weight_bytes,
    )

    out = pl.pallas_call(
        ncf_mlp_kernel,
        grid=(num_tiles,),
        in_specs=[
            emb_spec, emb_spec,
            res((E, l0)), res((E, l0)), res((1, l0)),
            res((l0, l1)), res((1, l1)),
            res((l1, l2)), res((1, l2)),
            res((1, l2)),
            smem_spec,
        ],
        out_specs=pl.BlockSpec((tile_b, 1), lambda i: (i, 0)),
        out_shape=jax.ShapeDtypeStruct((bp, 1), jnp.float32),
        compiler_params=pltpu.CompilerParams(
            dimension_semantics=("parallel",)),
        cost_estimate=cost,
    )(ue, ie, w0u, w0i, b0, w1, b1, w2, b2, wo_row, bo)

    # torch: output.squeeze() -> shape (B,)
    return out[:B, 0]


def init_params(key, num_users, num_items, embedding_dim, layers=(64, 32, 16)):
    keys = jax.random.split(key, 16)
    p = {}
    p["user_embedding"] = jax.random.normal(keys[0], (num_users, embedding_dim), jnp.float32)
    p["item_embedding"] = jax.random.normal(keys[1], (num_items, embedding_dim), jnp.float32)

    # Linear layers; stored as [in, out] (transposed w.r.t. torch's [out, in]).
    sizes = [embedding_dim * 2] + list(layers)
    for i, (fan_in, fan_out) in enumerate(zip(sizes[:-1], sizes[1:])):
        p[f"w{i}"] = 0.1 * jax.random.normal(keys[2 + 2 * i], (fan_in, fan_out), jnp.float32)
        p[f"b{i}"] = 0.1 * jax.random.normal(keys[3 + 2 * i], (1, fan_out), jnp.float32)
    p["wo"] = 0.1 * jax.random.normal(keys[10], (layers[-1], 1), jnp.float32)
    p["bo"] = 0.1 * jax.random.normal(keys[11], (1, 1), jnp.float32)
    return p


def ncf_reference(user_idx, item_idx, params):
    """Pure-JAX reference of the same forward pass (computed in f32)."""
    f32 = lambda a: a.astype(jnp.float32)
    x = jnp.concatenate(
        [f32(jnp.take(params["user_embedding"], user_idx, axis=0)),
         f32(jnp.take(params["item_embedding"], item_idx, axis=0))], axis=1)
    for i in range(3):
        x = jnp.maximum(x @ f32(params[f"w{i}"]) + f32(params[f"b{i}"]), 0.0)
    z = x @ f32(params["wo"]) + f32(params["bo"])
    return jnp.squeeze(jax.nn.sigmoid(z), axis=-1)


if __name__ == "__main__":
    num_users, num_items = 100, 200
    embedding_dim = 32
    batch = 8

    key = jax.random.PRNGKey(0)
    k_params, k_user, k_item = jax.random.split(key, 3)

    params = init_params(k_params, num_users, num_items, embedding_dim)
    user_idx = jax.random.randint(k_user, (batch,), 0, num_users, dtype=jnp.int32)
    item_idx = jax.random.randint(k_item, (batch,), 0, num_items, dtype=jnp.int32)

    # f32 path (default production tile); compare tightly against the reference.
    out = jax.block_until_ready(ncf_forward(user_idx, item_idx, params))
    ref = jax.block_until_ready(ncf_reference(user_idx, item_idx, params))
    assert out.shape == (batch,)
    assert jnp.allclose(out, ref, atol=1e-5, rtol=1e-5), \
        float(jnp.max(jnp.abs(out - ref)))

    # bf16 path (halves embedding HBM bytes; f32 accumulation in-kernel).
    params_bf16 = dict(params)
    for name in ("user_embedding", "item_embedding", "w0", "w1", "w2"):
        params_bf16[name] = params[name].astype(jnp.bfloat16)
    out_bf16 = jax.block_until_ready(
        ncf_forward(user_idx, item_idx, params_bf16, tile_b=128))
    ref_bf16 = jax.block_until_ready(ncf_reference(user_idx, item_idx, params_bf16))
    assert out_bf16.shape == (batch,)
    assert jnp.allclose(out_bf16, ref_bf16, atol=3e-2, rtol=3e-2), \
        float(jnp.max(jnp.abs(out_bf16 - ref_bf16)))

    print("KERNEL_OK")
</pallas_src>

<mosaic_0001>
module attributes {stable_mosaic.version = 11 : i64} {
  func.func @ncf_mlp_kernel(%arg0: i32, %arg1: memref<512x32xf32, #tpu.memory_space<vmem>>, %arg2: memref<512x32xf32, #tpu.memory_space<vmem>>, %arg3: memref<32x64xf32, #tpu.memory_space<vmem>>, %arg4: memref<32x64xf32, #tpu.memory_space<vmem>>, %arg5: memref<1x64xf32, #tpu.memory_space<vmem>>, %arg6: memref<64x32xf32, #tpu.memory_space<vmem>>, %arg7: memref<1x32xf32, #tpu.memory_space<vmem>>, %arg8: memref<32x16xf32, #tpu.memory_space<vmem>>, %arg9: memref<1x16xf32, #tpu.memory_space<vmem>>, %arg10: memref<1x16xf32, #tpu.memory_space<vmem>>, %arg11: memref<1x1xf32, #tpu.memory_space<smem>>, %arg12: memref<512x1xf32, #tpu.memory_space<vmem>>) attributes {dimension_semantics = [#tpu.dimension_semantics<parallel>], iteration_bounds = array<i64: 1>, scalar_prefetch = 0 : i64, scratch_operands = 0 : i64, tpu.core_type = #tpu.core_type<tc>, window_params = [{transform_indices = @transform_0, window_bounds = array<i64: 512, 32>}, {transform_indices = @transform_1, window_bounds = array<i64: 512, 32>}, {pipeline_mode = #tpu.pipeline_mode<synchronous>, transform_indices = @transform_2, window_bounds = array<i64: 32, 64>}, {pipeline_mode = #tpu.pipeline_mode<synchronous>, transform_indices = @transform_3, window_bounds = array<i64: 32, 64>}, {pipeline_mode = #tpu.pipeline_mode<synchronous>, transform_indices = @transform_4, window_bounds = array<i64: 1, 64>}, {pipeline_mode = #tpu.pipeline_mode<synchronous>, transform_indices = @transform_5, window_bounds = array<i64: 64, 32>}, {pipeline_mode = #tpu.pipeline_mode<synchronous>, transform_indices = @transform_6, window_bounds = array<i64: 1, 32>}, {pipeline_mode = #tpu.pipeline_mode<synchronous>, transform_indices = @transform_7, window_bounds = array<i64: 32, 16>}, {pipeline_mode = #tpu.pipeline_mode<synchronous>, transform_indices = @transform_8, window_bounds = array<i64: 1, 16>}, {pipeline_mode = #tpu.pipeline_mode<synchronous>, transform_indices = @transform_9, window_bounds = array<i64: 1, 16>}, {transform_indices = @transform_10, window_bounds = array<i64: 1, 1>}, {transform_indices = @transform_11, window_bounds = array<i64: 512, 1>}]} {
    %c0 = arith.constant 0 : index
    %c0_0 = arith.constant 0 : index
    %0 = vector.load %arg1[%c0, %c0_0] : memref<512x32xf32, #tpu.memory_space<vmem>>, vector<512x32xf32>
    %c0_1 = arith.constant 0 : index
    %c0_2 = arith.constant 0 : index
    %1 = vector.load %arg3[%c0_1, %c0_2] : memref<32x64xf32, #tpu.memory_space<vmem>>, vector<32x64xf32>
    %cst = arith.constant dense<0.000000e+00> : vector<512x64xf32>
    %2 = tpu.matmul %0, %1, %cst {dimension_numbers = #tpu.dot_dimension_numbers<[1], [0], [0], [1], [0, 0, 1, 1], [], []>} : vector<512x32xf32>, vector<32x64xf32>, vector<512x64xf32> -> vector<512x64xf32>
    %c0_3 = arith.constant 0 : index
    %c0_4 = arith.constant 0 : index
    %3 = vector.load %arg2[%c0_3, %c0_4] : memref<512x32xf32, #tpu.memory_space<vmem>>, vector<512x32xf32>
    %c0_5 = arith.constant 0 : index
    %c0_6 = arith.constant 0 : index
    %4 = vector.load %arg4[%c0_5, %c0_6] : memref<32x64xf32, #tpu.memory_space<vmem>>, vector<32x64xf32>
    %cst_7 = arith.constant dense<0.000000e+00> : vector<512x64xf32>
    %5 = tpu.matmul %3, %4, %cst_7 {dimension_numbers = #tpu.dot_dimension_numbers<[1], [0], [0], [1], [0, 0, 1, 1], [], []>} : vector<512x32xf32>, vector<32x64xf32>, vector<512x64xf32> -> vector<512x64xf32>
    %6 = arith.addf %2, %5 : vector<512x64xf32>
    %c0_8 = arith.constant 0 : index
    %c0_9 = arith.constant 0 : index
    %7 = vector.load %arg5[%c0_8, %c0_9] : memref<1x64xf32, #tpu.memory_space<vmem>>, vector<1x64xf32>
    %8 = vector.broadcast %7 : vector<1x64xf32> to vector<512x64xf32>
    %9 = arith.addf %6, %8 : vector<512x64xf32>
    %cst_10 = arith.constant 0.000000e+00 : f32
    %10 = vector.broadcast %cst_10 : f32 to vector<512x64xf32>
    %11 = arith.maximumf %9, %10 : vector<512x64xf32>
    %c0_11 = arith.constant 0 : index
    %c0_12 = arith.constant 0 : index
    %12 = vector.load %arg6[%c0_11, %c0_12] : memref<64x32xf32, #tpu.memory_space<vmem>>, vector<64x32xf32>
    %cst_13 = arith.constant dense<0.000000e+00> : vector<512x32xf32>
    %13 = tpu.matmul %11, %12, %cst_13 {dimension_numbers = #tpu.dot_dimension_numbers<[1], [0], [0], [1], [0, 0, 1, 1], [], []>} : vector<512x64xf32>, vector<64x32xf32>, vector<512x32xf32> -> vector<512x32xf32>
    %c0_14 = arith.constant 0 : index
    %c0_15 = arith.constant 0 : index
    %14 = vector.load %arg7[%c0_14, %c0_15] : memref<1x32xf32, #tpu.memory_space<vmem>>, vector<1x32xf32>
    %15 = vector.broadcast %14 : vector<1x32xf32> to vector<512x32xf32>
    %16 = arith.addf %13, %15 : vector<512x32xf32>
    %cst_16 = arith.constant 0.000000e+00 : f32
    %17 = vector.broadcast %cst_16 : f32 to vector<512x32xf32>
    %18 = arith.maximumf %16, %17 : vector<512x32xf32>
    %c0_17 = arith.constant 0 : index
    %c0_18 = arith.constant 0 : index
    %19 = vector.load %arg8[%c0_17, %c0_18] : memref<32x16xf32, #tpu.memory_space<vmem>>, vector<32x16xf32>
    %cst_19 = arith.constant dense<0.000000e+00> : vector<512x16xf32>
    %20 = tpu.matmul %18, %19, %cst_19 {dimension_numbers = #tpu.dot_dimension_numbers<[1], [0], [0], [1], [0, 0, 1, 1], [], []>} : vector<512x32xf32>, vector<32x16xf32>, vector<512x16xf32> -> vector<512x16xf32>
    %c0_20 = arith.constant 0 : index
    %c0_21 = arith.constant 0 : index
    %21 = vector.load %arg9[%c0_20, %c0_21] : memref<1x16xf32, #tpu.memory_space<vmem>>, vector<1x16xf32>
    %22 = vector.broadcast %21 : vector<1x16xf32> to vector<512x16xf32>
    %23 = arith.addf %20, %22 : vector<512x16xf32>
    %cst_22 = arith.constant 0.000000e+00 : f32
    %24 = vector.broadcast %cst_22 : f32 to vector<512x16xf32>
    %25 = arith.maximumf %23, %24 : vector<512x16xf32>
    %c0_23 = arith.constant 0 : index
    %c0_24 = arith.constant 0 : index
    %26 = vector.load %arg10[%c0_23, %c0_24] : memref<1x16xf32, #tpu.memory_space<vmem>>, vector<1x16xf32>
    %27 = vector.broadcast %26 : vector<1x16xf32> to vector<512x16xf32>
    %28 = arith.mulf %25, %27 : vector<512x16xf32>
    %cst_25 = arith.constant dense<0.000000e+00> : vector<512xf32>
    %29 = vector.multi_reduction <add>, %28, %cst_25 [1] : vector<512x16xf32> to vector<512xf32>
    %30 = vector.shape_cast %29 : vector<512xf32> to vector<512x1xf32>
    %c0_26 = arith.constant 0 : index
    %c0_27 = arith.constant 0 : index
    %31 = memref.load %arg11[%c0_26, %c0_27] : memref<1x1xf32, #tpu.memory_space<smem>>
    %32 = vector.broadcast %31 : f32 to vector<512x1xf32>
    %33 = arith.addf %30, %32 : vector<512x1xf32>
    %34 = arith.negf %33 : vector<512x1xf32>
    %35 = math.exp %34 : vector<512x1xf32>
    %cst_28 = arith.constant 1.000000e+00 : f32
    %36 = vector.broadcast %cst_28 : f32 to vector<512x1xf32>
    %37 = arith.addf %36, %35 : vector<512x1xf32>
    %38 = arith.divf %36, %37 : vector<512x1xf32>
    %c0_29 = arith.constant 0 : index
    %c0_30 = arith.constant 0 : index
    %39 = vector.load %arg12[%c0_29, %c0_30] : memref<512x1xf32, #tpu.memory_space<vmem>>, vector<512x1xf32>
    tpu.vector_store %arg12[%c0_29, %c0_30], %38 {strides = array<i32>} : memref<512x1xf32, #tpu.memory_space<vmem>>, vector<512x1xf32>,
    return
  }
  func.func @transform_0(%arg0: i32) -> (i32, i32) {
    %c0_i32 = arith.constant 0 : i32
    %c0_i32_0 = arith.constant 0 : i32
    return %arg0, %c0_i32 : i32, i32
  }
  func.func @transform_1(%arg0: i32) -> (i32, i32) {
    %c0_i32 = arith.constant 0 : i32
    %c0_i32_0 = arith.constant 0 : i32
    return %arg0, %c0_i32 : i32, i32
  }
  func.func @transform_2(%arg0: i32) -> (i32, i32) {
    %c0_i32 = arith.constant 0 : i32
    %c0_i32_0 = arith.constant 0 : i32
    %c0_i32_1 = arith.constant 0 : i32
    return %c0_i32, %c0_i32_0 : i32, i32
  }
  func.func @transform_3(%arg0: i32) -> (i32, i32) {
    %c0_i32 = arith.constant 0 : i32
    %c0_i32_0 = arith.constant 0 : i32
    %c0_i32_1 = arith.constant 0 : i32
    return %c0_i32, %c0_i32_0 : i32, i32
  }
  func.func @transform_4(%arg0: i32) -> (i32, i32) {
    %c0_i32 = arith.constant 0 : i32
    %c0_i32_0 = arith.constant 0 : i32
    %c0_i32_1 = arith.constant 0 : i32
    return %c0_i32, %c0_i32_0 : i32, i32
  }
  func.func @transform_5(%arg0: i32) -> (i32, i32) {
    %c0_i32 = arith.constant 0 : i32
    %c0_i32_0 = arith.constant 0 : i32
    %c0_i32_1 = arith.constant 0 : i32
    return %c0_i32, %c0_i32_0 : i32, i32
  }
  func.func @transform_6(%arg0: i32) -> (i32, i32) {
    %c0_i32 = arith.constant 0 : i32
    %c0_i32_0 = arith.constant 0 : i32
    %c0_i32_1 = arith.constant 0 : i32
    return %c0_i32, %c0_i32_0 : i32, i32
  }
  func.func @transform_7(%arg0: i32) -> (i32, i32) {
    %c0_i32 = arith.constant 0 : i32
    %c0_i32_0 = arith.constant 0 : i32
    %c0_i32_1 = arith.constant 0 : i32
    return %c0_i32, %c0_i32_0 : i32, i32
  }
  func.func @transform_8(%arg0: i32) -> (i32, i32) {
    %c0_i32 = arith.constant 0 : i32
    %c0_i32_0 = arith.constant 0 : i32
    %c0_i32_1 = arith.constant 0 : i32
    return %c0_i32, %c0_i32_0 : i32, i32
  }
  func.func @transform_9(%arg0: i32) -> (i32, i32) {
    %c0_i32 = arith.constant 0 : i32
    %c0_i32_0 = arith.constant 0 : i32
    %c0_i32_1 = arith.constant 0 : i32
    return %c0_i32, %c0_i32_0 : i32, i32
  }
  func.func @transform_10(%arg0: i32) -> (i32, i32) {
    %c0_i32 = arith.constant 0 : i32
    %c0_i32_0 = arith.constant 0 : i32
    %c0_i32_1 = arith.constant 0 : i32
    return %c0_i32, %c0_i32_0 : i32, i32
  }
  func.func @transform_11(%arg0: i32) -> (i32, i32) {
    %c0_i32 = arith.constant 0 : i32
    %c0_i32_0 = arith.constant 0 : i32
    return %arg0, %c0_i32 : i32, i32
  }
}

</mosaic_0001>

<bundles_post_ra>
// kernel: ncf_forward.1
= control target key start
LH: loop header
LB: loop body
LE: loop exit
PB: predicated region body
PF: predicated region fallthrough
CT: control target
= control target key end

     0   :  { %vm175_vm0 = vcmask 261120   ;;  %vm1122_vm1 = vcmask 523264   ;;  %vm2129_vm2 = vcmask 130048   ;;  %vm3604_vm4 = vcmask 7168   ;;  %s5965_s3 = inlined_call_operand.vmem [shape: f32[32,64], index: 3, kind: input, shape index: {}]   ;;  %s5966_s2 = inlined_call_operand.vmem [shape: f32[32,64], index: 2, kind: input, shape index: {}]   ;;  %s5967_s1 = inlined_call_operand.vmem [shape: f32[512,32], index: 1, kind: input, shape index: {}]   ;;  %s5968_s0 = inlined_call_operand.vmem [shape: f32[512,32], index: 0, kind: input, shape index: {}]   ;;  %s5969_s4 = inlined_call_operand.vmem [shape: f32[1,64], index: 4, kind: input, shape index: {}]   ;;  %s5970_s5 = inlined_call_operand.vmem [shape: f32[64,32], index: 5, kind: input, shape index: {}]   ;;  %s5971_s6 = inlined_call_operand.vmem [shape: f32[1,32], index: 6, kind: input, shape index: {}]   ;;  %s5972_s7 = inlined_call_operand.vmem [shape: f32[32,16], index: 7, kind: input, shape index: {}]   ;;  %s5973_s8 = inlined_call_operand.vmem [shape: f32[1,16], index: 8, kind: input, shape index: {}]   ;;  %s5974_s9 = inlined_call_operand.vmem [shape: f32[1,16], index: 9, kind: input, shape index: {}]   ;;  %s5975_s10 = inlined_call_operand.<no memory space> [shape: f32[1,1], index: 10, kind: input, shape index: {}]   ;;  %s5976_s11 = inlined_call_operand.vmem [shape: f32[512,1], index: 11, kind: output, shape index: {}]  }
   0x1   :  { %v174_v0 = vld [vmem:[%s5965_s3 + $0x18] sm:$0xff]  ;;  %v173_v2 = vld [vmem:[%s5965_s3 + $0x10] sm:$0xff]  ;;  %v172_v4 = vld [vmem:[%s5965_s3 + $0x8] sm:$0xff] }
   0x2   :  { %v106_v1 = vld [vmem:[%s5966_s2 + $0x18] sm:$0xff]  ;;  %380 = vmatpush.msra.mxu0 %v174_v0  ;;  %v105_v3 = vld [vmem:[%s5966_s2 + $0x10] sm:$0xff]  ;;  %v104_v5 = vld [vmem:[%s5966_s2 + $0x8] sm:$0xff] }
   0x3   :  { %781 = vmatpush.msra.mxu1 %v106_v1  ;;  %v171_v6 = vld [vmem:[%s5965_s3] sm:$0xff]  ;;  %v108_v10 = vld [vmem:[%s5967_s1 + $0x8] sm:$0xff]  ;;  %v109_v12 = vld [vmem:[%s5967_s1 + $0x10] sm:$0xff] }
   0x4   :  { %381 = vmatpush.msra.mxu0 %v173_v2  ;;  %v103_v7 = vld [vmem:[%s5966_s2] sm:$0xff]  ;;  %v40_v11 = vld [vmem:[%s5968_s0 + $0x8] sm:$0xff]  ;;  %v41_v13 = vld [vmem:[%s5968_s0 + $0x10] sm:$0xff] }
   0x5   :  { %782 = vmatpush.msra.mxu1 %v105_v3  ;;  %v107_v8 = vld [vmem:[%s5967_s1] sm:$0xff]  ;;  %v110_v14 = vld [vmem:[%s5967_s1 + $0x18] sm:$0xff]  ;;  %v112_v18 = vld [vmem:[%s5967_s1 + $0x28] sm:$0xff] }
   0x6   :  { %382 = vmatpush.msra.mxu0 %v172_v4  ;;  %v39_v9 = vld [vmem:[%s5968_s0] sm:$0xff]  ;;  %v42_v15 = vld [vmem:[%s5968_s0 + $0x18] sm:$0xff]  ;;  %v44_v19 = vld [vmem:[%s5968_s0 + $0x28] sm:$0xff] }
   0x7   :  { %783 = vmatpush.msra.mxu1 %v104_v5  ;;  %v111_v16 = vld [vmem:[%s5967_s1 + $0x20] sm:$0xff]  ;;  %v113_v20 = vld [vmem:[%s5967_s1 + $0x30] sm:$0xff]  ;;  %v114_v22 = vld [vmem:[%s5967_s1 + $0x38] sm:$0xff] }
   0x8   :  { %383 = vmatpush.msra.mxu0 %v171_v6  ;;  %v43_v17 = vld [vmem:[%s5968_s0 + $0x20] sm:$0xff]  ;;  %v45_v21 = vld [vmem:[%s5968_s0 + $0x30] sm:$0xff]  ;;  %v46_v23 = vld [vmem:[%s5968_s0 + $0x38] sm:$0xff] }
   0x9   :  { %784 = vmatpush.msra.mxu1 %v103_v7  ;;  %3673 = vmatmul.msk.f32.vlgmr.msra.gmra.mxu0 %vm175_vm0, %v107_v8  ;;  %v115_v24 = vld [vmem:[%s5967_s1 + $0x40] sm:$0xff]  ;;  %v116_v26 = vld [vmem:[%s5967_s1 + $0x48] sm:$0xff]  ;;  %v117_v28 = vld [vmem:[%s5967_s1 + $0x50] sm:$0xff] }
   0xa   :  { %3737 = vmatmul.msk.f32.vlgmr.msra.gmra.mxu1 %vm175_vm0, %v39_v9  ;;  %v47_v25 = vld [vmem:[%s5968_s0 + $0x40] sm:$0xff]  ;;  %v48_v27 = vld [vmem:[%s5968_s0 + $0x48] sm:$0xff]  ;;  %v49_v29 = vld [vmem:[%s5968_s0 + $0x50] sm:$0xff] }
   0xb   :  { %v1117_v30 = vld [vmem:[%s5970_s5 + $0x38] sm:$0xff]  ;;  %v1116_v31 = vld [vmem:[%s5970_s5 + $0x30] sm:$0xff]  ;;  %v1115_v34 = vld [vmem:[%s5970_s5 + $0x28] sm:$0xff] }
   0xc   :  { %1323 = vmatpush.msra.mxu2 %v1117_v30  ;;  %v118_v32 = vld [vmem:[%s5967_s1 + $0x58] sm:$0xff]  ;;  %v1114_v35 = vld [vmem:[%s5970_s5 + $0x20] sm:$0xff]  ;;  %v1112_v39 = vld [vmem:[%s5970_s5 + $0x10] sm:$0xff] }
   0xd   :  { %v50_v33 = vld [vmem:[%s5968_s0 + $0x58] sm:$0xff]  ;;  %v119_v37 = vld [vmem:[%s5967_s1 + $0x60] sm:$0xff]  ;;  %v1111_v40 = vld [vmem:[%s5970_s5 + $0x8] sm:$0xff] }
   0xe   :  { %1324 = vmatpush.msra.mxu2 %v1116_v31  ;;  %v1113_v36 = vld [vmem:[%s5970_s5 + $0x18] sm:$0xff]  ;;  %v51_v38 = vld [vmem:[%s5968_s0 + $0x60] sm:$0xff]  ;;  %v120_v42 = vld [vmem:[%s5967_s1 + $0x68] sm:$0xff] }
   0xf   :  { %v1110_v41 = vld [vmem:[%s5970_s5] sm:$0xff]  ;;  %v52_v43 = vld [vmem:[%s5968_s0 + $0x68] sm:$0xff]  ;;  %v121_v44 = vld [vmem:[%s5967_s1 + $0x70] sm:$0xff] }
  0x10   :  { %1325 = vmatpush.msra.mxu2 %v1115_v34  ;;  %v53_v45 = vld [vmem:[%s5968_s0 + $0x70] sm:$0xff]  ;;  %v122_v46 = vld [vmem:[%s5967_s1 + $0x78] sm:$0xff]  ;;  %v4503_v48 = vld [vmem:[%s5969_s4] ss:$0 sm:$0xff] }
  0x11   :  { %3674 = vmatmul.msk.f32.gmra.mxu0 %vm175_vm0, %v108_v10  ;;  %v54_v47 = vld [vmem:[%s5968_s0 + $0x78] sm:$0xff]  ;;  %v123_v51 = vld [vmem:[%s5967_s1 + $0x80] sm:$0xff]  ;;  %v124_v58 = vld [vmem:[%s5967_s1 + $0x88] sm:$0xff] }
  0x12   :  { %3738 = vmatmul.msk.f32.gmra.mxu1 %vm175_vm0, %v40_v11  ;;  %1326 = vmatpush.msra.mxu2 %v1114_v35  ;;  %v55_v52 = vld [vmem:[%s5968_s0 + $0x80] sm:$0xff]  ;;  %v56_v59 = vld [vmem:[%s5968_s0 + $0x88] sm:$0xff]  ;;  %v125_v1 = vld [vmem:[%s5967_s1 + $0x90] sm:$0xff] }
  0x13   :  { %v57_v2 = vld [vmem:[%s5968_s0 + $0x90] sm:$0xff]  ;;  %v126_v8 = vld [vmem:[%s5967_s1 + $0x98] sm:$0xff] }
  0x14   :  { %1327 = vmatpush.msra.mxu2 %v1113_v36  ;;  %v58_v9 = vld [vmem:[%s5968_s0 + $0x98] sm:$0xff]  ;;  %v61_v30 = vld [vmem:[%s5968_s0 + $0xb0] sm:$0xff] }
  0x15   :  { %v130_v36 = vld [vmem:[%s5967_s1 + $0xb8] sm:$0xff] }
  0x16   :  { %1328 = vmatpush.msra.mxu2 %v1112_v39 }
  0x18   :  { %1329 = vmatpush.msra.mxu2 %v1111_v40 }
  0x19   :  { %3675 = vmatmul.msk.f32.gmra.mxu0 %vm175_vm0, %v109_v12 }
  0x1a   :  { %3739 = vmatmul.msk.f32.gmra.mxu1 %vm175_vm0, %v41_v13  ;;  %1330 = vmatpush.msra.mxu2 %v1110_v41 }
  0x21   :  { %3676 = vmatmul.msk.f32.gmra.mxu0 %vm175_vm0, %v110_v14 }
  0x22   :  { %3740 = vmatmul.msk.f32.gmra.mxu1 %vm175_vm0, %v42_v15  ;;  %v127_v15 = vld [vmem:[%s5967_s1 + $0xa0] sm:$0xff] }
  0x29   :  { %3677 = vmatmul.msk.f32.gmra.mxu0 %vm175_vm0, %v111_v16  ;;  %v59_v16 = vld [vmem:[%s5968_s0 + $0xa0] sm:$0xff] }
  0x2a   :  { %3741 = vmatmul.msk.f32.gmra.mxu1 %vm175_vm0, %v43_v17 }
  0x31   :  { %3678 = vmatmul.msk.f32.gmra.mxu0 %vm175_vm0, %v112_v18 }
  0x32   :  { %3742 = vmatmul.msk.f32.gmra.mxu1 %vm175_vm0, %v44_v19 }
  0x39   :  { %3679 = vmatmul.msk.f32.gmra.mxu0 %vm175_vm0, %v113_v20 }
  0x3a   :  { %3743 = vmatmul.msk.f32.gmra.mxu1 %vm175_vm0, %v45_v21 }
  0x41   :  { %3680 = vmatmul.msk.f32.gmra.mxu0 %vm175_vm0, %v114_v22  ;;  %v128_v22 = vld [vmem:[%s5967_s1 + $0xa8] sm:$0xff] }
  0x42   :  { %3744 = vmatmul.msk.f32.gmra.mxu1 %vm175_vm0, %v46_v23  ;;  %v60_v23 = vld [vmem:[%s5968_s0 + $0xa8] sm:$0xff] }
  0x49   :  { %3681 = vmatmul.msk.f32.gmra.mxu0 %vm175_vm0, %v115_v24 }
  0x4a   :  { %3745 = vmatmul.msk.f32.gmra.mxu1 %vm175_vm0, %v47_v25 }
  0x51   :  { %3682 = vmatmul.msk.f32.gmra.mxu0 %vm175_vm0, %v116_v26 }
  0x52   :  { %3746 = vmatmul.msk.f32.gmra.mxu1 %vm175_vm0, %v48_v27 }
  0x59   :  { %3683 = vmatmul.msk.f32.gmra.mxu0 %vm175_vm0, %v117_v28 }
  0x5a   :  { %3747 = vmatmul.msk.f32.gmra.mxu1 %vm175_vm0, %v49_v29  ;;  %v129_v29 = vld [vmem:[%s5967_s1 + $0xb0] sm:$0xff] }
  0x61   :  { %3684 = vmatmul.msk.f32.gmra.mxu0 %vm175_vm0, %v118_v32 }
  0x62   :  { %3748 = vmatmul.msk.f32.gmra.mxu1 %vm175_vm0, %v50_v33 }
  0x69   :  { %3685 = vmatmul.msk.f32.gmra.mxu0 %vm175_vm0, %v119_v37  ;;  %v62_v37 = vld [vmem:[%s5968_s0 + $0xb8] sm:$0xff] }
  0x6a   :  { %3749 = vmatmul.msk.f32.gmra.mxu1 %vm175_vm0, %v51_v38 }
  0x71   :  { %3686 = vmatmul.msk.f32.gmra.mxu0 %vm175_vm0, %v120_v42 }
  0x72   :  { %3750 = vmatmul.msk.f32.gmra.mxu1 %vm175_vm0, %v52_v43  ;;  %v131_v43 = vld [vmem:[%s5967_s1 + $0xc0] sm:$0xff] }
  0x79   :  { %3687 = vmatmul.msk.f32.gmra.mxu0 %vm175_vm0, %v121_v44  ;;  %v63_v44 = vld [vmem:[%s5968_s0 + $0xc0] sm:$0xff] }
  0x7a   :  { %3751 = vmatmul.msk.f32.gmra.mxu1 %vm175_vm0, %v53_v45 }
  0x81   :  { %3688 = vmatmul.msk.f32.gmra.mxu0 %vm175_vm0, %v122_v46 }
  0x82   :  { %3752 = vmatmul.msk.f32.gmra.mxu1 %vm175_vm0, %v54_v47 }
  0x86   :  { %v385_v49 = vpop.f32.mrf.mxu0 }
  0x87   :  { %v786_v50 = vpop.f32.mrf.mxu1 }
  0x88   :  { %v787_v53 = vadd.f32 %v786_v50, %v385_v49 }
  0x89   :  { %3689 = vmatmul.msk.f32.gmra.mxu0 %vm175_vm0, %v123_v51  ;;  %v132_v51 = vld [vmem:[%s5967_s1 + $0xc8] sm:$0xff] }
  0x8a   :  { %v982_v54 = vadd.f32 %v4503_v48, %v787_v53  ;;  %3753 = vmatmul.msk.f32.gmra.mxu1 %vm175_vm0, %v55_v52  ;;  %v64_v52 = vld [vmem:[%s5968_s0 + $0xc8] sm:$0xff] }
  0x8c   :  { %v1046_v55 = vmax.f32 %v982_v54, 0.0 }
  0x8e   :  { %3801 = vmatmul.msk.f32.vlgmr.msra.gmra.mxu2 %vm1122_vm1, %v1046_v55  ;;  %v388_v56 = vpop.f32.mrf.mxu0 }
  0x8f   :  { %v789_v57 = vpop.f32.mrf.mxu1 }
  0x90   :  { %v790_v60 = vadd.f32 %v789_v57, %v388_v56 }
  0x91   :  { %3690 = vmatmul.msk.f32.gmra.mxu0 %vm175_vm0, %v124_v58  ;;  %v133_v58 = vld [vmem:[%s5967_s1 + $0xd0] sm:$0xff] }
  0x92   :  { %v983_v61 = vadd.f32 %v4503_v48, %v790_v60  ;;  %3754 = vmatmul.msk.f32.gmra.mxu1 %vm175_vm0, %v56_v59  ;;  %v65_v59 = vld [vmem:[%s5968_s0 + $0xd0] sm:$0xff] }
  0x94   :  { %v1047_v62 = vmax.f32 %v983_v61, 0.0 }
  0x96   :  { %3802 = vmatmul.msk.f32.gmra.mxu2 %vm1122_vm1, %v1047_v62  ;;  %v391_v63 = vpop.f32.mrf.mxu0 }
  0x97   :  { %v792_v0 = vpop.f32.mrf.mxu1 }
  0x98   :  { %v793_v3 = vadd.f32 %v792_v0, %v391_v63 }
  0x99   :  { %3691 = vmatmul.msk.f32.gmra.mxu0 %vm175_vm0, %v125_v1  ;;  %v134_v1 = vld [vmem:[%s5967_s1 + $0xd8] sm:$0xff] }
  0x9a   :  { %v984_v4 = vadd.f32 %v4503_v48, %v793_v3  ;;  %3755 = vmatmul.msk.f32.gmra.mxu1 %vm175_vm0, %v57_v2  ;;  %v66_v2 = vld [vmem:[%s5968_s0 + $0xd8] sm:$0xff] }
  0x9c   :  { %v1048_v5 = vmax.f32 %v984_v4, 0.0 }
  0x9e   :  { %3803 = vmatmul.msk.f32.gmra.mxu2 %vm1122_vm1, %v1048_v5  ;;  %v394_v6 = vpop.f32.mrf.mxu0 }
  0x9f   :  { %v795_v7 = vpop.f32.mrf.mxu1 }
  0xa0   :  { %v796_v10 = vadd.f32 %v795_v7, %v394_v6 }
  0xa1   :  { %3692 = vmatmul.msk.f32.gmra.mxu0 %vm175_vm0, %v126_v8  ;;  %v135_v8 = vld [vmem:[%s5967_s1 + $0xe0] sm:$0xff] }
  0xa2   :  { %v985_v11 = vadd.f32 %v4503_v48, %v796_v10  ;;  %3756 = vmatmul.msk.f32.gmra.mxu1 %vm175_vm0, %v58_v9  ;;  %v67_v9 = vld [vmem:[%s5968_s0 + $0xe0] sm:$0xff] }
  0xa4   :  { %v1049_v12 = vmax.f32 %v985_v11, 0.0 }
  0xa6   :  { %3804 = vmatmul.msk.f32.gmra.mxu2 %vm1122_vm1, %v1049_v12  ;;  %v397_v13 = vpop.f32.mrf.mxu0 }
  0xa7   :  { %v798_v14 = vpop.f32.mrf.mxu1 }
  0xa8   :  { %v799_v17 = vadd.f32 %v798_v14, %v397_v13  ;;  %v1591_v13 = vld [vmem:[%s5972_s7 + $0x18] sm:$0xff] }
  0xa9   :  { %3693 = vmatmul.msk.f32.gmra.mxu0 %vm175_vm0, %v127_v15  ;;  %1800 = vmatpush.msra.mxu3 %v1591_v13 }
  0xaa   :  { %v986_v18 = vadd.f32 %v4503_v48, %v799_v17  ;;  %3757 = vmatmul.msk.f32.gmra.mxu1 %vm175_vm0, %v59_v16  ;;  %v136_v16 = vld [vmem:[%s5967_s1 + $0xe8] sm:$0xff] }
  0xab   :  { %v68_v17 = vld [vmem:[%s5968_s0 + $0xe8] sm:$0xff] }
  0xac   :  { %v1050_v19 = vmax.f32 %v986_v18, 0.0 }
  0xae   :  { %3805 = vmatmul.msk.f32.gmra.mxu2 %vm1122_vm1, %v1050_v19  ;;  %v400_v20 = vpop.f32.mrf.mxu0  ;;  %v1590_v19 = vld [vmem:[%s5972_s7 + $0x10] sm:$0xff] }
  0xaf   :  { %v801_v21 = vpop.f32.mrf.mxu1  ;;  %1801 = vmatpush.msra.mxu3 %v1590_v19 }
  0xb0   :  { %v802_v24 = vadd.f32 %v801_v21, %v400_v20  ;;  %v1589_v21 = vld [vmem:[%s5972_s7 + $0x8] sm:$0xff] }
  0xb1   :  { %3694 = vmatmul.msk.f32.gmra.mxu0 %vm175_vm0, %v128_v22  ;;  %1802 = vmatpush.msra.mxu3 %v1589_v21 }
  0xb2   :  { %v987_v25 = vadd.f32 %v4503_v48, %v802_v24  ;;  %3758 = vmatmul.msk.f32.gmra.mxu1 %vm175_vm0, %v60_v23  ;;  %v1588_v23 = vld [vmem:[%s5972_s7] sm:$0xff] }
  0xb3   :  { %1803 = vmatpush.msra.mxu3 %v1588_v23 }
  0xb4   :  { %v1051_v26 = vmax.f32 %v987_v25, 0.0 }
  0xb6   :  { %3806 = vmatmul.msk.f32.gmra.mxu2 %vm1122_vm1, %v1051_v26  ;;  %v403_v27 = vpop.f32.mrf.mxu0  ;;  %v137_v26 = vld [vmem:[%s5967_s1 + $0xf0] sm:$0xff] }
  0xb7   :  { %v804_v28 = vpop.f32.mrf.mxu1 }
  0xb8   :  { %v805_v31 = vadd.f32 %v804_v28, %v403_v27  ;;  %v69_v27 = vld [vmem:[%s5968_s0 + $0xf0] sm:$0xff] }
  0xb9   :  { %3695 = vmatmul.msk.f32.gmra.mxu0 %vm175_vm0, %v129_v29 }
  0xba   :  { %v988_v32 = vadd.f32 %v4503_v48, %v805_v31  ;;  %3759 = vmatmul.msk.f32.gmra.mxu1 %vm175_vm0, %v61_v30 }
  0xbc   :  { %v1052_v33 = vmax.f32 %v988_v32, 0.0 }
  0xbe   :  { %3807 = vmatmul.msk.f32.gmra.mxu2 %vm1122_vm1, %v1052_v33  ;;  %v406_v34 = vpop.f32.mrf.mxu0  ;;  %v138_v33 = vld [vmem:[%s5967_s1 + $0xf8] sm:$0xff] }
  0xbf   :  { %v807_v35 = vpop.f32.mrf.mxu1 }
  0xc0   :  { %v808_v38 = vadd.f32 %v807_v35, %v406_v34  ;;  %v70_v34 = vld [vmem:[%s5968_s0 + $0xf8] sm:$0xff] }
  0xc1   :  { %3696 = vmatmul.msk.f32.gmra.mxu0 %vm175_vm0, %v130_v36 }
  0xc2   :  { %v989_v39 = vadd.f32 %v4503_v48, %v808_v38  ;;  %3760 = vmatmul.msk.f32.gmra.mxu1 %vm175_vm0, %v62_v37 }
  0xc4   :  { %v1053_v40 = vmax.f32 %v989_v39, 0.0 }
  0xc6   :  { %3808 = vmatmul.msk.f32.gmra.mxu2 %vm1122_vm1, %v1053_v40  ;;  %v409_v41 = vpop.f32.mrf.mxu0  ;;  %v139_v40 = vld [vmem:[%s5967_s1 + $0x100] sm:$0xff] }
  0xc7   :  { %v810_v42 = vpop.f32.mrf.mxu1 }
  0xc8   :  { %v811_v45 = vadd.f32 %v810_v42, %v409_v41  ;;  %v71_v41 = vld [vmem:[%s5968_s0 + $0x100] sm:$0xff] }
  0xc9   :  { %3697 = vmatmul.msk.f32.gmra.mxu0 %vm175_vm0, %v131_v43 }
  0xca   :  { %v990_v46 = vadd.f32 %v4503_v48, %v811_v45  ;;  %3761 = vmatmul.msk.f32.gmra.mxu1 %vm175_vm0, %v63_v44  ;;  %v4690_v45 = vld [vmem:[%s5971_s6] ss:$0 sm:$0xff] }
  0xcc   :  { %v1054_v47 = vmax.f32 %v990_v46, 0.0 }
  0xce   :  { %3809 = vmatmul.msk.f32.gmra.mxu2 %vm1122_vm1, %v1054_v47  ;;  %v412_v49 = vpop.f32.mrf.mxu0 }
  0xcf   :  { %v813_v50 = vpop.f32.mrf.mxu1 }
  0xd0   :  { %v814_v53 = vadd.f32 %v813_v50, %v412_v49  ;;  %v140_v49 = vld [vmem:[%s5967_s1 + $0x108] sm:$0xff] }
  0xd1   :  { %3698 = vmatmul.msk.f32.gmra.mxu0 %vm175_vm0, %v132_v51  ;;  %v72_v50 = vld [vmem:[%s5968_s0 + $0x108] sm:$0xff] }
  0xd2   :  { %v991_v54 = vadd.f32 %v4503_v48, %v814_v53  ;;  %3762 = vmatmul.msk.f32.gmra.mxu1 %vm175_vm0, %v64_v52 }
  0xd4   :  { %v1055_v55 = vmax.f32 %v991_v54, 0.0 }
  0xd6   :  { %3810 = vmatmul.msk.f32.gmra.mxu2 %vm1122_vm1, %v1055_v55  ;;  %v415_v56 = vpop.f32.mrf.mxu0 }
  0xd7   :  { %v816_v57 = vpop.f32.mrf.mxu1 }
  0xd8   :  { %v817_v60 = vadd.f32 %v816_v57, %v415_v56 }
  0xd9   :  { %3699 = vmatmul.msk.f32.gmra.mxu0 %vm175_vm0, %v133_v58 }
  0xda   :  { %v992_v61 = vadd.f32 %v4503_v48, %v817_v60  ;;  %3763 = vmatmul.msk.f32.gmra.mxu1 %vm175_vm0, %v65_v59  ;;  %v141_v59 = vld [vmem:[%s5967_s1 + $0x110] sm:$0xff] }
  0xdb   :  { %v73_v60 = vld [vmem:[%s5968_s0 + $0x110] sm:$0xff] }
  0xdc   :  { %v1056_v62 = vmax.f32 %v992_v61, 0.0 }
  0xde   :  { %3811 = vmatmul.msk.f32.gmra.mxu2 %vm1122_vm1, %v1056_v62  ;;  %v418_v63 = vpop.f32.mrf.mxu0 }
  0xdf   :  { %v819_v0 = vpop.f32.mrf.mxu1 }
  0xe0   :  { %v820_v3 = vadd.f32 %v819_v0, %v418_v63 }
  0xe1   :  { %3700 = vmatmul.msk.f32.gmra.mxu0 %vm175_vm0, %v134_v1 }
  0xe2   :  { %v993_v4 = vadd.f32 %v4503_v48, %v820_v3  ;;  %3764 = vmatmul.msk.f32.gmra.mxu1 %vm175_vm0, %v66_v2 }
  0xe4   :  { %v1057_v5 = vmax.f32 %v993_v4, 0.0 }
  0xe6   :  { %3812 = vmatmul.msk.f32.gmra.mxu2 %vm1122_vm1, %v1057_v5  ;;  %v421_v6 = vpop.f32.mrf.mxu0  ;;  %v142_v5 = vld [vmem:[%s5967_s1 + $0x118] sm:$0xff] }
  0xe7   :  { %v822_v7 = vpop.f32.mrf.mxu1 }
  0xe8   :  { %v823_v10 = vadd.f32 %v822_v7, %v421_v6  ;;  %v74_v6 = vld [vmem:[%s5968_s0 + $0x118] sm:$0xff] }
  0xe9   :  { %3701 = vmatmul.msk.f32.gmra.mxu0 %vm175_vm0, %v135_v8 }
  0xea   :  { %v994_v11 = vadd.f32 %v4503_v48, %v823_v10  ;;  %3765 = vmatmul.msk.f32.gmra.mxu1 %vm175_vm0, %v67_v9 }
  0xec   :  { %v1058_v12 = vmax.f32 %v994_v11, 0.0 }
  0xee   :  { %3813 = vmatmul.msk.f32.gmra.mxu2 %vm1122_vm1, %v1058_v12  ;;  %v424_v14 = vpop.f32.mrf.mxu0 }
  0xef   :  { %v825_v15 = vpop.f32.mrf.mxu1 }
  0xf0   :  { %v826_v18 = vadd.f32 %v825_v15, %v424_v14  ;;  %v143_v15 = vld [vmem:[%s5967_s1 + $0x120] sm:$0xff] }
  0xf1   :  { %3702 = vmatmul.msk.f32.gmra.mxu0 %vm175_vm0, %v136_v16  ;;  %v75_v16 = vld [vmem:[%s5968_s0 + $0x120] sm:$0xff] }
  0xf2   :  { %v995_v20 = vadd.f32 %v4503_v48, %v826_v18  ;;  %3766 = vmatmul.msk.f32.gmra.mxu1 %vm175_vm0, %v68_v17 }
  0xf4   :  { %v1059_v22 = vmax.f32 %v995_v20, 0.0 }
  0xf6   :  { %3814 = vmatmul.msk.f32.gmra.mxu2 %vm1122_vm1, %v1059_v22  ;;  %v427_v24 = vpop.f32.mrf.mxu0 }
  0xf7   :  { %v828_v25 = vpop.f32.mrf.mxu1 }
  0xf8   :  { %v829_v28 = vadd.f32 %v828_v25, %v427_v24  ;;  %v144_v25 = vld [vmem:[%s5967_s1 + $0x128] sm:$0xff] }
  0xf9   :  { %3703 = vmatmul.msk.f32.gmra.mxu0 %vm175_vm0, %v137_v26  ;;  %v76_v26 = vld [vmem:[%s5968_s0 + $0x128] sm:$0xff] }
  0xfa   :  { %v996_v29 = vadd.f32 %v4503_v48, %v829_v28  ;;  %3767 = vmatmul.msk.f32.gmra.mxu1 %vm175_vm0, %v69_v27 }
  0xfc   :  { %v1060_v30 = vmax.f32 %v996_v29, 0.0 }
  0xfe   :  { %3815 = vmatmul.msk.f32.gmra.mxu2 %vm1122_vm1, %v1060_v30  ;;  %v430_v31 = vpop.f32.mrf.mxu0 }
  0xff   :  { %v831_v32 = vpop.f32.mrf.mxu1 }
 0x100   :  { %v832_v35 = vadd.f32 %v831_v32, %v430_v31 }
 0x101   :  { %3704 = vmatmul.msk.f32.gmra.mxu0 %vm175_vm0, %v138_v33 }
 0x102   :  { %v997_v36 = vadd.f32 %v4503_v48, %v832_v35  ;;  %3768 = vmatmul.msk.f32.gmra.mxu1 %vm175_vm0, %v70_v34  ;;  %v145_v35 = vld [vmem:[%s5967_s1 + $0x130] sm:$0xff] }
 0x104   :  { %v1061_v37 = vmax.f32 %v997_v36, 0.0  ;;  %v77_v36 = vld [vmem:[%s5968_s0 + $0x130] sm:$0xff] }
 0x106   :  { %3816 = vmatmul.msk.f32.gmra.mxu2 %vm1122_vm1, %v1061_v37  ;;  %v433_v38 = vpop.f32.mrf.mxu0 }
 0x107   :  { %v834_v39 = vpop.f32.mrf.mxu1 }
 0x108   :  { %v835_v42 = vadd.f32 %v834_v39, %v433_v38 }
 0x109   :  { %3705 = vmatmul.msk.f32.gmra.mxu0 %vm175_vm0, %v139_v40 }
 0x10a   :  { %v998_v43 = vadd.f32 %v4503_v48, %v835_v42  ;;  %3769 = vmatmul.msk.f32.gmra.mxu1 %vm175_vm0, %v71_v41 }
 0x10c   :  { %v1062_v44 = vmax.f32 %v998_v43, 0.0 }
 0x10e   :  { %3817 = vmatmul.msk.f32.gmra.mxu2 %vm1122_vm1, %v1062_v44  ;;  %v436_v46 = vpop.f32.mrf.mxu0 }
 0x10f   :  { %v837_v47 = vpop.f32.mrf.mxu1 }
 0x110   :  { %v838_v51 = vadd.f32 %v837_v47, %v436_v46  ;;  %v146_v46 = vld [vmem:[%s5967_s1 + $0x138] sm:$0xff] }
 0x111   :  { %v1332_v52 = vpop.f32.mrf.mxu2  ;;  %3706 = vmatmul.msk.f32.gmra.mxu0 %vm175_vm0, %v140_v49  ;;  %v78_v47 = vld [vmem:[%s5968_s0 + $0x138] sm:$0xff] }
 0x112   :  { %v999_v53 = vadd.f32 %v4503_v48, %v838_v51  ;;  %v1333_v54 = vadd.f32 %v4690_v45, %v1332_v52  ;;  %3770 = vmatmul.msk.f32.gmra.mxu1 %vm175_vm0, %v72_v50 }
 0x114   :  { %v1524_v55 = vmax.f32 %v1333_v54, 0.0  ;;  %v1063_v56 = vmax.f32 %v999_v53, 0.0 }
 0x116   :  { %3818 = vmatmul.msk.f32.gmra.mxu2 %vm1122_vm1, %v1063_v56  ;;  %3865 = vmatmul.msk.f32.vlgmr.msra.gmra.mxu3 %vm175_vm0, %v1524_v55  ;;  %v439_v57 = vpop.f32.mrf.mxu0 }
 0x117   :  { %v840_v58 = vpop.f32.mrf.mxu1 }
 0x118   :  { %v841_v61 = vadd.f32 %v840_v58, %v439_v57  ;;  %v147_v57 = vld [vmem:[%s5967_s1 + $0x140] sm:$0xff] }
 0x119   :  { %v1335_v62 = vpop.f32.mrf.mxu2  ;;  %3707 = vmatmul.msk.f32.gmra.mxu0 %vm175_vm0, %v141_v59  ;;  %v79_v58 = vld [vmem:[%s5968_s0 + $0x140] sm:$0xff] }
 0x11a   :  { %v1000_v63 = vadd.f32 %v4503_v48, %v841_v61  ;;  %v1336_v0 = vadd.f32 %v4690_v45, %v1335_v62  ;;  %3771 = vmatmul.msk.f32.gmra.mxu1 %vm175_vm0, %v73_v60 }
 0x11c   :  { %v1525_v1 = vmax.f32 %v1336_v0, 0.0  ;;  %v1064_v2 = vmax.f32 %v1000_v63, 0.0 }
 0x11e   :  { %3819 = vmatmul.msk.f32.gmra.mxu2 %vm1122_vm1, %v1064_v2  ;;  %3866 = vmatmul.msk.f32.gmra.mxu3 %vm175_vm0, %v1525_v1  ;;  %v442_v3 = vpop.f32.mrf.mxu0 }
 0x11f   :  { %v843_v4 = vpop.f32.mrf.mxu1 }
 0x120   :  { %v844_v7 = vadd.f32 %v843_v4, %v442_v3  ;;  %v148_v3 = vld [vmem:[%s5967_s1 + $0x148] sm:$0xff] }
 0x121   :  { %v1338_v8 = vpop.f32.mrf.mxu2  ;;  %3708 = vmatmul.msk.f32.gmra.mxu0 %vm175_vm0, %v142_v5  ;;  %v80_v4 = vld [vmem:[%s5968_s0 + $0x148] sm:$0xff] }
 0x122   :  { %v1001_v9 = vadd.f32 %v4503_v48, %v844_v7  ;;  %v1339_v10 = vadd.f32 %v4690_v45, %v1338_v8  ;;  %3772 = vmatmul.msk.f32.gmra.mxu1 %vm175_vm0, %v74_v6 }
 0x124   :  { %v1526_v11 = vmax.f32 %v1339_v10, 0.0  ;;  %v1065_v12 = vmax.f32 %v1001_v9, 0.0 }
 0x126   :  { %3820 = vmatmul.msk.f32.gmra.mxu2 %vm1122_vm1, %v1065_v12  ;;  %3867 = vmatmul.msk.f32.gmra.mxu3 %vm175_vm0, %v1526_v11  ;;  %v445_v13 = vpop.f32.mrf.mxu0 }
 0x127   :  { %v846_v14 = vpop.f32.mrf.mxu1 }
 0x128   :  { %v847_v17 = vadd.f32 %v846_v14, %v445_v13  ;;  %v149_v13 = vld [vmem:[%s5967_s1 + $0x150] sm:$0xff] }
 0x129   :  { %v1341_v18 = vpop.f32.mrf.mxu2  ;;  %3709 = vmatmul.msk.f32.gmra.mxu0 %vm175_vm0, %v143_v15  ;;  %v81_v14 = vld [vmem:[%s5968_s0 + $0x150] sm:$0xff] }
 0x12a   :  { %v1002_v19 = vadd.f32 %v4503_v48, %v847_v17  ;;  %v1342_v20 = vadd.f32 %v4690_v45, %v1341_v18  ;;  %3773 = vmatmul.msk.f32.gmra.mxu1 %vm175_vm0, %v75_v16 }
 0x12c   :  { %v1527_v21 = vmax.f32 %v1342_v20, 0.0  ;;  %v1066_v22 = vmax.f32 %v1002_v19, 0.0 }
 0x12e   :  { %3821 = vmatmul.msk.f32.gmra.mxu2 %vm1122_vm1, %v1066_v22  ;;  %3868 = vmatmul.msk.f32.gmra.mxu3 %vm175_vm0, %v1527_v21  ;;  %v448_v23 = vpop.f32.mrf.mxu0 }
 0x12f   :  { %v849_v24 = vpop.f32.mrf.mxu1 }
 0x130   :  { %v850_v27 = vadd.f32 %v849_v24, %v448_v23  ;;  %v150_v23 = vld [vmem:[%s5967_s1 + $0x158] sm:$0xff] }
 0x131   :  { %v1344_v28 = vpop.f32.mrf.mxu2  ;;  %3710 = vmatmul.msk.f32.gmra.mxu0 %vm175_vm0, %v144_v25  ;;  %v82_v24 = vld [vmem:[%s5968_s0 + $0x158] sm:$0xff] }
 0x132   :  { %v1003_v29 = vadd.f32 %v4503_v48, %v850_v27  ;;  %v1345_v30 = vadd.f32 %v4690_v45, %v1344_v28  ;;  %3774 = vmatmul.msk.f32.gmra.mxu1 %vm175_vm0, %v76_v26 }
 0x134   :  { %v1528_v31 = vmax.f32 %v1345_v30, 0.0  ;;  %v1067_v32 = vmax.f32 %v1003_v29, 0.0 }
 0x136   :  { %3822 = vmatmul.msk.f32.gmra.mxu2 %vm1122_vm1, %v1067_v32  ;;  %3869 = vmatmul.msk.f32.gmra.mxu3 %vm175_vm0, %v1528_v31  ;;  %v451_v33 = vpop.f32.mrf.mxu0 }
 0x137   :  { %v852_v34 = vpop.f32.mrf.mxu1 }
 0x138   :  { %v853_v37 = vadd.f32 %v852_v34, %v451_v33  ;;  %v151_v33 = vld [vmem:[%s5967_s1 + $0x160] sm:$0xff] }
 0x139   :  { %v1347_v38 = vpop.f32.mrf.mxu2  ;;  %3711 = vmatmul.msk.f32.gmra.mxu0 %vm175_vm0, %v145_v35  ;;  %v83_v34 = vld [vmem:[%s5968_s0 + $0x160] sm:$0xff] }
 0x13a   :  { %v1004_v39 = vadd.f32 %v4503_v48, %v853_v37  ;;  %v1348_v40 = vadd.f32 %v4690_v45, %v1347_v38  ;;  %3775 = vmatmul.msk.f32.gmra.mxu1 %vm175_vm0, %v77_v36 }
 0x13c   :  { %v1529_v41 = vmax.f32 %v1348_v40, 0.0  ;;  %v1068_v42 = vmax.f32 %v1004_v39, 0.0 }
 0x13e   :  { %3823 = vmatmul.msk.f32.gmra.mxu2 %vm1122_vm1, %v1068_v42  ;;  %3870 = vmatmul.msk.f32.gmra.mxu3 %vm175_vm0, %v1529_v41  ;;  %v454_v43 = vpop.f32.mrf.mxu0 }
 0x13f   :  { %v855_v44 = vpop.f32.mrf.mxu1 }
 0x140   :  { %v856_v49 = vadd.f32 %v855_v44, %v454_v43  ;;  %v152_v43 = vld [vmem:[%s5967_s1 + $0x168] sm:$0xff] }
 0x141   :  { %v1350_v50 = vpop.f32.mrf.mxu2  ;;  %3712 = vmatmul.msk.f32.gmra.mxu0 %vm175_vm0, %v146_v46  ;;  %v84_v44 = vld [vmem:[%s5968_s0 + $0x168] sm:$0xff] }
 0x142   :  { %v1005_v51 = vadd.f32 %v4503_v48, %v856_v49  ;;  %v1351_v52 = vadd.f32 %v4690_v45, %v1350_v50  ;;  %3776 = vmatmul.msk.f32.gmra.mxu1 %vm175_vm0, %v78_v47 }
 0x144   :  { %v1530_v53 = vmax.f32 %v1351_v52, 0.0  ;;  %v1069_v54 = vmax.f32 %v1005_v51, 0.0 }
 0x146   :  { %3824 = vmatmul.msk.f32.gmra.mxu2 %vm1122_vm1, %v1069_v54  ;;  %3871 = vmatmul.msk.f32.gmra.mxu3 %vm175_vm0, %v1530_v53  ;;  %v457_v55 = vpop.f32.mrf.mxu0 }
 0x147   :  { %v858_v56 = vpop.f32.mrf.mxu1 }
 0x148   :  { %v859_v59 = vadd.f32 %v858_v56, %v457_v55  ;;  %v153_v55 = vld [vmem:[%s5967_s1 + $0x170] sm:$0xff] }
 0x149   :  { %v1353_v60 = vpop.f32.mrf.mxu2  ;;  %3713 = vmatmul.msk.f32.gmra.mxu0 %vm175_vm0, %v147_v57  ;;  %v85_v56 = vld [vmem:[%s5968_s0 + $0x170] sm:$0xff] }
 0x14a   :  { %v1006_v61 = vadd.f32 %v4503_v48, %v859_v59  ;;  %v1354_v62 = vadd.f32 %v4690_v45, %v1353_v60  ;;  %3777 = vmatmul.msk.f32.gmra.mxu1 %vm175_vm0, %v79_v58 }
 0x14c   :  { %v1070_v63 = vmax.f32 %v1006_v61, 0.0  ;;  %v1531_v0 = vmax.f32 %v1354_v62, 0.0 }
 0x14e   :  { %3825 = vmatmul.msk.f32.gmra.mxu2 %vm1122_vm1, %v1070_v63  ;;  %3872 = vmatmul.msk.f32.gmra.mxu3 %vm175_vm0, %v1531_v0  ;;  %v460_v1 = vpop.f32.mrf.mxu0 }
 0x14f   :  { %v861_v2 = vpop.f32.mrf.mxu1 }
 0x150   :  { %v862_v5 = vadd.f32 %v861_v2, %v460_v1  ;;  %v154_v1 = vld [vmem:[%s5967_s1 + $0x178] sm:$0xff] }
 0x151   :  { %v1356_v6 = vpop.f32.mrf.mxu2  ;;  %3714 = vmatmul.msk.f32.gmra.mxu0 %vm175_vm0, %v148_v3  ;;  %v86_v2 = vld [vmem:[%s5968_s0 + $0x178] sm:$0xff] }
 0x152   :  { %v1007_v7 = vadd.f32 %v4503_v48, %v862_v5  ;;  %v1357_v8 = vadd.f32 %v4690_v45, %v1356_v6  ;;  %3778 = vmatmul.msk.f32.gmra.mxu1 %vm175_vm0, %v80_v4 }
 0x154   :  { %v1071_v9 = vmax.f32 %v1007_v7, 0.0  ;;  %v1532_v10 = vmax.f32 %v1357_v8, 0.0 }
 0x156   :  { %3826 = vmatmul.msk.f32.gmra.mxu2 %vm1122_vm1, %v1071_v9  ;;  %3873 = vmatmul.msk.f32.gmra.mxu3 %vm175_vm0, %v1532_v10  ;;  %v463_v11 = vpop.f32.mrf.mxu0 }
 0x157   :  { %v864_v12 = vpop.f32.mrf.mxu1 }
 0x158   :  { %v865_v15 = vadd.f32 %v864_v12, %v463_v11  ;;  %v155_v11 = vld [vmem:[%s5967_s1 + $0x180] sm:$0xff] }
 0x159   :  { %v1359_v16 = vpop.f32.mrf.mxu2  ;;  %3715 = vmatmul.msk.f32.gmra.mxu0 %vm175_vm0, %v149_v13  ;;  %v87_v12 = vld [vmem:[%s5968_s0 + $0x180] sm:$0xff] }
 0x15a   :  { %v1008_v17 = vadd.f32 %v4503_v48, %v865_v15  ;;  %v1360_v18 = vadd.f32 %v4690_v45, %v1359_v16  ;;  %3779 = vmatmul.msk.f32.gmra.mxu1 %vm175_vm0, %v81_v14 }
 0x15c   :  { %v1072_v19 = vmax.f32 %v1008_v17, 0.0  ;;  %v1533_v20 = vmax.f32 %v1360_v18, 0.0 }
 0x15e   :  { %3827 = vmatmul.msk.f32.gmra.mxu2 %vm1122_vm1, %v1072_v19  ;;  %3874 = vmatmul.msk.f32.gmra.mxu3 %vm175_vm0, %v1533_v20  ;;  %v466_v21 = vpop.f32.mrf.mxu0 }
 0x15f   :  { %v867_v22 = vpop.f32.mrf.mxu1 }
 0x160   :  { %v868_v25 = vadd.f32 %v867_v22, %v466_v21  ;;  %v156_v21 = vld [vmem:[%s5967_s1 + $0x188] sm:$0xff] }
 0x161   :  { %v1362_v26 = vpop.f32.mrf.mxu2  ;;  %3716 = vmatmul.msk.f32.gmra.mxu0 %vm175_vm0, %v150_v23  ;;  %v88_v22 = vld [vmem:[%s5968_s0 + $0x188] sm:$0xff] }
 0x162   :  { %v1009_v27 = vadd.f32 %v4503_v48, %v868_v25  ;;  %v1363_v28 = vadd.f32 %v4690_v45, %v1362_v26  ;;  %3780 = vmatmul.msk.f32.gmra.mxu1 %vm175_vm0, %v82_v24 }
 0x164   :  { %v1073_v29 = vmax.f32 %v1009_v27, 0.0  ;;  %v1534_v30 = vmax.f32 %v1363_v28, 0.0 }
 0x166   :  { %3828 = vmatmul.msk.f32.gmra.mxu2 %vm1122_vm1, %v1073_v29  ;;  %3875 = vmatmul.msk.f32.gmra.mxu3 %vm175_vm0, %v1534_v30  ;;  %v469_v31 = vpop.f32.mrf.mxu0  ;;  %v4899_v29 = vld [vmem:[%s5973_s8] ss:$0 sm:$0xff] }
 0x167   :  { %v870_v32 = vpop.f32.mrf.mxu1 }
 0x168   :  { %v871_v35 = vadd.f32 %v870_v32, %v469_v31  ;;  %v157_v32 = vld [vmem:[%s5967_s1 + $0x190] sm:$0xff] }
 0x169   :  { %v1365_v36 = vpop.f32.mrf.mxu2  ;;  %3717 = vmatmul.msk.f32.gmra.mxu0 %vm175_vm0, %v151_v33  ;;  %v89_v33 = vld [vmem:[%s5968_s0 + $0x190] sm:$0xff] }
 0x16a   :  { %v1010_v37 = vadd.f32 %v4503_v48, %v871_v35  ;;  %v1366_v38 = vadd.f32 %v4690_v45, %v1365_v36  ;;  %3781 = vmatmul.msk.f32.gmra.mxu1 %vm175_vm0, %v83_v34 }
 0x16c   :  { %v1074_v39 = vmax.f32 %v1010_v37, 0.0  ;;  %v1535_v40 = vmax.f32 %v1366_v38, 0.0 }
 0x16e   :  { %3829 = vmatmul.msk.f32.gmra.mxu2 %vm1122_vm1, %v1074_v39  ;;  %3876 = vmatmul.msk.f32.gmra.mxu3 %vm175_vm0, %v1535_v40  ;;  %v472_v41 = vpop.f32.mrf.mxu0  ;;  %v4915_v40 = vld [vmem:[%s5974_s9] ss:$0 sm:$0xff] }
 0x16f   :  { %v873_v42 = vpop.f32.mrf.mxu1 }
 0x170   :  { %v874_v46 = vadd.f32 %v873_v42, %v472_v41 }
 0x171   :  { %v1368_v47 = vpop.f32.mrf.mxu2  ;;  %3718 = vmatmul.msk.f32.gmra.mxu0 %vm175_vm0, %v152_v43 }
 0x172   :  { %v1011_v49 = vadd.f32 %v4503_v48, %v874_v46  ;;  %v1369_v50 = vadd.f32 %v4690_v45, %v1368_v47  ;;  %3782 = vmatmul.msk.f32.gmra.mxu1 %vm175_vm0, %v84_v44 }
 0x174   :  { %v1075_v51 = vmax.f32 %v1011_v49, 0.0  ;;  %v1536_v52 = vmax.f32 %v1369_v50, 0.0  ;;  %v158_v49 = vld [vmem:[%s5967_s1 + $0x198] sm:$0xff] }
 0x175   :  { %v90_v50 = vld [vmem:[%s5968_s0 + $0x198] sm:$0xff] }
 0x176   :  { %3830 = vmatmul.msk.f32.gmra.mxu2 %vm1122_vm1, %v1075_v51  ;;  %3877 = vmatmul.msk.f32.gmra.mxu3 %vm175_vm0, %v1536_v52  ;;  %v475_v53 = vpop.f32.mrf.mxu0 }
 0x177   :  { %v876_v54 = vpop.f32.mrf.mxu1 }
 0x178   :  { %v877_v57 = vadd.f32 %v876_v54, %v475_v53 }
 0x179   :  { %v1371_v58 = vpop.f32.mrf.mxu2  ;;  %3719 = vmatmul.msk.f32.gmra.mxu0 %vm175_vm0, %v153_v55 }
 0x17a   :  { %v1012_v59 = vadd.f32 %v4503_v48, %v877_v57  ;;  %v1372_v60 = vadd.f32 %v4690_v45, %v1371_v58  ;;  %3783 = vmatmul.msk.f32.gmra.mxu1 %vm175_vm0, %v85_v56 }
 0x17c   :  { %v1076_v61 = vmax.f32 %v1012_v59, 0.0  ;;  %v1537_v62 = vmax.f32 %v1372_v60, 0.0 }
 0x17e   :  { %3831 = vmatmul.msk.f32.gmra.mxu2 %vm1122_vm1, %v1076_v61  ;;  %3878 = vmatmul.msk.f32.gmra.mxu3 %vm175_vm0, %v1537_v62  ;;  %v478_v63 = vpop.f32.mrf.mxu0 }
 0x17f   :  { %v879_v0 = vpop.f32.mrf.mxu1 }
 0x180   :  { %v880_v3 = vadd.f32 %v879_v0, %v478_v63  ;;  %v159_v0 = vld [vmem:[%s5967_s1 + $0x1a0] sm:$0xff] }
 0x181   :  { %v1374_v4 = vpop.f32.mrf.mxu2  ;;  %3720 = vmatmul.msk.f32.gmra.mxu0 %vm175_vm0, %v154_v1  ;;  %v91_v1 = vld [vmem:[%s5968_s0 + $0x1a0] sm:$0xff] }
 0x182   :  { %v1013_v5 = vadd.f32 %v4503_v48, %v880_v3  ;;  %v1375_v6 = vadd.f32 %v4690_v45, %v1374_v4  ;;  %3784 = vmatmul.msk.f32.gmra.mxu1 %vm175_vm0, %v86_v2 }
 0x184   :  { %v1077_v7 = vmax.f32 %v1013_v5, 0.0  ;;  %v1538_v8 = vmax.f32 %v1375_v6, 0.0 }
 0x186   :  { %3832 = vmatmul.msk.f32.gmra.mxu2 %vm1122_vm1, %v1077_v7  ;;  %3879 = vmatmul.msk.f32.gmra.mxu3 %vm175_vm0, %v1538_v8  ;;  %v481_v9 = vpop.f32.mrf.mxu0 }
 0x187   :  { %v882_v10 = vpop.f32.mrf.mxu1 }
 0x188   :  { %v883_v13 = vadd.f32 %v882_v10, %v481_v9 }
 0x189   :  { %v1377_v14 = vpop.f32.mrf.mxu2  ;;  %3721 = vmatmul.msk.f32.gmra.mxu0 %vm175_vm0, %v155_v11 }
 0x18a   :  { %v1014_v15 = vadd.f32 %v4503_v48, %v883_v13  ;;  %v1378_v16 = vadd.f32 %v4690_v45, %v1377_v14  ;;  %3785 = vmatmul.msk.f32.gmra.mxu1 %vm175_vm0, %v87_v12 }
 0x18c   :  { %v1078_v17 = vmax.f32 %v1014_v15, 0.0  ;;  %v1539_v18 = vmax.f32 %v1378_v16, 0.0  ;;  %v160_v15 = vld [vmem:[%s5967_s1 + $0x1a8] sm:$0xff] }
 0x18d   :  { %v92_v16 = vld [vmem:[%s5968_s0 + $0x1a8] sm:$0xff] }
 0x18e   :  { %3833 = vmatmul.msk.f32.gmra.mxu2 %vm1122_vm1, %v1078_v17  ;;  %3880 = vmatmul.msk.f32.gmra.mxu3 %vm175_vm0, %v1539_v18  ;;  %v484_v19 = vpop.f32.mrf.mxu0 }
 0x18f   :  { %v885_v20 = vpop.f32.mrf.mxu1 }
 0x190   :  { %v886_v23 = vadd.f32 %v885_v20, %v484_v19 }
 0x191   :  { %v1380_v24 = vpop.f32.mrf.mxu2  ;;  %3722 = vmatmul.msk.f32.gmra.mxu0 %vm175_vm0, %v156_v21 }
 0x192   :  { %v1015_v25 = vadd.f32 %v4503_v48, %v886_v23  ;;  %v1381_v26 = vadd.f32 %v4690_v45, %v1380_v24  ;;  %3786 = vmatmul.msk.f32.gmra.mxu1 %vm175_vm0, %v88_v22 }
 0x194   :  { %v1079_v27 = vmax.f32 %v1015_v25, 0.0  ;;  %v1540_v28 = vmax.f32 %v1381_v26, 0.0 }
 0x196   :  { %3834 = vmatmul.msk.f32.gmra.mxu2 %vm1122_vm1, %v1079_v27  ;;  %3881 = vmatmul.msk.f32.gmra.mxu3 %vm175_vm0, %v1540_v28  ;;  %v487_v30 = vpop.f32.mrf.mxu0 }
 0x197   :  { %v888_v31 = vpop.f32.mrf.mxu1 }
 0x198   :  { %v889_v34 = vadd.f32 %v888_v31, %v487_v30  ;;  %v93_v31 = vld [vmem:[%s5968_s0 + $0x1b0] sm:$0xff] }
 0x199   :  { %v1383_v35 = vpop.f32.mrf.mxu2  ;;  %v1805_v36 = vpop.f32.mrf.mxu3  ;;  %3723 = vmatmul.msk.f32.gmra.mxu0 %vm175_vm0, %v157_v32 }
 0x19a   :  { %v1016_v37 = vadd.f32 %v4503_v48, %v889_v34  ;;  %v1384_v38 = vadd.f32 %v4690_v45, %v1383_v35  ;;  %v1806_v39 = vadd.f32 %v4899_v29, %v1805_v36  ;;  %3787 = vmatmul.msk.f32.gmra.mxu1 %vm175_vm0, %v89_v33  ;;  %v4975_v36 = vld [vmem:[%s5969_s4] ss:$0 sm:$0xff] }
 0x19c   :  { %v1080_v41 = vmax.f32 %v1016_v37, 0.0  ;;  %v1541_v42 = vmax.f32 %v1384_v38, 0.0  ;;  %v1997_v43 = vmax.f32 %v1806_v39, 0.0 }
 0x19e   :  { %3835 = vmatmul.msk.f32.gmra.mxu2 %vm1122_vm1, %v1080_v41  ;;  %3882 = vmatmul.msk.f32.gmra.mxu3 %vm175_vm0, %v1541_v42  ;;  %v2065_v44 = vmul.f32 %v4915_v40, %v1997_v43  ;;  %v490_v46 = vpop.f32.mrf.mxu0 }
 0x19f   :  { %v891_v47 = vpop.f32.mrf.mxu1 }
 0x1a0   :  { %v892_v51 = vadd.f32 %v891_v47, %v490_v46  ;;  %v2130_v52 = vsel %vm2129_vm2, %v2065_v44, 0.0 }
 0x1a1   :  { %v1386_v53 = vpop.f32.mrf.mxu2  ;;  %v1808_v54 = vpop.f32.mrf.mxu3  ;;  %2131 = vadd.xlane.f32.xlu0 %v2130_v52  ;;  %3724 = vmatmul.msk.f32.gmra.mxu0 %vm175_vm0, %v158_v49  ;;  %v162_v49 = vld [vmem:[%s5967_s1 + $0x1b8] sm:$0xff] }
 0x1a2   :  { %v1017_v55 = vadd.f32 %v4503_v48, %v892_v51  ;;  %v1387_v56 = vadd.f32 %v4690_v45, %v1386_v53  ;;  %v1809_v57 = vadd.f32 %v4899_v29, %v1808_v54  ;;  %3788 = vmatmul.msk.f32.gmra.mxu1 %vm175_vm0, %v90_v50  ;;  %v94_v50 = vld [vmem:[%s5968_s0 + $0x1b8] sm:$0xff] }
 0x1a4   :  { %v1081_v58 = vmax.f32 %v1017_v55, 0.0  ;;  %v1542_v59 = vmax.f32 %v1387_v56, 0.0  ;;  %v1998_v60 = vmax.f32 %v1809_v57, 0.0 }
 0x1a6   :  { %3836 = vmatmul.msk.f32.gmra.mxu2 %vm1122_vm1, %v1081_v58  ;;  %3883 = vmatmul.msk.f32.gmra.mxu3 %vm175_vm0, %v1542_v59  ;;  %v2066_v61 = vmul.f32 %v4915_v40, %v1998_v60  ;;  %v493_v62 = vpop.f32.mrf.mxu0 }
 0x1a7   :  { %v894_v63 = vpop.f32.mrf.mxu1 }
 0x1a8   :  { %v895_v2 = vadd.f32 %v894_v63, %v493_v62  ;;  %v2133_v3 = vsel %vm2129_vm2, %v2066_v61, 0.0 }
 0x1a9   :  { %v1389_v4 = vpop.f32.mrf.mxu2  ;;  %v1811_v5 = vpop.f32.mrf.mxu3  ;;  %2134 = vadd.xlane.f32.xlu0 %v2133_v3  ;;  %3725 = vmatmul.msk.f32.gmra.mxu0 %vm175_vm0, %v159_v0  ;;  %v163_v0 = vld [vmem:[%s5967_s1 + $0x1c0] sm:$0xff] }
 0x1aa   :  { %v1018_v6 = vadd.f32 %v4503_v48, %v895_v2  ;;  %v1390_v7 = vadd.f32 %v4690_v45, %v1389_v4  ;;  %v1812_v8 = vadd.f32 %v4899_v29, %v1811_v5  ;;  %3789 = vmatmul.msk.f32.gmra.mxu1 %vm175_vm0, %v91_v1  ;;  %v95_v1 = vld [vmem:[%s5968_s0 + $0x1c0] sm:$0xff] }
 0x1ac   :  { %v1082_v9 = vmax.f32 %v1018_v6, 0.0  ;;  %v1543_v10 = vmax.f32 %v1390_v7, 0.0  ;;  %v1999_v11 = vmax.f32 %v1812_v8, 0.0 }
 0x1ae   :  { %3837 = vmatmul.msk.f32.gmra.mxu2 %vm1122_vm1, %v1082_v9  ;;  %3884 = vmatmul.msk.f32.gmra.mxu3 %vm175_vm0, %v1543_v10  ;;  %v2067_v12 = vmul.f32 %v4915_v40, %v1999_v11  ;;  %v496_v13 = vpop.f32.mrf.mxu0 }
 0x1af   :  { %v897_v14 = vpop.f32.mrf.mxu1 }
 0x1b0   :  { %v898_v17 = vadd.f32 %v897_v14, %v496_v13  ;;  %v2136_v18 = vsel %vm2129_vm2, %v2067_v12, 0.0 }
 0x1b1   :  { %v1392_v19 = vpop.f32.mrf.mxu2  ;;  %v1814_v20 = vpop.f32.mrf.mxu3  ;;  %2137 = vadd.xlane.f32.xlu1 %v2136_v18  ;;  %3726 = vmatmul.msk.f32.gmra.mxu0 %vm175_vm0, %v160_v15  ;;  %v164_v15 = vld [vmem:[%s5967_s1 + $0x1c8] sm:$0xff] }
 0x1b2   :  { %v1019_v21 = vadd.f32 %v4503_v48, %v898_v17  ;;  %v1393_v22 = vadd.f32 %v4690_v45, %v1392_v19  ;;  %v1815_v23 = vadd.f32 %v4899_v29, %v1814_v20  ;;  %3790 = vmatmul.msk.f32.gmra.mxu1 %vm175_vm0, %v92_v16  ;;  %v161_v48 = vld [vmem:[%s5967_s1 + $0x1b0] sm:$0xff]  ;;  %v96_v16 = vld [vmem:[%s5968_s0 + $0x1c8] sm:$0xff] }
 0x1b4   :  { %v1083_v24 = vmax.f32 %v1019_v21, 0.0  ;;  %v1544_v25 = vmax.f32 %v1393_v22, 0.0  ;;  %v2000_v26 = vmax.f32 %v1815_v23, 0.0 }
 0x1b6   :  { %3838 = vmatmul.msk.f32.gmra.mxu2 %vm1122_vm1, %v1083_v24  ;;  %3885 = vmatmul.msk.f32.gmra.mxu3 %vm175_vm0, %v1544_v25  ;;  %v2068_v27 = vmul.f32 %v4915_v40, %v2000_v26  ;;  %v499_v28 = vpop.f32.mrf.mxu0 }
 0x1b7   :  { %v900_v30 = vpop.f32.mrf.mxu1 }
 0x1b8   :  { %v901_v32 = vadd.f32 %v900_v30, %v499_v28  ;;  %v2139_v33 = vsel %vm2129_vm2, %v2068_v27, 0.0 }
 0x1b9   :  { %v1395_v34 = vpop.f32.mrf.mxu2  ;;  %v1817_v35 = vpop.f32.mrf.mxu3  ;;  %2140 = vadd.xlane.f32.xlu1 %v2139_v33  ;;  %3727 = vmatmul.msk.f32.gmra.mxu0 %vm175_vm0, %v161_v48  ;;  %v165_v48 = vld [vmem:[%s5967_s1 + $0x1d0] sm:$0xff] }
 0x1ba   :  { %v1020_v37 = vadd.f32 %v4975_v36, %v901_v32  ;;  %v1396_v38 = vadd.f32 %v4690_v45, %v1395_v34  ;;  %v1818_v39 = vadd.f32 %v4899_v29, %v1817_v35  ;;  %3791 = vmatmul.msk.f32.gmra.mxu1 %vm175_vm0, %v93_v31  ;;  %v97_v31 = vld [vmem:[%s5968_s0 + $0x1d0] sm:$0xff] }
 0x1bc   :  { %v1084_v41 = vmax.f32 %v1020_v37, 0.0  ;;  %v1545_v42 = vmax.f32 %v1396_v38, 0.0  ;;  %v2001_v43 = vmax.f32 %v1818_v39, 0.0 }
 0x1be   :  { %3839 = vmatmul.msk.f32.gmra.mxu2 %vm1122_vm1, %v1084_v41  ;;  %3886 = vmatmul.msk.f32.gmra.mxu3 %vm175_vm0, %v1545_v42  ;;  %v2069_v44 = vmul.f32 %v4915_v40, %v2001_v43  ;;  %v502_v46 = vpop.f32.mrf.mxu0 }
 0x1bf   :  { %v903_v47 = vpop.f32.mrf.mxu1 }
 0x1c0   :  { %v904_v51 = vadd.f32 %v903_v47, %v502_v46  ;;  %v2142_v52 = vsel %vm2129_vm2, %v2069_v44, 0.0 }
 0x1c1   :  { %v1398_v53 = vpop.f32.mrf.mxu2  ;;  %v1820_v54 = vpop.f32.mrf.mxu3  ;;  %2143 = vadd.xlane.f32.xlu2 %v2142_v52  ;;  %3728 = vmatmul.msk.f32.gmra.mxu0 %vm175_vm0, %v162_v49  ;;  %v166_v49 = vld [vmem:[%s5967_s1 + $0x1d8] sm:$0xff] }
 0x1c2   :  { %v1021_v55 = vadd.f32 %v4975_v36, %v904_v51  ;;  %v1399_v56 = vadd.f32 %v4690_v45, %v1398_v53  ;;  %v1821_v57 = vadd.f32 %v4899_v29, %v1820_v54  ;;  %3792 = vmatmul.msk.f32.gmra.mxu1 %vm175_vm0, %v94_v50  ;;  %v98_v50 = vld [vmem:[%s5968_s0 + $0x1d8] sm:$0xff] }
 0x1c4   :  { %v1085_v58 = vmax.f32 %v1021_v55, 0.0  ;;  %v1546_v59 = vmax.f32 %v1399_v56, 0.0  ;;  %v2002_v60 = vmax.f32 %v1821_v57, 0.0 }
 0x1c6   :  { %3840 = vmatmul.msk.f32.gmra.mxu2 %vm1122_vm1, %v1085_v58  ;;  %3887 = vmatmul.msk.f32.gmra.mxu3 %vm175_vm0, %v1546_v59  ;;  %v2070_v61 = vmul.f32 %v4915_v40, %v2002_v60  ;;  %v505_v62 = vpop.f32.mrf.mxu0 }
 0x1c7   :  { %v906_v63 = vpop.f32.mrf.mxu1 }
 0x1c8   :  { %v907_v2 = vadd.f32 %v906_v63, %v505_v62  ;;  %v2145_v3 = vsel %vm2129_vm2, %v2070_v61, 0.0 }
 0x1c9   :  { %v1401_v4 = vpop.f32.mrf.mxu2  ;;  %v1823_v5 = vpop.f32.mrf.mxu3  ;;  %2146 = vadd.xlane.f32.xlu2 %v2145_v3  ;;  %3729 = vmatmul.msk.f32.gmra.mxu0 %vm175_vm0, %v163_v0  ;;  %v167_v0 = vld [vmem:[%s5967_s1 + $0x1e0] sm:$0xff] }
 0x1ca   :  { %v1022_v6 = vadd.f32 %v4975_v36, %v907_v2  ;;  %v1402_v7 = vadd.f32 %v4690_v45, %v1401_v4  ;;  %v1824_v8 = vadd.f32 %v4899_v29, %v1823_v5  ;;  %3793 = vmatmul.msk.f32.gmra.mxu1 %vm175_vm0, %v95_v1  ;;  %v99_v1 = vld [vmem:[%s5968_s0 + $0x1e0] sm:$0xff] }
 0x1cc   :  { %v1086_v9 = vmax.f32 %v1022_v6, 0.0  ;;  %v1547_v10 = vmax.f32 %v1402_v7, 0.0  ;;  %v2003_v11 = vmax.f32 %v1824_v8, 0.0 }
 0x1ce   :  { %3841 = vmatmul.msk.f32.gmra.mxu2 %vm1122_vm1, %v1086_v9  ;;  %3888 = vmatmul.msk.f32.gmra.mxu3 %vm175_vm0, %v1547_v10  ;;  %v2071_v12 = vmul.f32 %v4915_v40, %v2003_v11  ;;  %v508_v13 = vpop.f32.mrf.mxu0 }
 0x1cf   :  { %v909_v14 = vpop.f32.mrf.mxu1 }
 0x1d0   :  { %v910_v17 = vadd.f32 %v909_v14, %v508_v13  ;;  %v2148_v18 = vsel %vm2129_vm2, %v2071_v12, 0.0 }
 0x1d1   :  { %v1404_v19 = vpop.f32.mrf.mxu2  ;;  %v1826_v20 = vpop.f32.mrf.mxu3  ;;  %2149 = vadd.xlane.f32.xlu0 %v2148_v18  ;;  %3730 = vmatmul.msk.f32.gmra.mxu0 %vm175_vm0, %v164_v15  ;;  %v168_v15 = vld [vmem:[%s5967_s1 + $0x1e8] sm:$0xff] }
 0x1d2   :  { %v1023_v21 = vadd.f32 %v4975_v36, %v910_v17  ;;  %v1405_v22 = vadd.f32 %v4690_v45, %v1404_v19  ;;  %v1827_v23 = vadd.f32 %v4899_v29, %v1826_v20  ;;  %3794 = vmatmul.msk.f32.gmra.mxu1 %vm175_vm0, %v96_v16  ;;  %v100_v16 = vld [vmem:[%s5968_s0 + $0x1e8] sm:$0xff] }
 0x1d4   :  { %v1087_v24 = vmax.f32 %v1023_v21, 0.0  ;;  %v1548_v25 = vmax.f32 %v1405_v22, 0.0  ;;  %v2004_v26 = vmax.f32 %v1827_v23, 0.0 }
 0x1d6   :  { %3842 = vmatmul.msk.f32.gmra.mxu2 %vm1122_vm1, %v1087_v24  ;;  %3889 = vmatmul.msk.f32.gmra.mxu3 %vm175_vm0, %v1548_v25  ;;  %v2072_v27 = vmul.f32 %v4915_v40, %v2004_v26  ;;  %v511_v28 = vpop.f32.mrf.mxu0 }
 0x1d7   :  { %v912_v30 = vpop.f32.mrf.mxu1 }
 0x1d8   :  { %v913_v32 = vadd.f32 %v912_v30, %v511_v28  ;;  %v2151_v33 = vsel %vm2129_vm2, %v2072_v27, 0.0 }
 0x1d9   :  { %v1407_v34 = vpop.f32.mrf.mxu2  ;;  %v1829_v35 = vpop.f32.mrf.mxu3  ;;  %2152 = vadd.xlane.f32.xlu1 %v2151_v33  ;;  %3731 = vmatmul.msk.f32.gmra.mxu0 %vm175_vm0, %v165_v48  ;;  %v169_v48 = vld [vmem:[%s5967_s1 + $0x1f0] sm:$0xff] }
 0x1da   :  { %v1024_v37 = vadd.f32 %v4975_v36, %v913_v32  ;;  %v1408_v38 = vadd.f32 %v4690_v45, %v1407_v34  ;;  %v1830_v39 = vadd.f32 %v4899_v29, %v1829_v35  ;;  %3795 = vmatmul.msk.f32.gmra.mxu1 %vm175_vm0, %v97_v31  ;;  %v101_v31 = vld [vmem:[%s5968_s0 + $0x1f0] sm:$0xff] }
 0x1dc   :  { %v1088_v41 = vmax.f32 %v1024_v37, 0.0  ;;  %v1549_v42 = vmax.f32 %v1408_v38, 0.0  ;;  %v2005_v43 = vmax.f32 %v1830_v39, 0.0 }
 0x1de   :  { %3843 = vmatmul.msk.f32.gmra.mxu2 %vm1122_vm1, %v1088_v41  ;;  %3890 = vmatmul.msk.f32.gmra.mxu3 %vm175_vm0, %v1549_v42  ;;  %v2073_v44 = vmul.f32 %v4915_v40, %v2005_v43  ;;  %v514_v46 = vpop.f32.mrf.mxu0 }
 0x1df   :  { %v915_v47 = vpop.f32.mrf.mxu1 }
 0x1e0   :  { %v916_v51 = vadd.f32 %v915_v47, %v514_v46  ;;  %v2154_v52 = vsel %vm2129_vm2, %v2073_v44, 0.0 }
 0x1e1   :  { %v1410_v53 = vpop.f32.mrf.mxu2  ;;  %v1832_v54 = vpop.f32.mrf.mxu3  ;;  %2155 = vadd.xlane.f32.xlu2 %v2154_v52  ;;  %3732 = vmatmul.msk.f32.gmra.mxu0 %vm175_vm0, %v166_v49  ;;  %v102_v49 = vld [vmem:[%s5968_s0 + $0x1f8] sm:$0xff] }
 0x1e2   :  { %v1025_v55 = vadd.f32 %v4975_v36, %v916_v51  ;;  %v1411_v56 = vadd.f32 %v4690_v45, %v1410_v53  ;;  %v1833_v57 = vadd.f32 %v4899_v29, %v1832_v54  ;;  %3796 = vmatmul.msk.f32.gmra.mxu1 %vm175_vm0, %v98_v50 }
 0x1e4   :  { %v1089_v58 = vmax.f32 %v1025_v55, 0.0  ;;  %v1550_v59 = vmax.f32 %v1411_v56, 0.0  ;;  %v2006_v60 = vmax.f32 %v1833_v57, 0.0  ;;  %v5116_v55 = vld [vmem:[%s5971_s6] ss:$0 sm:$0xff] }
 0x1e6   :  { %3844 = vmatmul.msk.f32.gmra.mxu2 %vm1122_vm1, %v1089_v58  ;;  %3891 = vmatmul.msk.f32.gmra.mxu3 %vm175_vm0, %v1550_v59  ;;  %v2074_v61 = vmul.f32 %v4915_v40, %v2006_v60  ;;  %v517_v62 = vpop.f32.mrf.mxu0 }
 0x1e7   :  { %v918_v63 = vpop.f32.mrf.mxu1 }
 0x1e8   :  { %v919_v2 = vadd.f32 %v918_v63, %v517_v62  ;;  %v2157_v3 = vsel %vm2129_vm2, %v2074_v61, 0.0 }
 0x1e9   :  { %v1413_v4 = vpop.f32.mrf.mxu2  ;;  %v1835_v5 = vpop.f32.mrf.mxu3  ;;  %2158 = vadd.xlane.f32.xlu0 %v2157_v3  ;;  %3733 = vmatmul.msk.f32.gmra.mxu0 %vm175_vm0, %v167_v0 }
 0x1ea   :  { %v1026_v6 = vadd.f32 %v4975_v36, %v919_v2  ;;  %v1414_v7 = vadd.f32 %v4690_v45, %v1413_v4  ;;  %v1836_v8 = vadd.f32 %v4899_v29, %v1835_v5  ;;  %3797 = vmatmul.msk.f32.gmra.mxu1 %vm175_vm0, %v99_v1 }
 0x1ec   :  { %v1090_v9 = vmax.f32 %v1026_v6, 0.0  ;;  %v1551_v10 = vmax.f32 %v1414_v7, 0.0  ;;  %v2007_v11 = vmax.f32 %v1836_v8, 0.0 }
 0x1ee   :  { %3845 = vmatmul.msk.f32.gmra.mxu2 %vm1122_vm1, %v1090_v9  ;;  %3892 = vmatmul.msk.f32.gmra.mxu3 %vm175_vm0, %v1551_v10  ;;  %v2075_v12 = vmul.f32 %v4915_v40, %v2007_v11  ;;  %v520_v13 = vpop.f32.mrf.mxu0 }
 0x1ef   :  { %v921_v14 = vpop.f32.mrf.mxu1 }
 0x1f0   :  { %v922_v17 = vadd.f32 %v921_v14, %v520_v13  ;;  %v2160_v18 = vsel %vm2129_vm2, %v2075_v12, 0.0 }
 0x1f1   :  { %v1416_v19 = vpop.f32.mrf.mxu2  ;;  %v1838_v20 = vpop.f32.mrf.mxu3  ;;  %2161 = vadd.xlane.f32.xlu1 %v2160_v18  ;;  %3734 = vmatmul.msk.f32.gmra.mxu0 %vm175_vm0, %v168_v15 }
 0x1f2   :  { %v1027_v21 = vadd.f32 %v4975_v36, %v922_v17  ;;  %v1417_v22 = vadd.f32 %v4690_v45, %v1416_v19  ;;  %v1839_v23 = vadd.f32 %v4899_v29, %v1838_v20  ;;  %3798 = vmatmul.msk.f32.gmra.mxu1 %vm175_vm0, %v100_v16  ;;  %v5139_v20 = vstv %s5975_s10 }
 0x1f4   :  { %v1091_v24 = vmax.f32 %v1027_v21, 0.0  ;;  %v1552_v25 = vmax.f32 %v1417_v22, 0.0  ;;  %v2008_v26 = vmax.f32 %v1839_v23, 0.0 }
 0x1f6   :  { %3846 = vmatmul.msk.f32.gmra.mxu2 %vm1122_vm1, %v1091_v24  ;;  %3893 = vmatmul.msk.f32.gmra.mxu3 %vm175_vm0, %v1552_v25  ;;  %v2076_v27 = vmul.f32 %v4915_v40, %v2008_v26  ;;  %v523_v28 = vpop.f32.mrf.mxu0 }
 0x1f7   :  { %v924_v30 = vpop.f32.mrf.mxu1 }
 0x1f8   :  { %v925_v32 = vadd.f32 %v924_v30, %v523_v28  ;;  %v2163_v33 = vsel %vm2129_vm2, %v2076_v27, 0.0 }
 0x1f9   :  { %v1419_v34 = vpop.f32.mrf.mxu2  ;;  %v1841_v35 = vpop.f32.mrf.mxu3  ;;  %2164 = vadd.xlane.f32.xlu2 %v2163_v33  ;;  %3735 = vmatmul.msk.f32.gmra.mxu0 %vm175_vm0, %v169_v48 }
 0x1fa   :  { %v1028_v37 = vadd.f32 %v4975_v36, %v925_v32  ;;  %v1420_v38 = vadd.f32 %v4690_v45, %v1419_v34  ;;  %v1842_v39 = vadd.f32 %v4899_v29, %v1841_v35  ;;  %3799 = vmatmul.msk.f32.gmra.mxu1 %vm175_vm0, %v101_v31  ;;  %v170_v45 = vld [vmem:[%s5967_s1 + $0x1f8] sm:$0xff] }
 0x1fc   :  { %v1092_v41 = vmax.f32 %v1028_v37, 0.0  ;;  %v1553_v42 = vmax.f32 %v1420_v38, 0.0  ;;  %v2009_v43 = vmax.f32 %v1842_v39, 0.0 }
 0x1fe   :  { %3847 = vmatmul.msk.f32.gmra.mxu2 %vm1122_vm1, %v1092_v41  ;;  %3894 = vmatmul.msk.f32.gmra.mxu3 %vm175_vm0, %v1553_v42  ;;  %v2077_v44 = vmul.f32 %v4915_v40, %v2009_v43  ;;  %v526_v46 = vpop.f32.mrf.mxu0 }
 0x1ff   :  { %v927_v47 = vpop.f32.mrf.mxu1 }
 0x200   :  { %v928_v50 = vadd.f32 %v927_v47, %v526_v46  ;;  %v2166_v51 = vsel %vm2129_vm2, %v2077_v44, 0.0 }
 0x201   :  { %v1422_v52 = vpop.f32.mrf.mxu2  ;;  %v1844_v53 = vpop.f32.mrf.mxu3  ;;  %2167 = vadd.xlane.f32.xlu0 %v2166_v51  ;;  %3736 = vmatmul.msk.f32.gmra.mxu0 %vm175_vm0, %v170_v45 }
 0x202   :  { %v1029_v54 = vadd.f32 %v4975_v36, %v928_v50  ;;  %v1423_v56 = vadd.f32 %v5116_v55, %v1422_v52  ;;  %v1845_v57 = vadd.f32 %v4899_v29, %v1844_v53  ;;  %3800 = vmatmul.msk.f32.gmra.mxu1 %vm175_vm0, %v102_v49 }
 0x204   :  { %v1093_v58 = vmax.f32 %v1029_v54, 0.0  ;;  %v1554_v59 = vmax.f32 %v1423_v56, 0.0  ;;  %v2010_v60 = vmax.f32 %v1845_v57, 0.0 }
 0x206   :  { %3848 = vmatmul.msk.f32.gmra.mxu2 %vm1122_vm1, %v1093_v58  ;;  %3895 = vmatmul.msk.f32.gmra.mxu3 %vm175_vm0, %v1554_v59  ;;  %v2078_v61 = vmul.f32 %v4915_v40, %v2010_v60  ;;  %v529_v62 = vpop.f32.mrf.mxu0 }
 0x207   :  { %v930_v63 = vpop.f32.mrf.mxu1 }
 0x208   :  { %v931_v0 = vadd.f32 %v930_v63, %v529_v62  ;;  %v2169_v1 = vsel %vm2129_vm2, %v2078_v61, 0.0 }
 0x209   :  { %v1425_v2 = vpop.f32.mrf.mxu2  ;;  %v1847_v3 = vpop.f32.mrf.mxu3  ;;  %2170 = vadd.xlane.f32.xlu1 %v2169_v1 }
 0x20a   :  { %v1030_v4 = vadd.f32 %v4975_v36, %v931_v0  ;;  %v1426_v5 = vadd.f32 %v5116_v55, %v1425_v2  ;;  %v1848_v6 = vadd.f32 %v4899_v29, %v1847_v3 }
 0x20c   :  { %v1094_v7 = vmax.f32 %v1030_v4, 0.0  ;;  %v1555_v8 = vmax.f32 %v1426_v5, 0.0  ;;  %v2011_v9 = vmax.f32 %v1848_v6, 0.0 }
 0x20e   :  { %3849 = vmatmul.msk.f32.gmra.mxu2 %vm1122_vm1, %v1094_v7  ;;  %3896 = vmatmul.msk.f32.gmra.mxu3 %vm175_vm0, %v1555_v8  ;;  %v2079_v10 = vmul.f32 %v4915_v40, %v2011_v9  ;;  %v532_v11 = vpop.f32.mrf.mxu0 }
 0x20f   :  { %v933_v12 = vpop.f32.mrf.mxu1 }
 0x210   :  { %v934_v13 = vadd.f32 %v933_v12, %v532_v11  ;;  %v2172_v14 = vsel %vm2129_vm2, %v2079_v10, 0.0 }
 0x211   :  { %v1428_v15 = vpop.f32.mrf.mxu2  ;;  %v1850_v16 = vpop.f32.mrf.mxu3  ;;  %2173 = vadd.xlane.f32.xlu2 %v2172_v14 }
 0x212   :  { %v1031_v17 = vadd.f32 %v4975_v36, %v934_v13  ;;  %v1429_v18 = vadd.f32 %v5116_v55, %v1428_v15  ;;  %v1851_v19 = vadd.f32 %v4899_v29, %v1850_v16 }
 0x214   :  { %v1095_v21 = vmax.f32 %v1031_v17, 0.0  ;;  %v1556_v22 = vmax.f32 %v1429_v18, 0.0  ;;  %v2012_v23 = vmax.f32 %v1851_v19, 0.0  ;;  %v2132_v24 = vpop.xlane.xlu0 %2131 }
 0x215   :  { %v2324_v25 = vadd.f32 %v5139_v20, %v2132_v24 }
 0x216   :  { %3850 = vmatmul.msk.f32.gmra.mxu2 %vm1122_vm1, %v1095_v21  ;;  %3897 = vmatmul.msk.f32.gmra.mxu3 %vm175_vm0, %v1556_v22  ;;  %v2080_v26 = vmul.f32 %v4915_v40, %v2012_v23  ;;  %v535_v28 = vpop.f32.mrf.mxu0 }
 0x217   :  { %v3929_v27 = vmul.f32 -1.442695, %v2324_v25  ;;  %v936_v30 = vpop.f32.mrf.mxu1 }
 0x218   :  { %v937_v48 = vadd.f32 %v936_v30, %v535_v28  ;;  %v2175_v31 = vsel %vm2129_vm2, %v2080_v26, 0.0 }
 0x219   :  { %3997 = vpow2.f32 %v3929_v27  ;;  %v1431_v32 = vpop.f32.mrf.mxu2  ;;  %v1853_v33 = vpop.f32.mrf.mxu3  ;;  %2176 = vadd.xlane.f32.xlu0 %v2175_v31 }
 0x21a   :  { %v1032_v34 = vadd.f32 %v4975_v36, %v937_v48  ;;  %v1432_v35 = vadd.f32 %v5116_v55, %v1431_v32  ;;  %v1854_v37 = vadd.f32 %v4899_v29, %v1853_v33 }
 0x21c   :  { %v1096_v38 = vmax.f32 %v1032_v34, 0.0  ;;  %v1557_v39 = vmax.f32 %v1432_v35, 0.0  ;;  %v2013_v41 = vmax.f32 %v1854_v37, 0.0  ;;  %v2135_v42 = vpop.xlane.xlu0 %2134 }
 0x21d   :  { %v2325_v43 = vadd.f32 %v5139_v20, %v2135_v42 }
 0x21e   :  { %3851 = vmatmul.msk.f32.gmra.mxu2 %vm1122_vm1, %v1096_v38  ;;  %3898 = vmatmul.msk.f32.gmra.mxu3 %vm175_vm0, %v1557_v39  ;;  %v2081_v44 = vmul.f32 %v4915_v40, %v2013_v41  ;;  %v538_v45 = vpop.f32.mrf.mxu0 }
 0x21f   :  { %v3998_v46 = vpop.eup %3997  ;;  %v3930_v47 = vmul.f32 -1.442695, %v2325_v43  ;;  %v939_v49 = vpop.f32.mrf.mxu1 }
 0x220   :  { %v5153_v50 = vadd.f32 1.0, %v3998_v46  ;;  %v940_v51 = vadd.f32 %v939_v49, %v538_v45  ;;  %v2178_v52 = vsel %vm2129_vm2, %v2081_v44, 0.0 }
 0x221   :  { %3999 = vpow2.f32 %v3930_v47  ;;  %v1434_v53 = vpop.f32.mrf.mxu2  ;;  %v1856_v54 = vpop.f32.mrf.mxu3  ;;  %2179 = vadd.xlane.f32.xlu1 %v2178_v52 }
 0x222   :  { %4001 = vrcp.f32 %v5153_v50  ;;  %v1033_v56 = vadd.f32 %v4975_v36, %v940_v51  ;;  %v1435_v57 = vadd.f32 %v5116_v55, %v1434_v53  ;;  %v1857_v58 = vadd.f32 %v4899_v29, %v1856_v54 }
 0x223   :  { %v2653_v16 = vand.u32 2147483647, %v5153_v50  ;;  %v2655_v17 = vand.u32 2147483648, %v5153_v50  ;;  %vm2649_vm5 = vweird.f32 %v5153_v50 }
 0x224   :  { %v2138_v59 = vpop.xlane.xlu1 %2137  ;;  %v1097_v60 = vmax.f32 %v1033_v56, 0.0  ;;  %v1558_v61 = vmax.f32 %v1435_v57, 0.0  ;;  %v2014_v62 = vmax.f32 %v1857_v58, 0.0 }
 0x225   :  { %v2326_v63 = vadd.f32 %v5139_v20, %v2138_v59  ;;  %v2656_v31 = vor.u32 1.1754944e-38, %v2655_v17  ;;  %vm2654_vm7 = vcmp.eq.f32.partialorder %v2653_v16, 8.507059e+37 }
 0x226   :  { %3852 = vmatmul.msk.f32.gmra.mxu2 %vm1122_vm1, %v1097_v60  ;;  %3899 = vmatmul.msk.f32.gmra.mxu3 %vm175_vm0, %v1558_v61  ;;  %v541_v2 = vpop.f32.mrf.mxu0  ;;  %v2082_v4 = vmul.f32 %v4915_v40, %v2014_v62 }
 0x227   :  { %v4000_v0 = vpop.eup %3999  ;;  %v3931_v1 = vmul.f32 -1.442695, %v2326_v63  ;;  %v942_v3 = vpop.f32.mrf.mxu1 }
 0x228   :  { %v4002_v5 = vpop.eup %4001  ;;  %v5164_v6 = vadd.f32 1.0, %v4000_v0  ;;  %v943_v7 = vadd.f32 %v942_v3, %v541_v2  ;;  %v2181_v11 = vsel %vm2129_vm2, %v2082_v4, 0.0 }
 0x229   :  { %v2645_v8 = vmul.f32 %v4002_v5, %v5153_v50  ;;  %4003 = vpow2.f32 %v3931_v1  ;;  %v1437_v9 = vpop.f32.mrf.mxu2  ;;  %v1859_v10 = vpop.f32.mrf.mxu3  ;;  %2182 = vadd.xlane.f32.xlu2 %v2181_v11  ;;  %vm2650_vm3 = vweird.f32 %v4002_v5 }
 0x22a   :  { %4005 = vrcp.f32 %v5164_v6  ;;  %v1034_v13 = vadd.f32 %v4975_v36, %v943_v7  ;;  %v1438_v14 = vadd.f32 %v5116_v55, %v1437_v9  ;;  %v1860_v15 = vadd.f32 %v4899_v29, %v1859_v10  ;;  %vm2651_vm6 = vmor %vm2649_vm5, %vm2650_vm3 }
 0x22b   :  { %v2646_v12 = vsub.f32 1.0, %v2645_v8  ;;  %v2668_v46 = vand.u32 2147483647, %v5164_v6  ;;  %v2670_v47 = vand.u32 2147483648, %v5164_v6  ;;  %vm2664_vm9 = vweird.f32 %v5164_v6 }
 0x22c   :  { %v2141_v18 = vpop.xlane.xlu1 %2140  ;;  %v1098_v21 = vmax.f32 %v1034_v13, 0.0  ;;  %v1559_v22 = vmax.f32 %v1438_v14, 0.0  ;;  %v2015_v23 = vmax.f32 %v1860_v15, 0.0 }
 0x22d   :  { %v2647_v19 = vmul.f32 %v4002_v5, %v2646_v12  ;;  %v2327_v24 = vadd.f32 %v5139_v20, %v2141_v18  ;;  %v2671_v62 = vor.u32 1.1754944e-38, %v2670_v47  ;;  %vm2669_vm11 = vcmp.eq.f32.partialorder %v2668_v46, 8.507059e+37 }
 0x22e   :  { %3853 = vmatmul.msk.f32.gmra.mxu2 %vm1122_vm1, %v1098_v21  ;;  %3900 = vmatmul.msk.f32.gmra.mxu3 %vm175_vm0, %v1559_v22  ;;  %v544_v27 = vpop.f32.mrf.mxu0  ;;  %v2083_v30 = vmul.f32 %v4915_v40, %v2015_v23 }
 0x22f   :  { %v4004_v25 = vpop.eup %4003  ;;  %v2648_v26 = vadd.f32 %v4002_v5, %v2647_v19  ;;  %v945_v28 = vpop.f32.mrf.mxu1  ;;  %v3932_v33 = vmul.f32 -1.442695, %v2327_v24 }
 0x230   :  { %v4006_v48 = vpop.eup %4005  ;;  %v5180_v32 = vadd.f32 1.0, %v4004_v25  ;;  %v946_v34 = vadd.f32 %v945_v28, %v544_v27  ;;  %v2184_v41 = vsel %vm2129_vm2, %v2083_v30, 0.0 }
 0x231   :  { %v2652_v35 = vsel %vm2651_vm6, %v4002_v5, %v2648_v26  ;;  %v2660_v37 = vmul.f32 %v4006_v48, %v5164_v6  ;;  %v1440_v38 = vpop.f32.mrf.mxu2  ;;  %v1862_v39 = vpop.f32.mrf.mxu3  ;;  %2185 = vadd.xlane.f32.xlu0 %v2184_v41  ;;  %vm2665_vm8 = vweird.f32 %v4006_v48 }
 0x232   :  { %v2657_v42 = vsel %vm2654_vm7, %v2656_v31, %v2652_v35  ;;  %4007 = vrcp.f32 %v5180_v32  ;;  %v1035_v44 = vadd.f32 %v4975_v36, %v946_v34  ;;  %v1441_v45 = vadd.f32 %v5116_v55, %v1440_v38  ;;  %vm2666_vm10 = vmor %vm2664_vm9, %vm2665_vm8 }
 0x233   :  { %3605 = vst.msk [vmem:[%s5976_s11] sm:$0xff] %vm3604_vm4, %v2657_v42  ;;  %v2661_v43 = vsub.f32 1.0, %v2660_v37  ;;  %4009 = vpow2.f32 %v3932_v33  ;;  %v1863_v49 = vadd.f32 %v4899_v29, %v1862_v39  ;;  %v2683_v13 = vand.u32 2147483647, %v5180_v32 }
 0x234   :  { %v2144_v50 = vpop.xlane.xlu2 %2143  ;;  %v1099_v52 = vmax.f32 %v1035_v44, 0.0  ;;  %v1560_v54 = vmax.f32 %v1441_v45, 0.0  ;;  %v2685_v14 = vand.u32 2147483648, %v5180_v32  ;;  %vm2679_vm13 = vweird.f32 %v5180_v32 }
 0x235   :  { %v2662_v51 = vmul.f32 %v4006_v48, %v2661_v43  ;;  %v2328_v53 = vadd.f32 %v5139_v20, %v2144_v50  ;;  %v2016_v56 = vmax.f32 %v1863_v49, 0.0  ;;  %vm2684_vm15 = vcmp.eq.f32.partialorder %v2683_v13, 8.507059e+37 }
 0x236   :  { %3854 = vmatmul.msk.f32.gmra.mxu2 %vm1122_vm1, %v1099_v52  ;;  %v547_v59 = vpop.f32.mrf.mxu0  ;;  %3901 = vmatmul.msk.f32.gmra.mxu3 %vm175_vm0, %v1560_v54  ;;  %v2686_v27 = vor.u32 1.1754944e-38, %v2685_v14 }
 0x237   :  { %v2663_v57 = vadd.f32 %v4006_v48, %v2662_v51  ;;  %v3933_v58 = vmul.f32 -1.442695, %v2328_v53  ;;  %v948_v60 = vpop.f32.mrf.mxu1  ;;  %v2084_v0 = vmul.f32 %v4915_v40, %v2016_v56 }
 0x238   :  { %v4008_v61 = vpop.eup %4007  ;;  %v949_v63 = vadd.f32 %v948_v60, %v547_v59 }
 0x239   :  { %v4010_v1 = vpop.eup %4009  ;;  %v2667_v2 = vsel %vm2666_vm10, %v4006_v48, %v2663_v57  ;;  %v2675_v3 = vmul.f32 %v4008_v61, %v5180_v32  ;;  %4011 = vpow2.f32 %v3933_v58  ;;  %v1443_v4 = vpop.f32.mrf.mxu2  ;;  %v2187_v12 = vsel %vm2129_vm2, %v2084_v0, 0.0 }
 0x23a   :  { %v1865_v5 = vpop.f32.mrf.mxu3  ;;  %v2672_v6 = vsel %vm2669_vm11, %v2671_v62, %v2667_v2  ;;  %v5200_v7 = vadd.f32 1.0, %v4010_v1  ;;  %v1036_v8 = vadd.f32 %v4975_v36, %v949_v63  ;;  %v1444_v9 = vadd.f32 %v5116_v55, %v1443_v4  ;;  %2188 = vadd.xlane.f32.xlu1 %v2187_v12 }
 0x23b   :  { %3606 = vst.msk [vmem:[%s5976_s11 + $0x8] sm:$0xff] %vm3604_vm4, %v2672_v6  ;;  %v2676_v10 = vsub.f32 1.0, %v2675_v3  ;;  %v1866_v11 = vadd.f32 %v4899_v29, %v1865_v5  ;;  %vm2680_vm12 = vweird.f32 %v4008_v61 }
 0x23c   :  { %4013 = vrcp.f32 %v5200_v7  ;;  %v2147_v15 = vpop.xlane.xlu2 %2146  ;;  %v1100_v17 = vmax.f32 %v1036_v8, 0.0  ;;  %v1561_v18 = vmax.f32 %v1444_v9, 0.0  ;;  %vm2681_vm14 = vmor %vm2679_vm13, %vm2680_vm12  ;;  %v2700_v46 = vand.u32 2147483648, %v5200_v7 }
 0x23d   :  { %v2677_v16 = vmul.f32 %v4008_v61, %v2676_v10  ;;  %v2017_v19 = vmax.f32 %v1866_v11, 0.0  ;;  %v2329_v21 = vadd.f32 %v5139_v20, %v2147_v15  ;;  %v2698_v52 = vand.u32 2147483647, %v5200_v7 }
 0x23e   :  { %3855 = vmatmul.msk.f32.gmra.mxu2 %vm1122_vm1, %v1100_v17  ;;  %v550_v24 = vpop.f32.mrf.mxu0  ;;  %3902 = vmatmul.msk.f32.gmra.mxu3 %vm175_vm0, %v1561_v18  ;;  %vm2694_vm5 = vweird.f32 %v5200_v7 }
 0x23f   :  { %v4012_v22 = vpop.eup %4011  ;;  %v2678_v23 = vadd.f32 %v4008_v61, %v2677_v16  ;;  %v951_v25 = vpop.f32.mrf.mxu1  ;;  %v2085_v26 = vmul.f32 %v4915_v40, %v2017_v19  ;;  %v3934_v30 = vmul.f32 -1.442695, %v2329_v21  ;;  %vm2699_vm7 = vcmp.eq.f32.partialorder %v2698_v52, 8.507059e+37 }
 0x240   :  { %v5218_v28 = vadd.f32 1.0, %v4012_v22  ;;  %v952_v48 = vadd.f32 %v951_v25, %v550_v24 }
 0x241   :  { %v2682_v31 = vsel %vm2681_vm14, %v4008_v61, %v2678_v23  ;;  %v1446_v33 = vpop.f32.mrf.mxu2  ;;  %v2190_v32 = vsel %vm2129_vm2, %v2085_v26, 0.0  ;;  %v2701_v61 = vor.u32 1.1754944e-38, %v2700_v46 }
 0x242   :  { %v1868_v34 = vpop.f32.mrf.mxu3  ;;  %v4014_v35 = vpop.eup %4013  ;;  %v2687_v37 = vsel %vm2684_vm15, %v2686_v27, %v2682_v31  ;;  %4015 = vrcp.f32 %v5218_v28  ;;  %2191 = vadd.xlane.f32.xlu2 %v2190_v32  ;;  %v1037_v39 = vadd.f32 %v4975_v36, %v952_v48  ;;  %v1447_v41 = vadd.f32 %v5116_v55, %v1446_v33 }
 0x243   :  { %3607 = vst.msk [vmem:[%s5976_s11 + $0x10] sm:$0xff] %vm3604_vm4, %v2687_v37  ;;  %v2690_v38 = vmul.f32 %v4014_v35, %v5200_v7  ;;  %4017 = vpow2.f32 %v3934_v30  ;;  %v1869_v42 = vadd.f32 %v4899_v29, %v1868_v34  ;;  %vm2695_vm3 = vweird.f32 %v4014_v35 }
 0x244   :  { %v2150_v43 = vpop.xlane.xlu0 %2149  ;;  %v1101_v45 = vmax.f32 %v1037_v39, 0.0  ;;  %v1562_v49 = vmax.f32 %v1447_v41, 0.0  ;;  %vm2696_vm6 = vmor %vm2694_vm5, %vm2695_vm3  ;;  %v2713_v9 = vand.u32 2147483647, %v5218_v28  ;;  %v2715_v10 = vand.u32 2147483648, %v5218_v28 }
 0x245   :  { %v2691_v44 = vsub.f32 1.0, %v2690_v38  ;;  %v2330_v47 = vadd.f32 %v5139_v20, %v2150_v43  ;;  %v2018_v50 = vmax.f32 %v1869_v42, 0.0  ;;  %vm2709_vm9 = vweird.f32 %v5218_v28 }
 0x246   :  { %v553_v54 = vpop.f32.mrf.mxu0  ;;  %3856 = vmatmul.msk.f32.gmra.mxu2 %vm1122_vm1, %v1101_v45  ;;  %3903 = vmatmul.msk.f32.gmra.mxu3 %vm175_vm0, %v1562_v49  ;;  %v2716_v22 = vor.u32 1.1754944e-38, %v2715_v10  ;;  %vm2714_vm11 = vcmp.eq.f32.partialorder %v2713_v9, 8.507059e+37 }
 0x247   :  { %v2692_v51 = vmul.f32 %v4014_v35, %v2691_v44  ;;  %v3935_v53 = vmul.f32 -1.442695, %v2330_v47  ;;  %v954_v56 = vpop.f32.mrf.mxu1  ;;  %v2086_v58 = vmul.f32 %v4915_v40, %v2018_v50  ;;  %v5247_v40 = vld [vmem:[%s5973_s8] ss:$0 sm:$0xff] }
 0x248   :  { %v4016_v57 = vpop.eup %4015  ;;  %v955_v29 = vadd.f32 %v954_v56, %v553_v54 }
 0x249   :  { %v4018_v59 = vpop.eup %4017  ;;  %v2693_v60 = vadd.f32 %v4014_v35, %v2692_v51  ;;  %v2705_v62 = vmul.f32 %v4016_v57, %v5218_v28  ;;  %4019 = vpow2.f32 %v3935_v53  ;;  %v1449_v63 = vpop.f32.mrf.mxu2  ;;  %v2193_v7 = vsel %vm2129_vm2, %v2086_v58, 0.0  ;;  %v5267_v28 = vld [vmem:[%s5974_s9] ss:$0 sm:$0xff] }
 0x24a   :  { %v1871_v0 = vpop.f32.mrf.mxu3  ;;  %v5240_v1 = vadd.f32 1.0, %v4018_v59  ;;  %v1038_v2 = vadd.f32 %v4975_v36, %v955_v29  ;;  %v1450_v3 = vadd.f32 %v5116_v55, %v1449_v63  ;;  %2194 = vadd.xlane.f32.xlu0 %v2193_v7  ;;  %vm2710_vm8 = vweird.f32 %v4016_v57 }
 0x24b   :  { %v1872_v4 = vadd.f32 %v5247_v40, %v1871_v0  ;;  %v2697_v5 = vsel %vm2696_vm6, %v4014_v35, %v2693_v60  ;;  %v2706_v6 = vsub.f32 1.0, %v2705_v62  ;;  %vm2711_vm10 = vmor %vm2709_vm9, %vm2710_vm8 }
 0x24c   :  { %v2702_v8 = vsel %vm2699_vm7, %v2701_v61, %v2697_v5  ;;  %4021 = vrcp.f32 %v5240_v1  ;;  %v2153_v11 = vpop.xlane.xlu1 %2152  ;;  %v1102_v13 = vmax.f32 %v1038_v2, 0.0  ;;  %v1563_v14 = vmax.f32 %v1450_v3, 0.0 }
 0x24d   :  { %3608 = vst.msk [vmem:[%s5976_s11 + $0x18] sm:$0xff] %vm3604_vm4, %v2702_v8  ;;  %v2707_v12 = vmul.f32 %v4016_v57, %v2706_v6  ;;  %v2019_v15 = vmax.f32 %v1872_v4, 0.0  ;;  %v2331_v16 = vadd.f32 %v5139_v20, %v2153_v11  ;;  %v2730_v41 = vand.u32 2147483648, %v5240_v1 }
 0x24e   :  { %v556_v19 = vpop.f32.mrf.mxu0  ;;  %3857 = vmatmul.msk.f32.gmra.mxu2 %vm1122_vm1, %v1102_v13  ;;  %3904 = vmatmul.msk.f32.gmra.mxu3 %vm175_vm0, %v1563_v14  ;;  %v2728_v49 = vand.u32 2147483647, %v5240_v1  ;;  %vm2724_vm13 = vweird.f32 %v5240_v1 }
 0x24f   :  { %v4020_v17 = vpop.eup %4019  ;;  %v2708_v18 = vadd.f32 %v4016_v57, %v2707_v12  ;;  %v957_v21 = vpop.f32.mrf.mxu1  ;;  %v3936_v24 = vmul.f32 -1.442695, %v2331_v16  ;;  %v2087_v48 = vmul.f32 %v5267_v28, %v2019_v15  ;;  %v2731_v58 = vor.u32 1.1754944e-38, %v2730_v41 }
 0x250   :  { %v5260_v23 = vadd.f32 1.0, %v4020_v17  ;;  %v958_v25 = vadd.f32 %v957_v21, %v556_v19  ;;  %vm2729_vm15 = vcmp.eq.f32.partialorder %v2728_v49, 8.507059e+37 }
 0x251   :  { %v2712_v26 = vsel %vm2711_vm10, %v4016_v57, %v2708_v18  ;;  %v1452_v27 = vpop.f32.mrf.mxu2  ;;  %v2196_v42 = vsel %vm2129_vm2, %v2087_v48, 0.0  ;;  %v5318_v48 = vld [vmem:[%s5969_s4] ss:$0 sm:$0xff] }
 0x252   :  { %v1874_v30 = vpop.f32.mrf.mxu3  ;;  %v4022_v31 = vpop.eup %4021  ;;  %v2717_v33 = vsel %vm2714_vm11, %v2716_v22, %v2712_v26  ;;  %4023 = vrcp.f32 %v5260_v23  ;;  %v1039_v32 = vadd.f32 %v4975_v36, %v958_v25  ;;  %v1453_v35 = vadd.f32 %v5116_v55, %v1452_v27  ;;  %2197 = vadd.xlane.f32.xlu1 %v2196_v42 }
 0x253   :  { %3609 = vst.msk [vmem:[%s5976_s11 + $0x20] sm:$0xff] %vm3604_vm4, %v2717_v33  ;;  %v2720_v34 = vmul.f32 %v4022_v31, %v5240_v1  ;;  %4025 = vpow2.f32 %v3936_v24  ;;  %v1875_v37 = vadd.f32 %v5247_v40, %v1874_v30  ;;  %vm2725_vm12 = vweird.f32 %v4022_v31 }
 0x254   :  { %v2156_v38 = vpop.xlane.xlu2 %2155  ;;  %v1103_v44 = vmax.f32 %v1039_v32, 0.0  ;;  %v1564_v46 = vmax.f32 %v1453_v35, 0.0  ;;  %vm2726_vm14 = vmor %vm2724_vm13, %vm2725_vm12  ;;  %v2743_v6 = vand.u32 2147483647, %v5260_v23  ;;  %v2745_v7 = vand.u32 2147483648, %v5260_v23 }
 0x255   :  { %v2721_v39 = vsub.f32 1.0, %v2720_v34  ;;  %v2332_v43 = vadd.f32 %v5139_v20, %v2156_v38  ;;  %v2020_v47 = vmax.f32 %v1875_v37, 0.0  ;;  %vm2739_vm5 = vweird.f32 %v5260_v23 }
 0x256   :  { %v559_v51 = vpop.f32.mrf.mxu0  ;;  %3858 = vmatmul.msk.f32.gmra.mxu2 %vm1122_vm1, %v1103_v44  ;;  %3905 = vmatmul.msk.f32.gmra.mxu3 %vm175_vm0, %v1564_v46  ;;  %v2746_v17 = vor.u32 1.1754944e-38, %v2745_v7  ;;  %vm2744_vm7 = vcmp.eq.f32.partialorder %v2743_v6, 8.507059e+37 }
 0x257   :  { %v2722_v45 = vmul.f32 %v4022_v31, %v2721_v39  ;;  %v3937_v50 = vmul.f32 -1.442695, %v2332_v43  ;;  %v960_v52 = vpop.f32.mrf.mxu1  ;;  %v2088_v56 = vmul.f32 %v5267_v28, %v2020_v47 }
 0x258   :  { %v4024_v53 = vpop.eup %4023  ;;  %v961_v54 = vadd.f32 %v960_v52, %v559_v51 }
 0x259   :  { %v4026_v57 = vpop.eup %4025  ;;  %v2723_v29 = vadd.f32 %v4022_v31, %v2722_v45  ;;  %v2735_v59 = vmul.f32 %v4024_v53, %v5260_v23  ;;  %4027 = vpow2.f32 %v3937_v50  ;;  %v1455_v60 = vpop.f32.mrf.mxu2  ;;  %v2199_v4 = vsel %vm2129_vm2, %v2088_v56, 0.0 }
 0x25a   :  { %v1877_v61 = vpop.f32.mrf.mxu3  ;;  %v5289_v62 = vadd.f32 1.0, %v4026_v57  ;;  %v1040_v63 = vadd.f32 %v4975_v36, %v961_v54  ;;  %v1456_v0 = vadd.f32 %v5116_v55, %v1455_v60  ;;  %2200 = vadd.xlane.f32.xlu2 %v2199_v4  ;;  %vm2740_vm3 = vweird.f32 %v4024_v53 }
 0x25b   :  { %v1878_v1 = vadd.f32 %v5247_v40, %v1877_v61  ;;  %v2727_v2 = vsel %vm2726_vm14, %v4022_v31, %v2723_v29  ;;  %v2736_v3 = vsub.f32 1.0, %v2735_v59  ;;  %vm2741_vm6 = vmor %vm2739_vm5, %vm2740_vm3 }
 0x25c   :  { %v2732_v5 = vsel %vm2729_vm15, %v2731_v58, %v2727_v2  ;;  %4029 = vrcp.f32 %v5289_v62  ;;  %v2159_v8 = vpop.xlane.xlu0 %2158  ;;  %v1104_v9 = vmax.f32 %v1040_v63, 0.0  ;;  %v1565_v10 = vmax.f32 %v1456_v0, 0.0 }
 0x25d   :  { %3610 = vst.msk [vmem:[%s5976_s11 + $0x28] sm:$0xff] %vm3604_vm4, %v2732_v5  ;;  %v2737_v36 = vmul.f32 %v4024_v53, %v2736_v3  ;;  %v2021_v11 = vmax.f32 %v1878_v1, 0.0  ;;  %v2333_v12 = vadd.f32 %v5139_v20, %v2159_v8  ;;  %v2760_v37 = vand.u32 2147483648, %v5289_v62 }
 0x25e   :  { %v562_v15 = vpop.f32.mrf.mxu0  ;;  %3859 = vmatmul.msk.f32.gmra.mxu2 %vm1122_vm1, %v1104_v9  ;;  %3906 = vmatmul.msk.f32.gmra.mxu3 %vm175_vm0, %v1565_v10  ;;  %v2758_v46 = vand.u32 2147483647, %v5289_v62  ;;  %vm2754_vm9 = vweird.f32 %v5289_v62 }
 0x25f   :  { %v4028_v13 = vpop.eup %4027  ;;  %v2738_v14 = vadd.f32 %v4024_v53, %v2737_v36  ;;  %v963_v16 = vpop.f32.mrf.mxu1  ;;  %v3938_v19 = vmul.f32 -1.442695, %v2333_v12  ;;  %v2089_v26 = vmul.f32 %v5267_v28, %v2021_v11  ;;  %v2761_v56 = vor.u32 1.1754944e-38, %v2760_v37 }
 0x260   :  { %v5304_v18 = vadd.f32 1.0, %v4028_v13  ;;  %v964_v21 = vadd.f32 %v963_v16, %v562_v15  ;;  %vm2759_vm11 = vcmp.eq.f32.partialorder %v2758_v46, 8.507059e+37 }
 0x261   :  { %v2742_v22 = vsel %vm2741_vm6, %v4024_v53, %v2738_v14  ;;  %v1458_v24 = vpop.f32.mrf.mxu2  ;;  %v2202_v38 = vsel %vm2129_vm2, %v2089_v26, 0.0 }
 0x262   :  { %v1880_v25 = vpop.f32.mrf.mxu3  ;;  %v4030_v27 = vpop.eup %4029  ;;  %v2747_v23 = vsel %vm2744_vm7, %v2746_v17, %v2742_v22  ;;  %4031 = vrcp.f32 %v5304_v18  ;;  %v1041_v31 = vadd.f32 %v5318_v48, %v964_v21  ;;  %v1459_v33 = vadd.f32 %v5116_v55, %v1458_v24  ;;  %2203 = vadd.xlane.f32.xlu0 %v2202_v38 }
 0x263   :  { %3611 = vst.msk [vmem:[%s5976_s11 + $0x30] sm:$0xff] %vm3604_vm4, %v2747_v23  ;;  %v2750_v30 = vmul.f32 %v4030_v27, %v5289_v62  ;;  %4033 = vpow2.f32 %v3938_v19  ;;  %v1881_v34 = vadd.f32 %v5247_v40, %v1880_v25  ;;  %vm2755_vm8 = vweird.f32 %v4030_v27 }
 0x264   :  { %v2162_v32 = vpop.xlane.xlu1 %2161  ;;  %v1105_v41 = vmax.f32 %v1041_v31, 0.0  ;;  %v1566_v42 = vmax.f32 %v1459_v33, 0.0  ;;  %vm2756_vm10 = vmor %vm2754_vm9, %vm2755_vm8  ;;  %v2773_v3 = vand.u32 2147483647, %v5304_v18  ;;  %v2775_v4 = vand.u32 2147483648, %v5304_v18 }
 0x265   :  { %v2751_v35 = vsub.f32 1.0, %v2750_v30  ;;  %v2334_v39 = vadd.f32 %v5139_v20, %v2162_v32  ;;  %v2022_v43 = vmax.f32 %v1881_v34, 0.0  ;;  %vm2769_vm13 = vweird.f32 %v5304_v18 }
 0x266   :  { %v565_v45 = vpop.f32.mrf.mxu0  ;;  %3860 = vmatmul.msk.f32.gmra.mxu2 %vm1122_vm1, %v1105_v41  ;;  %3907 = vmatmul.msk.f32.gmra.mxu3 %vm175_vm0, %v1566_v42  ;;  %v2776_v14 = vor.u32 1.1754944e-38, %v2775_v4  ;;  %vm2774_vm15 = vcmp.eq.f32.partialorder %v2773_v3, 8.507059e+37 }
 0x267   :  { %v2752_v44 = vmul.f32 %v4030_v27, %v2751_v35  ;;  %v3939_v47 = vmul.f32 -1.442695, %v2334_v39  ;;  %v966_v49 = vpop.f32.mrf.mxu1  ;;  %v2090_v52 = vmul.f32 %v5267_v28, %v2022_v43 }
 0x268   :  { %v4032_v50 = vpop.eup %4031  ;;  %v967_v51 = vadd.f32 %v966_v49, %v565_v45 }
 0x269   :  { %v4034_v53 = vpop.eup %4033  ;;  %v2753_v54 = vadd.f32 %v4030_v27, %v2752_v44  ;;  %v2765_v57 = vmul.f32 %v4032_v50, %v5304_v18  ;;  %4035 = vpow2.f32 %v3939_v47  ;;  %v1461_v29 = vpop.f32.mrf.mxu2  ;;  %v2205_v1 = vsel %vm2129_vm2, %v2090_v52, 0.0 }
 0x26a   :  { %v1883_v58 = vpop.f32.mrf.mxu3  ;;  %v5333_v59 = vadd.f32 1.0, %v4034_v53  ;;  %v1042_v60 = vadd.f32 %v5318_v48, %v967_v51  ;;  %v1462_v61 = vadd.f32 %v5116_v55, %v1461_v29  ;;  %2206 = vadd.xlane.f32.xlu1 %v2205_v1  ;;  %vm2770_vm12 = vweird.f32 %v4032_v50 }
 0x26b   :  { %v1884_v62 = vadd.f32 %v5247_v40, %v1883_v58  ;;  %v2757_v63 = vsel %vm2756_vm10, %v4030_v27, %v2753_v54  ;;  %v2766_v0 = vsub.f32 1.0, %v2765_v57  ;;  %vm2771_vm14 = vmor %vm2769_vm13, %vm2770_vm12 }
 0x26c   :  { %v2762_v2 = vsel %vm2759_vm11, %v2761_v56, %v2757_v63  ;;  %4037 = vrcp.f32 %v5333_v59  ;;  %v2165_v5 = vpop.xlane.xlu2 %2164  ;;  %v1106_v7 = vmax.f32 %v1042_v60, 0.0  ;;  %v1567_v8 = vmax.f32 %v1462_v61, 0.0 }
 0x26d   :  { %3612 = vst.msk [vmem:[%s5976_s11 + $0x38] sm:$0xff] %vm3604_vm4, %v2762_v2  ;;  %v2767_v6 = vmul.f32 %v4032_v50, %v2766_v0  ;;  %v2023_v36 = vmax.f32 %v1884_v62, 0.0  ;;  %v2335_v9 = vadd.f32 %v5139_v20, %v2165_v5  ;;  %v2790_v34 = vand.u32 2147483648, %v5333_v59 }
 0x26e   :  { %v568_v12 = vpop.f32.mrf.mxu0  ;;  %3861 = vmatmul.msk.f32.gmra.mxu2 %vm1122_vm1, %v1106_v7  ;;  %3908 = vmatmul.msk.f32.gmra.mxu3 %vm175_vm0, %v1567_v8  ;;  %v2788_v42 = vand.u32 2147483647, %v5333_v59  ;;  %vm2784_vm5 = vweird.f32 %v5333_v59 }
 0x26f   :  { %v4036_v10 = vpop.eup %4035  ;;  %v2768_v11 = vadd.f32 %v4032_v50, %v2767_v6  ;;  %v969_v13 = vpop.f32.mrf.mxu1  ;;  %v3940_v16 = vmul.f32 -1.442695, %v2335_v9  ;;  %v2091_v24 = vmul.f32 %v5267_v28, %v2023_v36  ;;  %v2791_v52 = vor.u32 1.1754944e-38, %v2790_v34 }
 0x270   :  { %v5348_v15 = vadd.f32 1.0, %v4036_v10  ;;  %v970_v17 = vadd.f32 %v969_v13, %v568_v12  ;;  %vm2789_vm7 = vcmp.eq.f32.partialorder %v2788_v42, 8.507059e+37 }
 0x271   :  { %v2772_v19 = vsel %vm2771_vm14, %v4032_v50, %v2768_v11  ;;  %v1464_v21 = vpop.f32.mrf.mxu2  ;;  %v2208_v32 = vsel %vm2129_vm2, %v2091_v24, 0.0 }
 0x272   :  { %v1886_v22 = vpop.f32.mrf.mxu3  ;;  %v4038_v25 = vpop.eup %4037  ;;  %v2777_v18 = vsel %vm2774_vm15, %v2776_v14, %v2772_v19  ;;  %4039 = vrcp.f32 %v5348_v15  ;;  %v1043_v27 = vadd.f32 %v5318_v48, %v970_v17  ;;  %v1465_v23 = vadd.f32 %v5116_v55, %v1464_v21  ;;  %2209 = vadd.xlane.f32.xlu2 %v2208_v32 }
 0x273   :  { %3613 = vst.msk [vmem:[%s5976_s11 + $0x40] sm:$0xff] %vm3604_vm4, %v2777_v18  ;;  %v2780_v26 = vmul.f32 %v4038_v25, %v5333_v59  ;;  %4041 = vpow2.f32 %v3940_v16  ;;  %v1887_v30 = vadd.f32 %v5247_v40, %v1886_v22  ;;  %vm2785_vm3 = vweird.f32 %v4038_v25 }
 0x274   :  { %v2168_v31 = vpop.xlane.xlu0 %2167  ;;  %v1107_v37 = vmax.f32 %v1043_v27, 0.0  ;;  %v1568_v38 = vmax.f32 %v1465_v23, 0.0  ;;  %vm2786_vm6 = vmor %vm2784_vm5, %vm2785_vm3  ;;  %v2803_v0 = vand.u32 2147483647, %v5348_v15  ;;  %v2805_v1 = vand.u32 2147483648, %v5348_v15 }
 0x275   :  { %v2781_v33 = vsub.f32 1.0, %v2780_v26  ;;  %v2336_v35 = vadd.f32 %v5139_v20, %v2168_v31  ;;  %v2024_v39 = vmax.f32 %v1887_v30, 0.0  ;;  %vm2799_vm9 = vweird.f32 %v5348_v15 }
 0x276   :  { %v571_v44 = vpop.f32.mrf.mxu0  ;;  %3862 = vmatmul.msk.f32.gmra.mxu2 %vm1122_vm1, %v1107_v37  ;;  %3909 = vmatmul.msk.f32.gmra.mxu3 %vm175_vm0, %v1568_v38  ;;  %v2806_v10 = vor.u32 1.1754944e-38, %v2805_v1  ;;  %vm2804_vm11 = vcmp.eq.f32.partialorder %v2803_v0, 8.507059e+37 }
 0x277   :  { %v2782_v41 = vmul.f32 %v4038_v25, %v2781_v33  ;;  %v3941_v43 = vmul.f32 -1.442695, %v2336_v35  ;;  %v972_v46 = vpop.f32.mrf.mxu1  ;;  %v2092_v49 = vmul.f32 %v5267_v28, %v2024_v39 }
 0x278   :  { %v4040_v47 = vpop.eup %4039  ;;  %v973_v45 = vadd.f32 %v972_v46, %v571_v44 }
 0x279   :  { %v4042_v50 = vpop.eup %4041  ;;  %v2783_v51 = vadd.f32 %v4038_v25, %v2782_v41  ;;  %v2795_v53 = vmul.f32 %v4040_v47, %v5348_v15  ;;  %4043 = vpow2.f32 %v3941_v43  ;;  %v1467_v54 = vpop.f32.mrf.mxu2  ;;  %v2211_v62 = vsel %vm2129_vm2, %v2092_v49, 0.0 }
 0x27a   :  { %v1889_v56 = vpop.f32.mrf.mxu3  ;;  %v5372_v57 = vadd.f32 1.0, %v4042_v50  ;;  %v1044_v29 = vadd.f32 %v5318_v48, %v973_v45  ;;  %v1468_v58 = vadd.f32 %v5116_v55, %v1467_v54  ;;  %2212 = vadd.xlane.f32.xlu0 %v2211_v62  ;;  %vm2800_vm8 = vweird.f32 %v4040_v47 }
 0x27b   :  { %v1890_v59 = vadd.f32 %v5247_v40, %v1889_v56  ;;  %v2787_v60 = vsel %vm2786_vm6, %v4038_v25, %v2783_v51  ;;  %v2796_v61 = vsub.f32 1.0, %v2795_v53  ;;  %vm2801_vm10 = vmor %vm2799_vm9, %vm2800_vm8  ;;  %v5402_v25 = vld [vmem:[%s5971_s6] ss:$0 sm:$0xff] }
 0x27c   :  { %v2792_v63 = vsel %vm2789_vm7, %v2791_v52, %v2787_v60  ;;  %4045 = vrcp.f32 %v5372_v57  ;;  %v2171_v2 = vpop.xlane.xlu1 %2170  ;;  %v1108_v3 = vmax.f32 %v1044_v29, 0.0  ;;  %v1569_v4 = vmax.f32 %v1468_v58, 0.0 }
 0x27d   :  { %3614 = vst.msk [vmem:[%s5976_s11 + $0x48] sm:$0xff] %vm3604_vm4, %v2792_v63  ;;  %v2797_v55 = vmul.f32 %v4040_v47, %v2796_v61  ;;  %v2025_v5 = vmax.f32 %v1890_v59, 0.0  ;;  %v2337_v6 = vadd.f32 %v5139_v20, %v2171_v2  ;;  %v2820_v30 = vand.u32 2147483648, %v5372_v57 }
 0x27e   :  { %v574_v36 = vpop.f32.mrf.mxu0  ;;  %3863 = vmatmul.msk.f32.gmra.mxu2 %vm1122_vm1, %v1108_v3  ;;  %3910 = vmatmul.msk.f32.gmra.mxu3 %vm175_vm0, %v1569_v4  ;;  %v2818_v37 = vand.u32 2147483647, %v5372_v57  ;;  %vm2814_vm13 = vweird.f32 %v5372_v57 }
 0x27f   :  { %v4044_v7 = vpop.eup %4043  ;;  %v2798_v8 = vadd.f32 %v4040_v47, %v2797_v55  ;;  %v975_v9 = vpop.f32.mrf.mxu1  ;;  %v3942_v12 = vmul.f32 -1.442695, %v2337_v6  ;;  %v2093_v19 = vmul.f32 %v5267_v28, %v2025_v5  ;;  %v2821_v44 = vor.u32 1.1754944e-38, %v2820_v30 }
 0x280   :  { %v5387_v11 = vadd.f32 1.0, %v4044_v7  ;;  %v976_v13 = vadd.f32 %v975_v9, %v574_v36 }
 0x281   :  { %v2802_v14 = vsel %vm2801_vm10, %v4040_v47, %v2798_v8  ;;  %v1470_v16 = vpop.f32.mrf.mxu2  ;;  %v2214_v31 = vsel %vm2129_vm2, %v2093_v19, 0.0 }
 0x282   :  { %v1892_v17 = vpop.f32.mrf.mxu3  ;;  %v4046_v21 = vpop.eup %4045  ;;  %v2807_v15 = vsel %vm2804_vm11, %v2806_v10, %v2802_v14  ;;  %4047 = vrcp.f32 %v5387_v11  ;;  %v1045_v24 = vadd.f32 %v5318_v48, %v976_v13  ;;  %v1471_v18 = vadd.f32 %v5402_v25, %v1470_v16  ;;  %2215 = vadd.xlane.f32.xlu1 %v2214_v31 }
 0x283   :  { %3615 = vst.msk [vmem:[%s5976_s11 + $0x50] sm:$0xff] %vm3604_vm4, %v2807_v15  ;;  %v2810_v22 = vmul.f32 %v4046_v21, %v5372_v57  ;;  %4049 = vpow2.f32 %v3942_v12  ;;  %v1893_v26 = vadd.f32 %v5247_v40, %v1892_v17  ;;  %vm2815_vm12 = vweird.f32 %v4046_v21 }
 0x284   :  { %v2174_v27 = vpop.xlane.xlu2 %2173  ;;  %v1109_v34 = vmax.f32 %v1045_v24, 0.0  ;;  %v1570_v32 = vmax.f32 %v1471_v18, 0.0  ;;  %vm2816_vm14 = vmor %vm2814_vm13, %vm2815_vm12  ;;  %v2833_v57 = vand.u32 2147483647, %v5387_v11  ;;  %v2835_v29 = vand.u32 2147483648, %v5387_v11 }
 0x285   :  { %v2811_v23 = vsub.f32 1.0, %v2810_v22  ;;  %v2338_v33 = vadd.f32 %v5139_v20, %v2174_v27  ;;  %v2026_v48 = vmax.f32 %v1893_v26, 0.0  ;;  %vm2829_vm3 = vweird.f32 %v5387_v11 }
 0x286   :  { %3864 = vmatmul.msk.f32.gmra.mxu2 %vm1122_vm1, %v1109_v34  ;;  %3911 = vmatmul.msk.f32.gmra.mxu3 %vm175_vm0, %v1570_v32  ;;  %vm2819_vm1 = vcmp.eq.f32.partialorder %v2818_v37, 8.507059e+37  ;;  %v2836_v2 = vor.u32 1.1754944e-38, %v2835_v29  ;;  %vm2834_vm6 = vcmp.eq.f32.partialorder %v2833_v57, 8.507059e+37 }
 0x287   :  { %v2812_v35 = vmul.f32 %v4046_v21, %v2811_v23  ;;  %v3943_v38 = vmul.f32 -1.442695, %v2338_v33  ;;  %v2094_v41 = vmul.f32 %v5267_v28, %v2026_v48 }
 0x288   :  { %v4048_v39 = vpop.eup %4047 }
 0x289   :  { %v4050_v42 = vpop.eup %4049  ;;  %v2813_v43 = vadd.f32 %v4046_v21, %v2812_v35  ;;  %v2825_v46 = vmul.f32 %v4048_v39, %v5387_v11  ;;  %4051 = vpow2.f32 %v3943_v38  ;;  %v1473_v47 = vpop.f32.mrf.mxu2  ;;  %v2217_v52 = vsel %vm2129_vm2, %v2094_v41, 0.0 }
 0x28a   :  { %v1895_v45 = vpop.f32.mrf.mxu3  ;;  %v5416_v49 = vadd.f32 1.0, %v4050_v42  ;;  %v1474_v50 = vadd.f32 %v5402_v25, %v1473_v47  ;;  %2218 = vadd.xlane.f32.xlu2 %v2217_v52  ;;  %vm2830_vm15 = vweird.f32 %v4048_v39 }
 0x28b   :  { %v1896_v51 = vadd.f32 %v5247_v40, %v1895_v45  ;;  %v2817_v53 = vsel %vm2816_vm14, %v4046_v21, %v2813_v43  ;;  %v2826_v54 = vsub.f32 1.0, %v2825_v46  ;;  %vm2831_vm5 = vmor %vm2829_vm3, %vm2830_vm15 }
 0x28c   :  { %v2822_v56 = vsel %vm2819_vm1, %v2821_v44, %v2817_v53  ;;  %4053 = vrcp.f32 %v5416_v49  ;;  %v2177_v58 = vpop.xlane.xlu0 %2176  ;;  %v1571_v60 = vmax.f32 %v1474_v50, 0.0  ;;  %v2850_v14 = vand.u32 2147483648, %v5416_v49 }
 0x28d   :  { %3616 = vst.msk [vmem:[%s5976_s11 + $0x58] sm:$0xff] %vm3604_vm4, %v2822_v56  ;;  %v2827_v59 = vmul.f32 %v4048_v39, %v2826_v54  ;;  %v2027_v61 = vmax.f32 %v1896_v51, 0.0  ;;  %v2339_v62 = vadd.f32 %v5139_v20, %v2177_v58  ;;  %v2848_v15 = vand.u32 2147483647, %v5416_v49 }
 0x28e   :  { %3912 = vmatmul.msk.f32.gmra.mxu3 %vm175_vm0, %v1571_v60  ;;  %vm2844_vm8 = vweird.f32 %v5416_v49  ;;  %v2851_v23 = vor.u32 1.1754944e-38, %v2850_v14 }
 0x28f   :  { %v4052_v63 = vpop.eup %4051  ;;  %v2828_v0 = vadd.f32 %v4048_v39, %v2827_v59  ;;  %v2095_v1 = vmul.f32 %v5267_v28, %v2027_v61  ;;  %v3944_v3 = vmul.f32 -1.442695, %v2339_v62  ;;  %vm2849_vm10 = vcmp.eq.f32.partialorder %v2848_v15, 8.507059e+37 }
 0x290   :  { %v5431_v55 = vadd.f32 1.0, %v4052_v63 }
 0x291   :  { %v2832_v4 = vsel %vm2831_vm5, %v4048_v39, %v2828_v0  ;;  %v1476_v5 = vpop.f32.mrf.mxu2  ;;  %v2220_v7 = vsel %vm2129_vm2, %v2095_v1, 0.0 }
 0x292   :  { %v1898_v6 = vpop.f32.mrf.mxu3  ;;  %v4054_v8 = vpop.eup %4053  ;;  %v2837_v36 = vsel %vm2834_vm6, %v2836_v2, %v2832_v4  ;;  %4055 = vrcp.f32 %v5431_v55  ;;  %2221 = vadd.xlane.f32.xlu0 %v2220_v7  ;;  %v1477_v10 = vadd.f32 %v5402_v25, %v1476_v5  ;;  %v2863_v41 = vand.u32 2147483647, %v5431_v55 }
 0x293   :  { %3617 = vst.msk [vmem:[%s5976_s11 + $0x60] sm:$0xff] %vm3604_vm4, %v2837_v36  ;;  %v2840_v9 = vmul.f32 %v4054_v8, %v5416_v49  ;;  %4057 = vpow2.f32 %v3944_v3  ;;  %v1899_v11 = vadd.f32 %v5247_v40, %v1898_v6  ;;  %vm2845_vm7 = vweird.f32 %v4054_v8 }
 0x294   :  { %v2180_v12 = vpop.xlane.xlu1 %2179  ;;  %v1572_v17 = vmax.f32 %v1477_v10, 0.0  ;;  %vm2846_vm9 = vmor %vm2844_vm8, %vm2845_vm7  ;;  %v2865_v42 = vand.u32 2147483648, %v5431_v55  ;;  %vm2859_vm12 = vweird.f32 %v5431_v55  ;;  %vm2864_vm14 = vcmp.eq.f32.partialorder %v2863_v41, 8.507059e+37 }
 0x295   :  { %v2841_v13 = vsub.f32 1.0, %v2840_v9  ;;  %v2340_v16 = vadd.f32 %v5139_v20, %v2180_v12  ;;  %v2028_v19 = vmax.f32 %v1899_v11, 0.0 }
 0x296   :  { %3913 = vmatmul.msk.f32.gmra.mxu3 %vm175_vm0, %v1572_v17  ;;  %v2866_v52 = vor.u32 1.1754944e-38, %v2865_v42 }
 0x297   :  { %v2842_v21 = vmul.f32 %v4054_v8, %v2841_v13  ;;  %v3945_v22 = vmul.f32 -1.442695, %v2340_v16  ;;  %v2096_v18 = vmul.f32 %v5267_v28, %v2028_v19 }
 0x298   :  { %v4056_v24 = vpop.eup %4055 }
 0x299   :  { %v4058_v26 = vpop.eup %4057  ;;  %v2843_v27 = vadd.f32 %v4054_v8, %v2842_v21  ;;  %v2855_v30 = vmul.f32 %v4056_v24, %v5431_v55  ;;  %4059 = vpow2.f32 %v3945_v22  ;;  %v1479_v31 = vpop.f32.mrf.mxu2  ;;  %v2223_v35 = vsel %vm2129_vm2, %v2096_v18, 0.0 }
 0x29a   :  { %v1901_v33 = vpop.f32.mrf.mxu3  ;;  %v2595_v34 = vadd.f32 1.0, %v4058_v26  ;;  %v1480_v32 = vadd.f32 %v5402_v25, %v1479_v31  ;;  %2224 = vadd.xlane.f32.xlu1 %v2223_v35  ;;  %vm2860_vm11 = vweird.f32 %v4056_v24 }
 0x29b   :  { %v1902_v48 = vadd.f32 %v5247_v40, %v1901_v33  ;;  %v2847_v37 = vsel %vm2846_vm9, %v4054_v8, %v2843_v27  ;;  %v2856_v38 = vsub.f32 1.0, %v2855_v30  ;;  %vm2861_vm13 = vmor %vm2859_vm12, %vm2860_vm11 }
 0x29c   :  { %v2852_v39 = vsel %vm2849_vm10, %v2851_v23, %v2847_v37  ;;  %4061 = vrcp.f32 %v2595_v34  ;;  %v1573_v44 = vmax.f32 %v1480_v32, 0.0  ;;  %v2183_v47 = vpop.xlane.xlu2 %2182  ;;  %v2878_v1 = vand.u32 2147483647, %v2595_v34 }
 0x29d   :  { %3618 = vst.msk [vmem:[%s5976_s11 + $0x68] sm:$0xff] %vm3604_vm4, %v2852_v39  ;;  %v2857_v43 = vmul.f32 %v4056_v24, %v2856_v38  ;;  %v2029_v46 = vmax.f32 %v1902_v48, 0.0  ;;  %v2341_v45 = vadd.f32 %v5139_v20, %v2183_v47  ;;  %v2880_v55 = vand.u32 2147483648, %v2595_v34 }
 0x29e   :  { %3914 = vmatmul.msk.f32.gmra.mxu3 %vm175_vm0, %v1573_v44  ;;  %vm2874_vm15 = vweird.f32 %v2595_v34  ;;  %vm2879_vm3 = vcmp.eq.f32.partialorder %v2878_v1, 8.507059e+37 }
 0x29f   :  { %v4060_v49 = vpop.eup %4059  ;;  %v2858_v50 = vadd.f32 %v4056_v24, %v2857_v43  ;;  %v2097_v51 = vmul.f32 %v5267_v28, %v2029_v46  ;;  %v3946_v54 = vmul.f32 -1.442695, %v2341_v45  ;;  %v2881_v12 = vor.u32 1.1754944e-38, %v2880_v55 }
 0x2a0   :  { %v5462_v53 = vadd.f32 1.0, %v4060_v49 }
 0x2a1   :  { %v2862_v56 = vsel %vm2861_vm13, %v4056_v24, %v2858_v50  ;;  %v1482_v57 = vpop.f32.mrf.mxu2  ;;  %v2226_v58 = vsel %vm2129_vm2, %v2097_v51, 0.0 }
 0x2a2   :  { %v1904_v29 = vpop.f32.mrf.mxu3  ;;  %v4062_v59 = vpop.eup %4061  ;;  %v2867_v60 = vsel %vm2864_vm14, %v2866_v52, %v2862_v56  ;;  %4063 = vrcp.f32 %v5462_v53  ;;  %2227 = vadd.xlane.f32.xlu2 %v2226_v58  ;;  %v1483_v62 = vadd.f32 %v5402_v25, %v1482_v57  ;;  %v2893_v18 = vand.u32 2147483647, %v5462_v53 }
 0x2a3   :  { %3619 = vst.msk [vmem:[%s5976_s11 + $0x70] sm:$0xff] %vm3604_vm4, %v2867_v60  ;;  %v2870_v61 = vmul.f32 %v4062_v59, %v2595_v34  ;;  %4065 = vpow2.f32 %v3946_v54  ;;  %v1905_v63 = vadd.f32 %v5247_v40, %v1904_v29  ;;  %vm2875_vm1 = vweird.f32 %v4062_v59 }
 0x2a4   :  { %v2186_v2 = vpop.xlane.xlu0 %2185  ;;  %v1574_v3 = vmax.f32 %v1483_v62, 0.0  ;;  %vm2876_vm5 = vmor %vm2874_vm15, %vm2875_vm1  ;;  %v2895_v26 = vand.u32 2147483648, %v5462_v53  ;;  %vm2889_vm7 = vweird.f32 %v5462_v53  ;;  %vm2894_vm9 = vcmp.eq.f32.partialorder %v2893_v18, 8.507059e+37 }
 0x2a5   :  { %v2871_v0 = vsub.f32 1.0, %v2870_v61  ;;  %v2030_v4 = vmax.f32 %v1905_v63, 0.0  ;;  %v2342_v5 = vadd.f32 %v5139_v20, %v2186_v2 }
 0x2a6   :  { %3915 = vmatmul.msk.f32.gmra.mxu3 %vm175_vm0, %v1574_v3  ;;  %v2896_v48 = vor.u32 1.1754944e-38, %v2895_v26 }
 0x2a7   :  { %v2872_v6 = vmul.f32 %v4062_v59, %v2871_v0  ;;  %v3947_v8 = vmul.f32 -1.442695, %v2342_v5  ;;  %v2098_v36 = vmul.f32 %v5267_v28, %v2030_v4 }
 0x2a8   :  { %v4064_v7 = vpop.eup %4063 }
 0x2a9   :  { %v4066_v9 = vpop.eup %4065  ;;  %v2873_v10 = vadd.f32 %v4062_v59, %v2872_v6  ;;  %v2885_v11 = vmul.f32 %v4064_v7, %v5462_v53  ;;  %4067 = vpow2.f32 %v3947_v8  ;;  %v1485_v14 = vpop.f32.mrf.mxu2  ;;  %v2229_v17 = vsel %vm2129_vm2, %v2098_v36, 0.0 }
 0x2aa   :  { %v2597_v13 = vadd.f32 1.0, %v4066_v9  ;;  %v1907_v16 = vpop.f32.mrf.mxu3  ;;  %v1486_v15 = vadd.f32 %v5402_v25, %v1485_v14  ;;  %2230 = vadd.xlane.f32.xlu0 %v2229_v17  ;;  %vm2890_vm6 = vweird.f32 %v4064_v7 }
 0x2ab   :  { %v2877_v19 = vsel %vm2876_vm5, %v4062_v59, %v2873_v10  ;;  %v2886_v21 = vsub.f32 1.0, %v2885_v11  ;;  %v1908_v22 = vadd.f32 %v5247_v40, %v1907_v16  ;;  %vm2891_vm8 = vmor %vm2889_vm7, %vm2890_vm6 }
 0x2ac   :  { %v2882_v24 = vsel %vm2879_vm3, %v2881_v12, %v2877_v19  ;;  %4069 = vrcp.f32 %v2597_v13  ;;  %v1575_v23 = vmax.f32 %v1486_v15, 0.0  ;;  %v2908_v52 = vand.u32 2147483647, %v2597_v13 }
 0x2ad   :  { %3620 = vst.msk [vmem:[%s5976_s11 + $0x78] sm:$0xff] %vm3604_vm4, %v2882_v24  ;;  %v2887_v27 = vmul.f32 %v4064_v7, %v2886_v21  ;;  %v2031_v30 = vmax.f32 %v1908_v22, 0.0  ;;  %v2189_v33 = vpop.xlane.xlu1 %2188  ;;  %v2910_v53 = vand.u32 2147483648, %v2597_v13  ;;  %vm2904_vm11 = vweird.f32 %v2597_v13 }
 0x2ae   :  { %v2343_v35 = vadd.f32 %v5139_v20, %v2189_v33  ;;  %3916 = vmatmul.msk.f32.gmra.mxu3 %vm175_vm0, %v1575_v23  ;;  %vm2909_vm13 = vcmp.eq.f32.partialorder %v2908_v52, 8.507059e+37  ;;  %v5529_v33 = vld [vmem:[%s5973_s8] ss:$0 sm:$0xff] }
 0x2af   :  { %v2888_v31 = vadd.f32 %v4064_v7, %v2887_v27  ;;  %v2099_v34 = vmul.f32 %v5267_v28, %v2031_v30  ;;  %v4068_v32 = vpop.eup %4067  ;;  %v2911_v63 = vor.u32 1.1754944e-38, %v2910_v53 }
 0x2b0   :  { %v5490_v38 = vadd.f32 1.0, %v4068_v32  ;;  %v3948_v43 = vmul.f32 -1.442695, %v2343_v35 }
 0x2b1   :  { %v2892_v37 = vsel %vm2891_vm8, %v4064_v7, %v2888_v31  ;;  %v2232_v39 = vsel %vm2129_vm2, %v2099_v34, 0.0  ;;  %v1488_v44 = vpop.f32.mrf.mxu2 }
 0x2b2   :  { %v4070_v41 = vpop.eup %4069  ;;  %v2897_v42 = vsel %vm2894_vm9, %v2896_v48, %v2892_v37  ;;  %v1910_v46 = vpop.f32.mrf.mxu3  ;;  %2233 = vadd.xlane.f32.xlu1 %v2232_v39  ;;  %4071 = vrcp.f32 %v5490_v38  ;;  %v1489_v45 = vadd.f32 %v5402_v25, %v1488_v44  ;;  %v2923_v36 = vand.u32 2147483647, %v5490_v38 }
 0x2b3   :  { %3621 = vst.msk [vmem:[%s5976_s11 + $0x80] sm:$0xff] %vm3604_vm4, %v2897_v42  ;;  %v2900_v47 = vmul.f32 %v4070_v41, %v2597_v13  ;;  %4073 = vpow2.f32 %v3948_v43  ;;  %v1911_v50 = vadd.f32 %v5247_v40, %v1910_v46  ;;  %vm2905_vm10 = vweird.f32 %v4070_v41 }
 0x2b4   :  { %v1576_v54 = vmax.f32 %v1489_v45, 0.0  ;;  %vm2906_vm12 = vmor %vm2904_vm11, %vm2905_vm10  ;;  %v2925_v9 = vand.u32 2147483648, %v5490_v38  ;;  %vm2919_vm1 = vweird.f32 %v5490_v38  ;;  %vm2924_vm3 = vcmp.eq.f32.partialorder %v2923_v36, 8.507059e+37  ;;  %v5551_v36 = vld [vmem:[%s5974_s9] ss:$0 sm:$0xff] }
 0x2b5   :  { %v2901_v49 = vsub.f32 1.0, %v2900_v47  ;;  %v2192_v51 = vpop.xlane.xlu2 %2191  ;;  %v2032_v29 = vmax.f32 %v1911_v50, 0.0 }
 0x2b6   :  { %v2344_v56 = vadd.f32 %v5139_v20, %v2192_v51  ;;  %3917 = vmatmul.msk.f32.gmra.mxu3 %vm175_vm0, %v1576_v54  ;;  %v2926_v19 = vor.u32 1.1754944e-38, %v2925_v9 }
 0x2b7   :  { %v2902_v57 = vmul.f32 %v4070_v41, %v2901_v49  ;;  %v2100_v61 = vmul.f32 %v5267_v28, %v2032_v29 }
 0x2b8   :  { %v3949_v58 = vmul.f32 -1.442695, %v2344_v56  ;;  %v4072_v59 = vpop.eup %4071 }
 0x2b9   :  { %v2903_v60 = vadd.f32 %v4070_v41, %v2902_v57  ;;  %v4074_v62 = vpop.eup %4073  ;;  %v2915_v0 = vmul.f32 %v4072_v59, %v5490_v38  ;;  %v1491_v1 = vpop.f32.mrf.mxu2  ;;  %v2235_v5 = vsel %vm2129_vm2, %v2100_v61, 0.0  ;;  %vm2920_vm14 = vweird.f32 %v4072_v59 }
 0x2ba   :  { %4075 = vpow2.f32 %v3949_v58  ;;  %v2599_v55 = vadd.f32 1.0, %v4074_v62  ;;  %v1492_v3 = vadd.f32 %v5402_v25, %v1491_v1  ;;  %v1913_v4 = vpop.f32.mrf.mxu3  ;;  %2236 = vadd.xlane.f32.xlu2 %v2235_v5  ;;  %vm2921_vm15 = vmor %vm2919_vm1, %vm2920_vm14 }
 0x2bb   :  { %v2907_v2 = vsel %vm2906_vm12, %v4070_v41, %v2903_v60  ;;  %v2916_v7 = vsub.f32 1.0, %v2915_v0  ;;  %v1914_v8 = vadd.f32 %v5247_v40, %v1913_v4 }
 0x2bc   :  { %v2912_v6 = vsel %vm2909_vm13, %v2911_v63, %v2907_v2  ;;  %4077 = vrcp.f32 %v2599_v55  ;;  %v1577_v11 = vmax.f32 %v1492_v3, 0.0  ;;  %v2938_v48 = vand.u32 2147483647, %v2599_v55 }
 0x2bd   :  { %3622 = vst.msk [vmem:[%s5976_s11 + $0x88] sm:$0xff] %vm3604_vm4, %v2912_v6  ;;  %v2917_v10 = vmul.f32 %v4072_v59, %v2916_v7  ;;  %v2033_v12 = vmax.f32 %v1914_v8, 0.0  ;;  %v2195_v13 = vpop.xlane.xlu0 %2194  ;;  %v2940_v35 = vand.u32 2147483648, %v2599_v55  ;;  %vm2934_vm6 = vweird.f32 %v2599_v55 }
 0x2be   :  { %v2345_v40 = vadd.f32 %v5139_v20, %v2195_v13  ;;  %3918 = vmatmul.msk.f32.gmra.mxu3 %vm175_vm0, %v1577_v11  ;;  %vm2939_vm8 = vcmp.eq.f32.partialorder %v2938_v48, 8.507059e+37 }
 0x2bf   :  { %v2918_v16 = vadd.f32 %v4072_v59, %v2917_v10  ;;  %v2101_v17 = vmul.f32 %v5267_v28, %v2033_v12  ;;  %v2941_v49 = vor.u32 1.1754944e-38, %v2940_v35 }
 0x2c0   :  { %v4076_v14 = vpop.eup %4075  ;;  %v3950_v22 = vmul.f32 -1.442695, %v2345_v40 }
 0x2c1   :  { %v5517_v21 = vadd.f32 1.0, %v4076_v14  ;;  %v2922_v15 = vsel %vm2921_vm15, %v4072_v59, %v2918_v16  ;;  %v1494_v24 = vpop.f32.mrf.mxu2  ;;  %v2238_v18 = vsel %vm2129_vm2, %v2101_v17, 0.0 }
 0x2c2   :  { %v4078_v26 = vpop.eup %4077  ;;  %v2927_v27 = vsel %vm2924_vm3, %v2926_v19, %v2922_v15  ;;  %v1916_v23 = vpop.f32.mrf.mxu3  ;;  %2239 = vadd.xlane.f32.xlu0 %v2238_v18  ;;  %v1495_v31 = vadd.f32 %v5402_v25, %v1494_v24 }
 0x2c3   :  { %4079 = vrcp.f32 %v5517_v21  ;;  %3623 = vst.msk [vmem:[%s5976_s11 + $0x90] sm:$0xff] %vm3604_vm4, %v2927_v27  ;;  %v2930_v30 = vmul.f32 %v4078_v26, %v2599_v55  ;;  %v1917_v34 = vadd.f32 %v5529_v33, %v1916_v23  ;;  %vm2935_vm5 = vweird.f32 %v4078_v26 }
 0x2c4   :  { %4081 = vpow2.f32 %v3950_v22  ;;  %v1578_v37 = vmax.f32 %v1495_v31, 0.0  ;;  %vm2936_vm7 = vmor %vm2934_vm6, %vm2935_vm5  ;;  %v2953_v58 = vand.u32 2147483647, %v5517_v21  ;;  %v2955_v59 = vand.u32 2147483648, %v5517_v21 }
 0x2c5   :  { %v2931_v32 = vsub.f32 1.0, %v2930_v30  ;;  %v2034_v38 = vmax.f32 %v1917_v34, 0.0  ;;  %v2198_v42 = vpop.xlane.xlu1 %2197  ;;  %vm2949_vm10 = vweird.f32 %v5517_v21 }
 0x2c6   :  { %3919 = vmatmul.msk.f32.gmra.mxu3 %vm175_vm0, %v1578_v37  ;;  %v2346_v45 = vadd.f32 %v5139_v20, %v2198_v42  ;;  %v2956_v2 = vor.u32 1.1754944e-38, %v2955_v59  ;;  %vm2954_vm12 = vcmp.eq.f32.partialorder %v2953_v58, 8.507059e+37 }
 0x2c7   :  { %v2932_v39 = vmul.f32 %v4078_v26, %v2931_v32  ;;  %v2102_v43 = vmul.f32 %v5267_v28, %v2034_v38 }
 0x2c8   :  { %v3951_v57 = vmul.f32 -1.442695, %v2346_v45 }
 0x2c9   :  { %v4080_v41 = vpop.eup %4079  ;;  %v2933_v46 = vadd.f32 %v4078_v26, %v2932_v39  ;;  %v1497_v51 = vpop.f32.mrf.mxu2  ;;  %v2241_v53 = vsel %vm2129_vm2, %v2102_v43, 0.0 }
 0x2ca   :  { %v4082_v44 = vpop.eup %4081  ;;  %v2945_v47 = vmul.f32 %v4080_v41, %v5517_v21  ;;  %v1919_v52 = vpop.f32.mrf.mxu3  ;;  %v1498_v28 = vadd.f32 %v5402_v25, %v1497_v51  ;;  %2242 = vadd.xlane.f32.xlu1 %v2241_v53  ;;  %vm2950_vm9 = vweird.f32 %v4080_v41 }
 0x2cb   :  { %v2601_v50 = vadd.f32 1.0, %v4082_v44  ;;  %v2937_v54 = vsel %vm2936_vm7, %v4078_v26, %v2933_v46  ;;  %v1920_v62 = vadd.f32 %v5529_v33, %v1919_v52  ;;  %vm2951_vm11 = vmor %vm2949_vm10, %vm2950_vm9 }
 0x2cc   :  { %v2946_v56 = vsub.f32 1.0, %v2945_v47  ;;  %v2942_v29 = vsel %vm2939_vm8, %v2941_v49, %v2937_v54  ;;  %v1579_v61 = vmax.f32 %v1498_v28, 0.0 }
 0x2cd   :  { %4083 = vrcp.f32 %v2601_v50  ;;  %3624 = vst.msk [vmem:[%s5976_s11 + $0x98] sm:$0xff] %vm3604_vm4, %v2942_v29  ;;  %v2201_v63 = vpop.xlane.xlu2 %2200  ;;  %v2035_v55 = vmax.f32 %v1920_v62, 0.0  ;;  %v2968_v19 = vand.u32 2147483647, %v2601_v50  ;;  %v2970_v21 = vand.u32 2147483648, %v2601_v50 }
 0x2ce   :  { %v2947_v60 = vmul.f32 %v4080_v41, %v2946_v56  ;;  %4085 = vpow2.f32 %v3951_v57  ;;  %v2347_v1 = vadd.f32 %v5139_v20, %v2201_v63  ;;  %3920 = vmatmul.msk.f32.gmra.mxu3 %vm175_vm0, %v1579_v61  ;;  %vm2964_vm14 = vweird.f32 %v2601_v50 }
 0x2cf   :  { %v2103_v9 = vmul.f32 %v5551_v36, %v2035_v55  ;;  %vm2969_vm15 = vcmp.eq.f32.partialorder %v2968_v19, 8.507059e+37  ;;  %v2971_v23 = vor.u32 1.1754944e-38, %v2970_v21 }
 0x2d0   :  { %v2948_v0 = vadd.f32 %v4080_v41, %v2947_v60  ;;  %v3952_v4 = vmul.f32 -1.442695, %v2347_v1 }
 0x2d1   :  { %v1500_v7 = vpop.f32.mrf.mxu2  ;;  %v2244_v16 = vsel %vm2129_vm2, %v2103_v9, 0.0 }
 0x2d2   :  { %v2952_v3 = vsel %vm2951_vm11, %v4080_v41, %v2948_v0  ;;  %v1922_v8 = vpop.f32.mrf.mxu3  ;;  %4087 = vpow2.f32 %v3952_v4  ;;  %v1501_v12 = vadd.f32 %v5402_v25, %v1500_v7  ;;  %2245 = vadd.xlane.f32.xlu2 %v2244_v16 }
 0x2d3   :  { %v4084_v5 = vpop.eup %4083  ;;  %v2957_v6 = vsel %vm2954_vm12, %v2956_v2, %v2952_v3  ;;  %v1923_v14 = vadd.f32 %v5529_v33, %v1922_v8 }
 0x2d4   :  { %v4086_v10 = vpop.eup %4085  ;;  %3625 = vst.msk [vmem:[%s5976_s11 + $0xa0] sm:$0xff] %vm3604_vm4, %v2957_v6  ;;  %v2960_v11 = vmul.f32 %v4084_v5, %v2601_v50  ;;  %v1580_v17 = vmax.f32 %v1501_v12, 0.0  ;;  %vm2965_vm13 = vweird.f32 %v4084_v5 }
 0x2d5   :  { %v5559_v13 = vadd.f32 1.0, %v4086_v10  ;;  %v2036_v22 = vmax.f32 %v1923_v14, 0.0  ;;  %v2204_v24 = vpop.xlane.xlu0 %2203  ;;  %vm2966_vm1 = vmor %vm2964_vm14, %vm2965_vm13 }
 0x2d6   :  { %v2961_v40 = vsub.f32 1.0, %v2960_v11  ;;  %3921 = vmatmul.msk.f32.gmra.mxu3 %vm175_vm0, %v1580_v17  ;;  %v2348_v27 = vadd.f32 %v5139_v20, %v2204_v24 }
 0x2d7   :  { %4089 = vrcp.f32 %v5559_v13  ;;  %v2104_v32 = vmul.f32 %v5551_v36, %v2036_v22  ;;  %v2985_v50 = vand.u32 2147483648, %v5559_v13  ;;  %v2983_v53 = vand.u32 2147483647, %v5559_v13 }
 0x2d8   :  { %v2962_v15 = vmul.f32 %v4084_v5, %v2961_v40  ;;  %v4088_v18 = vpop.eup %4087  ;;  %v3953_v35 = vmul.f32 -1.442695, %v2348_v27  ;;  %vm2979_vm5 = vweird.f32 %v5559_v13 }
 0x2d9   :  { %v5566_v30 = vadd.f32 1.0, %v4088_v18  ;;  %v1503_v31 = vpop.f32.mrf.mxu2  ;;  %v2247_v46 = vsel %vm2129_vm2, %v2104_v32, 0.0  ;;  %v2986_v61 = vor.u32 1.1754944e-38, %v2985_v50  ;;  %vm2984_vm7 = vcmp.eq.f32.partialorder %v2983_v53, 8.507059e+37 }
 0x2da   :  { %v2963_v26 = vadd.f32 %v4084_v5, %v2962_v15  ;;  %v1925_v34 = vpop.f32.mrf.mxu3  ;;  %v1504_v37 = vadd.f32 %v5402_v25, %v1503_v31  ;;  %2248 = vadd.xlane.f32.xlu0 %v2247_v46 }
 0x2db   :  { %v1926_v38 = vadd.f32 %v5529_v33, %v1925_v34  ;;  %4091 = vrcp.f32 %v5566_v30  ;;  %v2998_v3 = vand.u32 2147483647, %v5566_v30  ;;  %v3000_v4 = vand.u32 2147483648, %v5566_v30 }
 0x2dc   :  { %v2967_v48 = vsel %vm2966_vm1, %v4084_v5, %v2963_v26  ;;  %4093 = vpow2.f32 %v3953_v35  ;;  %v1581_v43 = vmax.f32 %v1504_v37, 0.0  ;;  %vm2994_vm9 = vweird.f32 %v5566_v30 }
 0x2dd   :  { %v4090_v39 = vpop.eup %4089  ;;  %v2972_v41 = vsel %vm2969_vm15, %v2971_v23, %v2967_v48  ;;  %v2037_v44 = vmax.f32 %v1926_v38, 0.0  ;;  %v2207_v47 = vpop.xlane.xlu1 %2206  ;;  %vm2999_vm11 = vcmp.eq.f32.partialorder %v2998_v3, 8.507059e+37  ;;  %v3001_v12 = vor.u32 1.1754944e-38, %v3000_v4 }
 0x2de   :  { %3626 = vst.msk [vmem:[%s5976_s11 + $0xa8] sm:$0xff] %vm3604_vm4, %v2972_v41  ;;  %v2975_v42 = vmul.f32 %v4090_v39, %v5559_v13  ;;  %v2349_v49 = vadd.f32 %v5139_v20, %v2207_v47  ;;  %3922 = vmatmul.msk.f32.gmra.mxu3 %vm175_vm0, %v1581_v43  ;;  %vm2980_vm3 = vweird.f32 %v4090_v39 }
 0x2df   :  { %v2105_v51 = vmul.f32 %v5551_v36, %v2037_v44  ;;  %vm2981_vm6 = vmor %vm2979_vm5, %vm2980_vm3 }
 0x2e0   :  { %v2976_v45 = vsub.f32 1.0, %v2975_v42  ;;  %v3954_v54 = vmul.f32 -1.442695, %v2349_v49 }
 0x2e1   :  { %v4092_v56 = vpop.eup %4091  ;;  %v1506_v57 = vpop.f32.mrf.mxu2  ;;  %v2250_v29 = vsel %vm2129_vm2, %v2105_v51, 0.0 }
 0x2e2   :  { %v2977_v52 = vmul.f32 %v4090_v39, %v2976_v45  ;;  %v1928_v28 = vpop.f32.mrf.mxu3  ;;  %v4094_v58 = vpop.eup %4093  ;;  %v2990_v60 = vmul.f32 %v4092_v56, %v5566_v30  ;;  %4095 = vpow2.f32 %v3954_v54  ;;  %2251 = vadd.xlane.f32.xlu1 %v2250_v29  ;;  %v1507_v63 = vadd.f32 %v5402_v25, %v1506_v57 }
 0x2e3   :  { %v5586_v62 = vadd.f32 1.0, %v4094_v58  ;;  %v1929_v0 = vadd.f32 %v5529_v33, %v1928_v28  ;;  %vm2995_vm8 = vweird.f32 %v4092_v56 }
 0x2e4   :  { %v2978_v59 = vadd.f32 %v4090_v39, %v2977_v52  ;;  %v2991_v2 = vsub.f32 1.0, %v2990_v60  ;;  %v1582_v6 = vmax.f32 %v1507_v63, 0.0  ;;  %vm2996_vm10 = vmor %vm2994_vm9, %vm2995_vm8 }
 0x2e5   :  { %4097 = vrcp.f32 %v5586_v62  ;;  %v2038_v7 = vmax.f32 %v1929_v0, 0.0  ;;  %v2210_v8 = vpop.xlane.xlu2 %2209  ;;  %v3015_v32 = vand.u32 2147483648, %v5586_v62  ;;  %v3013_v37 = vand.u32 2147483647, %v5586_v62 }
 0x2e6   :  { %v2982_v1 = vsel %vm2981_vm6, %v4090_v39, %v2978_v59  ;;  %v2992_v5 = vmul.f32 %v4092_v56, %v2991_v2  ;;  %v2350_v11 = vadd.f32 %v5139_v20, %v2210_v8  ;;  %3923 = vmatmul.msk.f32.gmra.mxu3 %vm175_vm0, %v1582_v6  ;;  %vm3009_vm13 = vweird.f32 %v5586_v62 }
 0x2e7   :  { %v2987_v55 = vsel %vm2984_vm7, %v2986_v61, %v2982_v1  ;;  %v2106_v40 = vmul.f32 %v5551_v36, %v2038_v7  ;;  %v3016_v45 = vor.u32 1.1754944e-38, %v3015_v32  ;;  %vm3014_vm1 = vcmp.eq.f32.partialorder %v3013_v37, 8.507059e+37 }
 0x2e8   :  { %3627 = vst.msk [vmem:[%s5976_s11 + $0xb0] sm:$0xff] %vm3604_vm4, %v2987_v55  ;;  %v4096_v9 = vpop.eup %4095  ;;  %v2993_v10 = vadd.f32 %v4092_v56, %v2992_v5  ;;  %v3955_v19 = vmul.f32 -1.442695, %v2350_v11 }
 0x2e9   :  { %v5600_v13 = vadd.f32 1.0, %v4096_v9  ;;  %v1509_v14 = vpop.f32.mrf.mxu2  ;;  %v2253_v23 = vsel %vm2129_vm2, %v2106_v40, 0.0 }
 0x2ea   :  { %v1931_v16 = vpop.f32.mrf.mxu3  ;;  %v2997_v17 = vsel %vm2996_vm10, %v4092_v56, %v2993_v10  ;;  %v1510_v21 = vadd.f32 %v5402_v25, %v1509_v14  ;;  %2254 = vadd.xlane.f32.xlu2 %v2253_v23 }
 0x2eb   :  { %v1932_v15 = vadd.f32 %v5529_v33, %v1931_v16  ;;  %v4098_v22 = vpop.eup %4097  ;;  %v3002_v24 = vsel %vm2999_vm11, %v3001_v12, %v2997_v17  ;;  %4099 = vrcp.f32 %v5600_v13  ;;  %v3028_v56 = vand.u32 2147483647, %v5600_v13 }
 0x2ec   :  { %3628 = vst.msk [vmem:[%s5976_s11 + $0xb8] sm:$0xff] %vm3604_vm4, %v3002_v24  ;;  %v3005_v18 = vmul.f32 %v4098_v22, %v5586_v62  ;;  %4101 = vpow2.f32 %v3955_v19  ;;  %v1583_v26 = vmax.f32 %v1510_v21, 0.0  ;;  %vm3010_vm12 = vweird.f32 %v4098_v22 }
 0x2ed   :  { %v2039_v27 = vmax.f32 %v1932_v15, 0.0  ;;  %v2213_v30 = vpop.xlane.xlu0 %2212  ;;  %vm3011_vm14 = vmor %vm3009_vm13, %vm3010_vm12  ;;  %v3030_v57 = vand.u32 2147483648, %v5600_v13  ;;  %vm3024_vm3 = vweird.f32 %v5600_v13  ;;  %vm3029_vm6 = vcmp.eq.f32.partialorder %v3028_v56, 8.507059e+37 }
 0x2ee   :  { %v3006_v31 = vsub.f32 1.0, %v3005_v18  ;;  %v2351_v34 = vadd.f32 %v5139_v20, %v2213_v30  ;;  %3924 = vmatmul.msk.f32.gmra.mxu3 %vm175_vm0, %v1583_v26 }
 0x2ef   :  { %v2107_v48 = vmul.f32 %v5551_v36, %v2039_v27  ;;  %v3031_v63 = vor.u32 1.1754944e-38, %v3030_v57  ;;  %v4261_v57 = vld [vmem:[%s5971_s6] ss:$0 sm:$0xff] }
 0x2f0   :  { %v3007_v35 = vmul.f32 %v4098_v22, %v3006_v31  ;;  %v3956_v38 = vmul.f32 -1.442695, %v2351_v34 }
 0x2f1   :  { %v4100_v39 = vpop.eup %4099  ;;  %v1512_v41 = vpop.f32.mrf.mxu2  ;;  %v2256_v43 = vsel %vm2129_vm2, %v2107_v48, 0.0 }
 0x2f2   :  { %v1934_v42 = vpop.f32.mrf.mxu3  ;;  %v4102_v44 = vpop.eup %4101  ;;  %v3008_v46 = vadd.f32 %v4098_v22, %v3007_v35  ;;  %v3020_v47 = vmul.f32 %v4100_v39, %v5600_v13  ;;  %4103 = vpow2.f32 %v3956_v38  ;;  %2257 = vadd.xlane.f32.xlu0 %v2256_v43  ;;  %v1513_v50 = vadd.f32 %v5402_v25, %v1512_v41 }
 0x2f3   :  { %v5620_v49 = vadd.f32 1.0, %v4102_v44  ;;  %v1935_v51 = vadd.f32 %v5529_v33, %v1934_v42  ;;  %vm3025_vm15 = vweird.f32 %v4100_v39 }
 0x2f4   :  { %v3012_v52 = vsel %vm3011_vm14, %v4098_v22, %v3008_v46  ;;  %v3021_v53 = vsub.f32 1.0, %v3020_v47  ;;  %v1584_v29 = vmax.f32 %v1513_v50, 0.0  ;;  %vm3026_vm5 = vmor %vm3024_vm3, %vm3025_vm15 }
 0x2f5   :  { %v3017_v54 = vsel %vm3014_vm1, %v3016_v45, %v3012_v52  ;;  %4105 = vrcp.f32 %v5620_v49  ;;  %v2040_v58 = vmax.f32 %v1935_v51, 0.0  ;;  %v2216_v59 = vpop.xlane.xlu1 %2215  ;;  %v3045_v40 = vand.u32 2147483648, %v5620_v49 }
 0x2f6   :  { %3629 = vst.msk [vmem:[%s5976_s11 + $0xc0] sm:$0xff] %vm3604_vm4, %v3017_v54  ;;  %v3022_v28 = vmul.f32 %v4100_v39, %v3021_v53  ;;  %v2352_v62 = vadd.f32 %v5139_v20, %v2216_v59  ;;  %3925 = vmatmul.msk.f32.gmra.mxu3 %vm175_vm0, %v1584_v29  ;;  %v3043_v21 = vand.u32 2147483647, %v5620_v49  ;;  %vm3039_vm8 = vweird.f32 %v5620_v49 }
 0x2f7   :  { %v2108_v55 = vmul.f32 %v5551_v36, %v2040_v58  ;;  %v3046_v31 = vor.u32 1.1754944e-38, %v3045_v40 }
 0x2f8   :  { %v4104_v60 = vpop.eup %4103  ;;  %v3023_v61 = vadd.f32 %v4100_v39, %v3022_v28  ;;  %v3957_v4 = vmul.f32 -1.442695, %v2352_v62  ;;  %vm3044_vm10 = vcmp.eq.f32.partialorder %v3043_v21, 8.507059e+37 }
 0x2f9   :  { %v5634_v0 = vadd.f32 1.0, %v4104_v60  ;;  %v1515_v1 = vpop.f32.mrf.mxu2  ;;  %v2259_v13 = vsel %vm2129_vm2, %v2108_v55, 0.0 }
 0x2fa   :  { %v1937_v2 = vpop.f32.mrf.mxu3  ;;  %v3027_v3 = vsel %vm3026_vm5, %v4100_v39, %v3023_v61  ;;  %v1516_v5 = vadd.f32 %v5402_v25, %v1515_v1  ;;  %2260 = vadd.xlane.f32.xlu1 %v2259_v13 }
 0x2fb   :  { %v1938_v6 = vadd.f32 %v5529_v33, %v1937_v2  ;;  %v4106_v7 = vpop.eup %4105  ;;  %v3032_v8 = vsel %vm3029_vm6, %v3031_v63, %v3027_v3  ;;  %4107 = vrcp.f32 %v5634_v0  ;;  %v3058_v42 = vand.u32 2147483647, %v5634_v0 }
 0x2fc   :  { %3630 = vst.msk [vmem:[%s5976_s11 + $0xc8] sm:$0xff] %vm3604_vm4, %v3032_v8  ;;  %v3035_v9 = vmul.f32 %v4106_v7, %v5620_v49  ;;  %4109 = vpow2.f32 %v3957_v4  ;;  %v1585_v11 = vmax.f32 %v1516_v5, 0.0  ;;  %vm3040_vm7 = vweird.f32 %v4106_v7 }
 0x2fd   :  { %v2219_v10 = vpop.xlane.xlu2 %2218  ;;  %v2041_v12 = vmax.f32 %v1938_v6, 0.0  ;;  %vm3041_vm9 = vmor %vm3039_vm8, %vm3040_vm7  ;;  %v3060_v43 = vand.u32 2147483648, %v5634_v0  ;;  %vm3054_vm12 = vweird.f32 %v5634_v0  ;;  %vm3059_vm14 = vcmp.eq.f32.partialorder %v3058_v42, 8.507059e+37 }
 0x2fe   :  { %v3036_v14 = vsub.f32 1.0, %v3035_v9  ;;  %v2353_v16 = vadd.f32 %v5139_v20, %v2219_v10  ;;  %3926 = vmatmul.msk.f32.gmra.mxu3 %vm175_vm0, %v1585_v11 }
 0x2ff   :  { %v2109_v17 = vmul.f32 %v5551_v36, %v2041_v12  ;;  %v3061_v51 = vor.u32 1.1754944e-38, %v3060_v43 }
 0x300   :  { %v3037_v19 = vmul.f32 %v4106_v7, %v3036_v14  ;;  %v3958_v15 = vmul.f32 -1.442695, %v2353_v16 }
 0x301   :  { %v4108_v22 = vpop.eup %4107  ;;  %v1518_v24 = vpop.f32.mrf.mxu2  ;;  %v2262_v26 = vsel %vm2129_vm2, %v2109_v17, 0.0 }
 0x302   :  { %v1940_v18 = vpop.f32.mrf.mxu3  ;;  %v4110_v27 = vpop.eup %4109  ;;  %v3038_v23 = vadd.f32 %v4106_v7, %v3037_v19  ;;  %v3050_v30 = vmul.f32 %v4108_v22, %v5634_v0  ;;  %4111 = vpow2.f32 %v3958_v15  ;;  %2263 = vadd.xlane.f32.xlu2 %v2262_v26  ;;  %v1519_v32 = vadd.f32 %v5402_v25, %v1518_v24 }
 0x303   :  { %v5654_v34 = vadd.f32 1.0, %v4110_v27  ;;  %v1941_v48 = vadd.f32 %v5529_v33, %v1940_v18  ;;  %vm3055_vm11 = vweird.f32 %v4108_v22 }
 0x304   :  { %v3042_v37 = vsel %vm3041_vm9, %v4106_v7, %v3038_v23  ;;  %v3051_v38 = vsub.f32 1.0, %v3050_v30  ;;  %v1586_v44 = vmax.f32 %v1519_v32, 0.0  ;;  %vm3056_vm13 = vmor %vm3054_vm12, %vm3055_vm11 }
 0x305   :  { %v2222_v35 = vpop.xlane.xlu0 %2221  ;;  %v3047_v41 = vsel %vm3044_vm10, %v3046_v31, %v3042_v37  ;;  %4113 = vrcp.f32 %v5654_v34  ;;  %v2042_v46 = vmax.f32 %v1941_v48, 0.0  ;;  %v3075_v3 = vand.u32 2147483648, %v5654_v34 }
 0x306   :  { %v2354_v39 = vadd.f32 %v5139_v20, %v2222_v35  ;;  %3631 = vst.msk [vmem:[%s5976_s11 + $0xd0] sm:$0xff] %vm3604_vm4, %v3047_v41  ;;  %v3052_v25 = vmul.f32 %v4108_v22, %v3051_v38  ;;  %3927 = vmatmul.msk.f32.gmra.mxu3 %vm175_vm0, %v1586_v44  ;;  %v3073_v7 = vand.u32 2147483647, %v5654_v34  ;;  %vm3069_vm15 = vweird.f32 %v5654_v34 }
 0x307   :  { %v2110_v50 = vmul.f32 %v5551_v36, %v2042_v46  ;;  %v3076_v14 = vor.u32 1.1754944e-38, %v3075_v3 }
 0x308   :  { %v3959_v47 = vmul.f32 -1.442695, %v2354_v39  ;;  %v4112_v45 = vpop.eup %4111  ;;  %v3053_v49 = vadd.f32 %v4108_v22, %v3052_v25 }
 0x309   :  { %v5669_v52 = vadd.f32 1.0, %v4112_v45  ;;  %v1521_v53 = vpop.f32.mrf.mxu2  ;;  %v2265_v58 = vsel %vm2129_vm2, %v2110_v50, 0.0 }
 0x30a   :  { %4115 = vpow2.f32 %v3959_v47  ;;  %v1943_v54 = vpop.f32.mrf.mxu3  ;;  %v3057_v56 = vsel %vm3056_vm13, %v4108_v22, %v3053_v49  ;;  %v1522_v28 = vadd.f32 %v4261_v57, %v1521_v53  ;;  %2266 = vadd.xlane.f32.xlu0 %v2265_v58 }
 0x30b   :  { %v1944_v29 = vadd.f32 %v5529_v33, %v1943_v54  ;;  %v4114_v59 = vpop.eup %4113  ;;  %v3062_v60 = vsel %vm3059_vm14, %v3061_v51, %v3057_v56  ;;  %4117 = vrcp.f32 %v5669_v52  ;;  %v3090_v22 = vand.u32 2147483648, %v5669_v52 }
 0x30c   :  { %3632 = vst.msk [vmem:[%s5976_s11 + $0xd8] sm:$0xff] %vm3604_vm4, %v3062_v60  ;;  %v3065_v61 = vmul.f32 %v4114_v59, %v5654_v34  ;;  %v1587_v62 = vmax.f32 %v1522_v28, 0.0  ;;  %vm3070_vm1 = vweird.f32 %v4114_v59  ;;  %v3088_v26 = vand.u32 2147483647, %v5669_v52 }
 0x30d   :  { %v2225_v63 = vpop.xlane.xlu1 %2224  ;;  %v2043_v0 = vmax.f32 %v1944_v29, 0.0  ;;  %vm3071_vm3 = vmor %vm3069_vm15, %vm3070_vm1  ;;  %vm3084_vm6 = vweird.f32 %v5669_v52  ;;  %v3091_v48 = vor.u32 1.1754944e-38, %v3090_v22 }
 0x30e   :  { %v2355_v1 = vadd.f32 %v5139_v20, %v2225_v63  ;;  %v3066_v2 = vsub.f32 1.0, %v3065_v61  ;;  %3928 = vmatmul.msk.f32.gmra.mxu3 %vm175_vm0, %v1587_v62  ;;  %vm3074_vm0 = vcmp.eq.f32.partialorder %v3073_v7, 8.507059e+37  ;;  %vm3089_vm8 = vcmp.eq.f32.partialorder %v3088_v26, 8.507059e+37 }
 0x30f   :  { %v2111_v5 = vmul.f32 %v5551_v36, %v2043_v0 }
 0x310   :  { %v4116_v55 = vpop.eup %4115  ;;  %v3960_v4 = vmul.f32 -1.442695, %v2355_v1  ;;  %v3067_v6 = vmul.f32 %v4114_v59, %v3066_v2 }
 0x311   :  { %v5686_v8 = vadd.f32 1.0, %v4116_v55  ;;  %v4118_v9 = vpop.eup %4117  ;;  %v2268_v11 = vsel %vm2129_vm2, %v2111_v5, 0.0 }
 0x312   :  { %4119 = vpow2.f32 %v3960_v4  ;;  %v1946_v10 = vpop.f32.mrf.mxu3  ;;  %v3068_v12 = vadd.f32 %v4114_v59, %v3067_v6  ;;  %v3080_v13 = vmul.f32 %v4118_v9, %v5669_v52  ;;  %2269 = vadd.xlane.f32.xlu1 %v2268_v11  ;;  %vm3085_vm5 = vweird.f32 %v4118_v9 }
 0x313   :  { %4121 = vrcp.f32 %v5686_v8  ;;  %v1947_v16 = vadd.f32 %v5529_v33, %v1946_v10  ;;  %vm3086_vm7 = vmor %vm3084_vm6, %vm3085_vm5  ;;  %v3103_v25 = vand.u32 2147483647, %v5686_v8  ;;  %v3105_v44 = vand.u32 2147483648, %v5686_v8 }
 0x314   :  { %v3072_v17 = vsel %vm3071_vm3, %v4114_v59, %v3068_v12  ;;  %v3081_v19 = vsub.f32 1.0, %v3080_v13  ;;  %vm3099_vm10 = vweird.f32 %v5686_v8 }
 0x315   :  { %v2228_v40 = vpop.xlane.xlu2 %2227  ;;  %v3077_v15 = vsel %vm3074_vm0, %v3076_v14, %v3072_v17  ;;  %v2044_v24 = vmax.f32 %v1947_v16, 0.0  ;;  %v3106_v57 = vor.u32 1.1754944e-38, %v3105_v44  ;;  %vm3104_vm12 = vcmp.eq.f32.partialorder %v3103_v25, 8.507059e+37 }
 0x316   :  { %v2356_v21 = vadd.f32 %v5139_v20, %v2228_v40  ;;  %3633 = vst.msk [vmem:[%s5976_s11 + $0xe0] sm:$0xff] %vm3604_vm4, %v3077_v15  ;;  %v3082_v18 = vmul.f32 %v4118_v9, %v3081_v19 }
 0x317   :  { %v2112_v30 = vmul.f32 %v5551_v36, %v2044_v24 }
 0x318   :  { %v3961_v27 = vmul.f32 -1.442695, %v2356_v21  ;;  %v4120_v23 = vpop.eup %4119  ;;  %v3083_v34 = vadd.f32 %v4118_v9, %v3082_v18 }
 0x319   :  { %v4122_v31 = vpop.eup %4121  ;;  %v2611_v32 = vadd.f32 1.0, %v4120_v23  ;;  %v2271_v38 = vsel %vm2129_vm2, %v2112_v30, 0.0 }
 0x31a   :  { %4123 = vpow2.f32 %v3961_v27  ;;  %v3095_v35 = vmul.f32 %v4122_v31, %v5686_v8  ;;  %v1949_v37 = vpop.f32.mrf.mxu3  ;;  %v3087_v39 = vsel %vm3086_vm7, %v4118_v9, %v3083_v34  ;;  %2272 = vadd.xlane.f32.xlu2 %v2271_v38  ;;  %vm3100_vm9 = vweird.f32 %v4122_v31 }
 0x31b   :  { %4125 = vrcp.f32 %v2611_v32  ;;  %v3092_v41 = vsel %vm3089_vm8, %v3091_v48, %v3087_v39  ;;  %v1950_v43 = vadd.f32 %v5529_v33, %v1949_v37  ;;  %vm3101_vm11 = vmor %vm3099_vm10, %vm3100_vm9  ;;  %v3120_v0 = vand.u32 2147483648, %v2611_v32 }
 0x31c   :  { %v3096_v42 = vsub.f32 1.0, %v3095_v35  ;;  %3634 = vst.msk [vmem:[%s5976_s11 + $0xe8] sm:$0xff] %vm3604_vm4, %v3092_v41  ;;  %v3118_v55 = vand.u32 2147483647, %v2611_v32  ;;  %vm3114_vm14 = vweird.f32 %v2611_v32 }
 0x31d   :  { %v2231_v46 = vpop.xlane.xlu0 %2230  ;;  %v2045_v45 = vmax.f32 %v1950_v43, 0.0  ;;  %v3121_v8 = vor.u32 1.1754944e-38, %v3120_v0 }
 0x31e   :  { %v3097_v47 = vmul.f32 %v4122_v31, %v3096_v42  ;;  %v2357_v49 = vadd.f32 %v5139_v20, %v2231_v46  ;;  %vm3119_vm15 = vcmp.eq.f32.partialorder %v3118_v55, 8.507059e+37 }
 0x31f   :  { %v2113_v54 = vmul.f32 %v5551_v36, %v2045_v45 }
 0x320   :  { %v4124_v50 = vpop.eup %4123  ;;  %v3098_v51 = vadd.f32 %v4122_v31, %v3097_v47  ;;  %v3962_v53 = vmul.f32 -1.442695, %v2357_v49 }
 0x321   :  { %v2612_v52 = vadd.f32 1.0, %v4124_v50  ;;  %v4126_v56 = vpop.eup %4125  ;;  %v2274_v62 = vsel %vm2129_vm2, %v2113_v54, 0.0 }
 0x322   :  { %v3102_v28 = vsel %vm3101_vm11, %v4122_v31, %v3098_v51  ;;  %v3110_v29 = vmul.f32 %v4126_v56, %v2611_v32  ;;  %v1952_v58 = vpop.f32.mrf.mxu3  ;;  %2275 = vadd.xlane.f32.xlu0 %v2274_v62  ;;  %vm3115_vm13 = vweird.f32 %v4126_v56 }
 0x323   :  { %4127 = vrcp.f32 %v2612_v52  ;;  %v3107_v59 = vsel %vm3104_vm12, %v3106_v57, %v3102_v28  ;;  %v1953_v61 = vadd.f32 %v5529_v33, %v1952_v58  ;;  %vm3116_vm1 = vmor %vm3114_vm14, %vm3115_vm13  ;;  %v3135_v19 = vand.u32 2147483648, %v2612_v52 }
 0x324   :  { %3635 = vst.msk [vmem:[%s5976_s11 + $0xf0] sm:$0xff] %vm3604_vm4, %v3107_v59  ;;  %v3111_v60 = vsub.f32 1.0, %v3110_v29  ;;  %4129 = vpow2.f32 %v3962_v53  ;;  %v3133_v15 = vand.u32 2147483647, %v2612_v52  ;;  %vm3129_vm0 = vweird.f32 %v2612_v52 }
 0x325   :  { %v2234_v63 = vpop.xlane.xlu1 %2233  ;;  %v2046_v3 = vmax.f32 %v1953_v61, 0.0  ;;  %v3136_v23 = vor.u32 1.1754944e-38, %v3135_v19 }
 0x326   :  { %v2358_v1 = vadd.f32 %v5139_v20, %v2234_v63  ;;  %v3112_v2 = vmul.f32 %v4126_v56, %v3111_v60  ;;  %vm3134_vm6 = vcmp.eq.f32.partialorder %v3133_v15, 8.507059e+37 }
 0x327   :  { %v2114_v7 = vmul.f32 %v5551_v36, %v2046_v3 }
 0x328   :  { %v3963_v4 = vmul.f32 -1.442695, %v2358_v1  ;;  %v3113_v6 = vadd.f32 %v4126_v56, %v3112_v2 }
 0x329   :  { %v4128_v5 = vpop.eup %4127  ;;  %v2277_v13 = vsel %vm2129_vm2, %v2114_v7, 0.0 }
 0x32a   :  { %v3125_v9 = vmul.f32 %v4128_v5, %v2612_v52  ;;  %4131 = vpow2.f32 %v3963_v4  ;;  %v4130_v10 = vpop.eup %4129  ;;  %v3117_v11 = vsel %vm3116_vm1, %v4126_v56, %v3113_v6  ;;  %v1955_v12 = vpop.f32.mrf.mxu3  ;;  %2278 = vadd.xlane.f32.xlu1 %v2277_v13  ;;  %vm3130_vm3 = vweird.f32 %v4128_v5 }
 0x32b   :  { %v3122_v14 = vsel %vm3119_vm15, %v3121_v8, %v3117_v11  ;;  %v2613_v40 = vadd.f32 1.0, %v4130_v10  ;;  %v1956_v17 = vadd.f32 %v5529_v33, %v1955_v12  ;;  %vm3131_vm5 = vmor %vm3129_vm0, %vm3130_vm3 }
 0x32c   :  { %v3126_v16 = vsub.f32 1.0, %v3125_v9  ;;  %3636 = vst.msk [vmem:[%s5976_s11 + $0xf8] sm:$0xff] %vm3604_vm4, %v3122_v14 }
 0x32d   :  { %4133 = vrcp.f32 %v2613_v40  ;;  %v2047_v22 = vmax.f32 %v1956_v17, 0.0  ;;  %v2237_v24 = vpop.xlane.xlu2 %2236  ;;  %v3148_v46 = vand.u32 2147483647, %v2613_v40  ;;  %v3150_v47 = vand.u32 2147483648, %v2613_v40 }
 0x32e   :  { %v3127_v21 = vmul.f32 %v4128_v5, %v3126_v16  ;;  %v2359_v27 = vadd.f32 %v5139_v20, %v2237_v24  ;;  %vm3144_vm8 = vweird.f32 %v2613_v40 }
 0x32f   :  { %v2115_v31 = vmul.f32 %v5551_v36, %v2047_v22  ;;  %vm3149_vm10 = vcmp.eq.f32.partialorder %v3148_v46, 8.507059e+37  ;;  %v3151_v29 = vor.u32 1.1754944e-38, %v3150_v47 }
 0x330   :  { %v4132_v18 = vpop.eup %4131  ;;  %v3128_v26 = vadd.f32 %v4128_v5, %v3127_v21  ;;  %v3964_v32 = vmul.f32 -1.442695, %v2359_v27 }
 0x331   :  { %v2614_v30 = vadd.f32 1.0, %v4132_v18  ;;  %v2280_v39 = vsel %vm2129_vm2, %v2115_v31, 0.0 }
 0x332   :  { %v3132_v34 = vsel %vm3131_vm5, %v4128_v5, %v3128_v26  ;;  %v1958_v35 = vpop.f32.mrf.mxu3  ;;  %2281 = vadd.xlane.f32.xlu2 %v2280_v39  ;;  %v5759_v39 = vld [vmem:[%s5973_s8] ss:$0 sm:$0xff] }
 0x333   :  { %v3137_v48 = vsel %vm3134_vm6, %v3136_v23, %v3132_v34  ;;  %4135 = vrcp.f32 %v2614_v30  ;;  %v4134_v37 = vpop.eup %4133  ;;  %v1959_v38 = vadd.f32 %v5529_v33, %v1958_v35  ;;  %v3163_v61 = vand.u32 2147483647, %v2614_v30 }
 0x334   :  { %3637 = vst.msk [vmem:[%s5976_s11 + $0x100] sm:$0xff] %vm3604_vm4, %v3137_v48  ;;  %4137 = vpow2.f32 %v3964_v32  ;;  %v3140_v41 = vmul.f32 %v4134_v37, %v2613_v40  ;;  %vm3145_vm7 = vweird.f32 %v4134_v37  ;;  %v3165_v62 = vand.u32 2147483648, %v2614_v30 }
 0x335   :  { %v2048_v42 = vmax.f32 %v1959_v38, 0.0  ;;  %v2240_v43 = vpop.xlane.xlu0 %2239  ;;  %vm3146_vm9 = vmor %vm3144_vm8, %vm3145_vm7  ;;  %vm3159_vm12 = vweird.f32 %v2614_v30  ;;  %vm3164_vm14 = vcmp.eq.f32.partialorder %v3163_v61, 8.507059e+37 }
 0x336   :  { %v3141_v25 = vsub.f32 1.0, %v3140_v41  ;;  %v2360_v44 = vadd.f32 %v5139_v20, %v2240_v43  ;;  %v3166_v6 = vor.u32 1.1754944e-38, %v3165_v62 }
 0x337   :  { %v2116_v45 = vmul.f32 %v5551_v36, %v2048_v42 }
 0x338   :  { %v3142_v50 = vmul.f32 %v4134_v37, %v3141_v25  ;;  %v3965_v51 = vmul.f32 -1.442695, %v2360_v44 }
 0x339   :  { %v4136_v49 = vpop.eup %4135  ;;  %v2283_v54 = vsel %vm2129_vm2, %v2116_v45, 0.0 }
 0x33a   :  { %v4138_v52 = vpop.eup %4137  ;;  %v3155_v53 = vmul.f32 %v4136_v49, %v2614_v30  ;;  %v3143_v56 = vadd.f32 %v4134_v37, %v3142_v50  ;;  %4139 = vpow2.f32 %v3965_v51  ;;  %v1961_v28 = vpop.f32.mrf.mxu3  ;;  %2284 = vadd.xlane.f32.xlu0 %v2283_v54  ;;  %vm3160_vm11 = vweird.f32 %v4136_v49 }
 0x33b   :  { %v2615_v57 = vadd.f32 1.0, %v4138_v52  ;;  %v1962_v59 = vadd.f32 %v5529_v33, %v1961_v28  ;;  %vm3161_vm13 = vmor %vm3159_vm12, %vm3160_vm11 }
 0x33c   :  { %v3156_v58 = vsub.f32 1.0, %v3155_v53  ;;  %v3147_v60 = vsel %vm3146_vm9, %v4134_v37, %v3143_v56 }
 0x33d   :  { %4141 = vrcp.f32 %v2615_v57  ;;  %v3152_v63 = vsel %vm3149_vm10, %v3151_v29, %v3147_v60  ;;  %v2049_v1 = vmax.f32 %v1962_v59, 0.0  ;;  %v2243_v2 = vpop.xlane.xlu1 %2242  ;;  %v3180_v17 = vand.u32 2147483648, %v2615_v57 }
 0x33e   :  { %v3157_v0 = vmul.f32 %v4136_v49, %v3156_v58  ;;  %3638 = vst.msk [vmem:[%s5976_s11 + $0x108] sm:$0xff] %vm3604_vm4, %v3152_v63  ;;  %v2361_v3 = vadd.f32 %v5139_v20, %v2243_v2  ;;  %v3178_v15 = vand.u32 2147483647, %v2615_v57  ;;  %vm3174_vm15 = vweird.f32 %v2615_v57 }
 0x33f   :  { %v2117_v4 = vmul.f32 %v5551_v36, %v2049_v1  ;;  %v3181_v30 = vor.u32 1.1754944e-38, %v3180_v17 }
 0x340   :  { %v3158_v55 = vadd.f32 %v4136_v49, %v3157_v0  ;;  %v4140_v5 = vpop.eup %4139  ;;  %v3966_v9 = vmul.f32 -1.442695, %v2361_v3  ;;  %vm3179_vm0 = vcmp.eq.f32.partialorder %v3178_v15, 8.507059e+37 }
 0x341   :  { %v2616_v8 = vadd.f32 1.0, %v4140_v5  ;;  %v2286_v10 = vsel %vm2129_vm2, %v2117_v4, 0.0 }
 0x342   :  { %v3162_v7 = vsel %vm3161_vm13, %v4136_v49, %v3158_v55  ;;  %v1964_v13 = vpop.f32.mrf.mxu3  ;;  %2287 = vadd.xlane.f32.xlu1 %v2286_v10 }
 0x343   :  { %v4142_v11 = vpop.eup %4141  ;;  %v3167_v12 = vsel %vm3164_vm14, %v3166_v6, %v3162_v7  ;;  %4143 = vrcp.f32 %v2616_v8  ;;  %v1965_v16 = vadd.f32 %v5529_v33, %v1964_v13  ;;  %v3193_v42 = vand.u32 2147483647, %v2616_v8 }
 0x344   :  { %3639 = vst.msk [vmem:[%s5976_s11 + $0x110] sm:$0xff] %vm3604_vm4, %v3167_v12  ;;  %v3170_v14 = vmul.f32 %v4142_v11, %v2615_v57  ;;  %4145 = vpow2.f32 %v3966_v9  ;;  %vm3175_vm1 = vweird.f32 %v4142_v11  ;;  %v3195_v43 = vand.u32 2147483648, %v2616_v8 }
 0x345   :  { %v2050_v19 = vmax.f32 %v1965_v16, 0.0  ;;  %v2246_v22 = vpop.xlane.xlu2 %2245  ;;  %vm3176_vm3 = vmor %vm3174_vm15, %vm3175_vm1  ;;  %vm3189_vm6 = vweird.f32 %v2616_v8  ;;  %vm3194_vm8 = vcmp.eq.f32.partialorder %v3193_v42, 8.507059e+37 }
 0x346   :  { %v3171_v40 = vsub.f32 1.0, %v3170_v14  ;;  %v2362_v27 = vadd.f32 %v5139_v20, %v2246_v22  ;;  %v3196_v45 = vor.u32 1.1754944e-38, %v3195_v43 }
 0x347   :  { %v2118_v24 = vmul.f32 %v5551_v36, %v2050_v19 }
 0x348   :  { %v3172_v21 = vmul.f32 %v4142_v11, %v3171_v40  ;;  %v3967_v48 = vmul.f32 -1.442695, %v2362_v27  ;;  %v5785_v40 = vld [vmem:[%s5974_s9] ss:$0 sm:$0xff] }
 0x349   :  { %v4144_v18 = vpop.eup %4143  ;;  %v2289_v33 = vsel %vm2129_vm2, %v2118_v24, 0.0 }
 0x34a   :  { %v3173_v26 = vadd.f32 %v4142_v11, %v3172_v21  ;;  %v4146_v23 = vpop.eup %4145  ;;  %v3185_v31 = vmul.f32 %v4144_v18, %v2616_v8  ;;  %v1967_v35 = vpop.f32.mrf.mxu3  ;;  %2290 = vadd.xlane.f32.xlu2 %v2289_v33  ;;  %vm3190_vm5 = vweird.f32 %v4144_v18 }
 0x34b   :  { %v2617_v32 = vadd.f32 1.0, %v4146_v23  ;;  %v1968_v41 = vadd.f32 %v5759_v39, %v1967_v35  ;;  %vm3191_vm7 = vmor %vm3189_vm6, %vm3190_vm5 }
 0x34c   :  { %v3177_v34 = vsel %vm3176_vm3, %v4142_v11, %v3173_v26  ;;  %v3186_v38 = vsub.f32 1.0, %v3185_v31 }
 0x34d   :  { %v3182_v37 = vsel %vm3179_vm0, %v3181_v30, %v3177_v34  ;;  %4147 = vrcp.f32 %v2617_v32  ;;  %v2051_v44 = vmax.f32 %v1968_v41, 0.0  ;;  %v2249_v50 = vpop.xlane.xlu0 %2248  ;;  %v3208_v63 = vand.u32 2147483647, %v2617_v32 }
 0x34e   :  { %3640 = vst.msk [vmem:[%s5976_s11 + $0x118] sm:$0xff] %vm3604_vm4, %v3182_v37  ;;  %v3187_v25 = vmul.f32 %v4144_v18, %v3186_v38  ;;  %4149 = vpow2.f32 %v3967_v48  ;;  %v2363_v54 = vadd.f32 %v5139_v20, %v2249_v50  ;;  %v3210_v0 = vand.u32 2147483648, %v2617_v32 }
 0x34f   :  { %v2119_v47 = vmul.f32 %v5551_v36, %v2051_v44  ;;  %vm3204_vm10 = vweird.f32 %v2617_v32  ;;  %vm3209_vm12 = vcmp.eq.f32.partialorder %v3208_v63, 8.507059e+37 }
 0x350   :  { %v3188_v46 = vadd.f32 %v4144_v18, %v3187_v25  ;;  %v3968_v59 = vmul.f32 -1.442695, %v2363_v54  ;;  %v3211_v6 = vor.u32 1.1754944e-38, %v3210_v0 }
 0x351   :  { %v2292_v51 = vsel %vm2129_vm2, %v2119_v47, 0.0 }
 0x352   :  { %v3192_v49 = vsel %vm3191_vm7, %v4144_v18, %v3188_v46  ;;  %v1970_v56 = vpop.f32.mrf.mxu3  ;;  %2293 = vadd.xlane.f32.xlu0 %v2292_v51 }
 0x353   :  { %v4148_v52 = vpop.eup %4147  ;;  %v3197_v53 = vsel %vm3194_vm8, %v3196_v45, %v3192_v49  ;;  %v1971_v29 = vadd.f32 %v5759_v39, %v1970_v56 }
 0x354   :  { %v4150_v57 = vpop.eup %4149  ;;  %3641 = vst.msk [vmem:[%s5976_s11 + $0x120] sm:$0xff] %vm3604_vm4, %v3197_v53  ;;  %v3200_v28 = vmul.f32 %v4148_v52, %v2617_v32  ;;  %vm3205_vm9 = vweird.f32 %v4148_v52 }
 0x355   :  { %v2618_v58 = vadd.f32 1.0, %v4150_v57  ;;  %v2052_v61 = vmax.f32 %v1971_v29, 0.0  ;;  %v2252_v62 = vpop.xlane.xlu1 %2251  ;;  %vm3206_vm11 = vmor %vm3204_vm10, %vm3205_vm9 }
 0x356   :  { %v3201_v60 = vsub.f32 1.0, %v3200_v28  ;;  %v2364_v2 = vadd.f32 %v5139_v20, %v2252_v62 }
 0x357   :  { %4151 = vrcp.f32 %v2618_v58  ;;  %v2120_v55 = vmul.f32 %v5551_v36, %v2052_v61  ;;  %v3225_v19 = vand.u32 2147483648, %v2618_v58  ;;  %v3223_v22 = vand.u32 2147483647, %v2618_v58 }
 0x358   :  { %v3202_v1 = vmul.f32 %v4148_v52, %v3201_v60  ;;  %4153 = vpow2.f32 %v3968_v59  ;;  %v3969_v4 = vmul.f32 -1.442695, %v2364_v2  ;;  %vm3219_vm14 = vweird.f32 %v2618_v58 }
 0x359   :  { %v2295_v5 = vsel %vm2129_vm2, %v2120_v55, 0.0  ;;  %v3226_v33 = vor.u32 1.1754944e-38, %v3225_v19  ;;  %vm3224_vm15 = vcmp.eq.f32.partialorder %v3223_v22, 8.507059e+37 }
 0x35a   :  { %v3203_v3 = vadd.f32 %v4148_v52, %v3202_v1  ;;  %v1973_v7 = vpop.f32.mrf.mxu3  ;;  %2296 = vadd.xlane.f32.xlu1 %v2295_v5  ;;  %4155 = vpow2.f32 %v3969_v4 }
 0x35b   :  { %v1974_v9 = vadd.f32 %v5759_v39, %v1973_v7 }
 0x35c   :  { %v3207_v8 = vsel %vm3206_vm11, %v4148_v52, %v3203_v3 }
 0x35d   :  { %v4152_v10 = vpop.eup %4151  ;;  %v3212_v11 = vsel %vm3209_vm12, %v3211_v6, %v3207_v8  ;;  %v2053_v13 = vmax.f32 %v1974_v9, 0.0  ;;  %v2255_v24 = vpop.xlane.xlu2 %2254 }
 0x35e   :  { %v4154_v12 = vpop.eup %4153  ;;  %3642 = vst.msk [vmem:[%s5976_s11 + $0x128] sm:$0xff] %vm3604_vm4, %v3212_v11  ;;  %v3215_v36 = vmul.f32 %v4152_v10, %v2618_v58  ;;  %vm3220_vm13 = vweird.f32 %v4152_v10  ;;  %v2365_v27 = vadd.f32 %v5139_v20, %v2255_v24 }
 0x35f   :  { %v2619_v14 = vadd.f32 1.0, %v4154_v12  ;;  %v2121_v17 = vmul.f32 %v5785_v40, %v2053_v13  ;;  %vm3221_vm1 = vmor %vm3219_vm14, %vm3220_vm13 }
 0x360   :  { %v3216_v16 = vsub.f32 1.0, %v3215_v36  ;;  %v4156_v21 = vpop.eup %4155  ;;  %v3970_v32 = vmul.f32 -1.442695, %v2365_v27 }
 0x361   :  { %4157 = vrcp.f32 %v2619_v14  ;;  %v2298_v18 = vsel %vm2129_vm2, %v2121_v17, 0.0  ;;  %v5789_v26 = vadd.f32 1.0, %v4156_v21  ;;  %v3238_v46 = vand.u32 2147483647, %v2619_v14 }
 0x362   :  { %v3217_v15 = vmul.f32 %v4152_v10, %v3216_v16  ;;  %v1976_v23 = vpop.f32.mrf.mxu3  ;;  %2299 = vadd.xlane.f32.xlu2 %v2298_v18  ;;  %v3240_v49 = vand.u32 2147483648, %v2619_v14  ;;  %vm3234_vm0 = vweird.f32 %v2619_v14 }
 0x363   :  { %v1977_v31 = vadd.f32 %v5759_v39, %v1976_v23  ;;  %4159 = vrcp.f32 %v5789_v26  ;;  %vm3239_vm5 = vcmp.eq.f32.partialorder %v3238_v46, 8.507059e+37  ;;  %v3255_v29 = vand.u32 2147483648, %v5789_v26 }
 0x364   :  { %v3218_v30 = vadd.f32 %v4152_v10, %v3217_v15  ;;  %4161 = vpow2.f32 %v3970_v32  ;;  %v3241_v28 = vor.u32 1.1754944e-38, %v3240_v49  ;;  %v3253_v62 = vand.u32 2147483647, %v5789_v26 }
 0x365   :  { %v2054_v48 = vmax.f32 %v1977_v31, 0.0  ;;  %v2258_v35 = vpop.xlane.xlu0 %2257  ;;  %vm3249_vm8 = vweird.f32 %v5789_v26  ;;  %v3256_v4 = vor.u32 1.1754944e-38, %v3255_v29 }
 0x366   :  { %v3222_v34 = vsel %vm3221_vm1, %v4152_v10, %v3218_v30  ;;  %v2366_v41 = vadd.f32 %v5139_v20, %v2258_v35  ;;  %vm3254_vm10 = vcmp.eq.f32.partialorder %v3253_v62, 8.507059e+37 }
 0x367   :  { %v4158_v37 = vpop.eup %4157  ;;  %v3227_v38 = vsel %vm3224_vm15, %v3226_v33, %v3222_v34  ;;  %v2122_v43 = vmul.f32 %v5785_v40, %v2054_v48 }
 0x368   :  { %3643 = vst.msk [vmem:[%s5976_s11 + $0x130] sm:$0xff] %vm3604_vm4, %v3227_v38  ;;  %v3230_v42 = vmul.f32 %v4158_v37, %v2619_v14  ;;  %v3971_v25 = vmul.f32 -1.442695, %v2366_v41  ;;  %vm3235_vm3 = vweird.f32 %v4158_v37 }
 0x369   :  { %v2301_v47 = vsel %vm2129_vm2, %v2122_v43, 0.0  ;;  %v4160_v45 = vpop.eup %4159  ;;  %vm3236_vm6 = vmor %vm3234_vm0, %vm3235_vm3 }
 0x36a   :  { %v3231_v44 = vsub.f32 1.0, %v3230_v42  ;;  %4163 = vpow2.f32 %v3971_v25  ;;  %2302 = vadd.xlane.f32.xlu0 %v2301_v47  ;;  %v3245_v51 = vmul.f32 %v4160_v45, %v5789_v26  ;;  %v1979_v52 = vpop.f32.mrf.mxu3  ;;  %v4162_v54 = vpop.eup %4161  ;;  %vm3250_vm7 = vweird.f32 %v4160_v45 }
 0x36b   :  { %v1980_v53 = vadd.f32 %v5759_v39, %v1979_v52  ;;  %v5804_v58 = vadd.f32 1.0, %v4162_v54  ;;  %vm3251_vm9 = vmor %vm3249_vm8, %vm3250_vm7 }
 0x36c   :  { %v3232_v50 = vmul.f32 %v4158_v37, %v3231_v44  ;;  %v3246_v57 = vsub.f32 1.0, %v3245_v51 }
 0x36d   :  { %v2055_v59 = vmax.f32 %v1980_v53, 0.0  ;;  %4165 = vrcp.f32 %v5804_v58  ;;  %v2261_v55 = vpop.xlane.xlu1 %2260  ;;  %v3270_v15 = vand.u32 2147483648, %v5804_v58  ;;  %v3268_v26 = vand.u32 2147483647, %v5804_v58 }
 0x36e   :  { %v3233_v56 = vadd.f32 %v4158_v37, %v3232_v50  ;;  %v3247_v61 = vmul.f32 %v4160_v45, %v3246_v57  ;;  %v2367_v5 = vadd.f32 %v5139_v20, %v2261_v55  ;;  %vm3264_vm12 = vweird.f32 %v5804_v58 }
 0x36f   :  { %v2123_v3 = vmul.f32 %v5785_v40, %v2055_v59  ;;  %v3271_v32 = vor.u32 1.1754944e-38, %v3270_v15  ;;  %vm3269_vm1 = vcmp.eq.f32.partialorder %v3268_v26, 8.507059e+37 }
 0x370   :  { %v3237_v60 = vsel %vm3236_vm6, %v4158_v37, %v3233_v56  ;;  %v4164_v63 = vpop.eup %4163  ;;  %v3248_v1 = vadd.f32 %v4160_v45, %v3247_v61  ;;  %v3972_v9 = vmul.f32 -1.442695, %v2367_v5 }
 0x371   :  { %v3242_v0 = vsel %vm3239_vm5, %v3241_v28, %v3237_v60  ;;  %v5813_v2 = vadd.f32 1.0, %v4164_v63  ;;  %v2304_v11 = vsel %vm2129_vm2, %v2123_v3, 0.0 }
 0x372   :  { %3644 = vst.msk [vmem:[%s5976_s11 + $0x138] sm:$0xff] %vm3604_vm4, %v3242_v0  ;;  %v3252_v6 = vsel %vm3251_vm9, %v4160_v45, %v3248_v1  ;;  %v1982_v7 = vpop.f32.mrf.mxu3  ;;  %2305 = vadd.xlane.f32.xlu1 %v2304_v11 }
 0x373   :  { %4167 = vrcp.f32 %v5813_v2  ;;  %v3257_v8 = vsel %vm3254_vm10, %v3256_v4, %v3252_v6  ;;  %v1983_v10 = vadd.f32 %v5759_v39, %v1982_v7  ;;  %v4166_v36 = vpop.eup %4165  ;;  %v3285_v48 = vand.u32 2147483648, %v5813_v2 }
 0x374   :  { %3645 = vst.msk [vmem:[%s5976_s11 + $0x140] sm:$0xff] %vm3604_vm4, %v3257_v8  ;;  %4169 = vpow2.f32 %v3972_v9  ;;  %v3260_v14 = vmul.f32 %v4166_v36, %v5804_v58  ;;  %vm3265_vm11 = vweird.f32 %v4166_v36  ;;  %v3283_v38 = vand.u32 2147483647, %v5813_v2 }
 0x375   :  { %v2264_v12 = vpop.xlane.xlu2 %2263  ;;  %v2056_v16 = vmax.f32 %v1983_v10, 0.0  ;;  %vm3266_vm13 = vmor %vm3264_vm12, %vm3265_vm11  ;;  %vm3279_vm15 = vweird.f32 %v5813_v2  ;;  %v3286_v45 = vor.u32 1.1754944e-38, %v3285_v48 }
 0x376   :  { %v2368_v13 = vadd.f32 %v5139_v20, %v2264_v12  ;;  %v3261_v21 = vsub.f32 1.0, %v3260_v14  ;;  %vm3284_vm0 = vcmp.eq.f32.partialorder %v3283_v38, 8.507059e+37 }
 0x377   :  { %v2124_v22 = vmul.f32 %v5785_v40, %v2056_v16 }
 0x378   :  { %v3973_v17 = vmul.f32 -1.442695, %v2368_v13  ;;  %v3262_v18 = vmul.f32 %v4166_v36, %v3261_v21 }
 0x379   :  { %v4168_v19 = vpop.eup %4167  ;;  %v2307_v23 = vsel %vm2129_vm2, %v2124_v22, 0.0 }
 0x37a   :  { %v3275_v24 = vmul.f32 %v4168_v19, %v5813_v2  ;;  %4171 = vpow2.f32 %v3973_v17  ;;  %v1985_v27 = vpop.f32.mrf.mxu3  ;;  %v4170_v30 = vpop.eup %4169  ;;  %2308 = vadd.xlane.f32.xlu2 %v2307_v23  ;;  %v3263_v34 = vadd.f32 %v4166_v36, %v3262_v18  ;;  %vm3280_vm14 = vweird.f32 %v4168_v19 }
 0x37b   :  { %v1986_v33 = vadd.f32 %v5759_v39, %v1985_v27  ;;  %v2623_v35 = vadd.f32 1.0, %v4170_v30  ;;  %vm3281_vm3 = vmor %vm3279_vm15, %vm3280_vm14 }
 0x37c   :  { %v3276_v31 = vsub.f32 1.0, %v3275_v24  ;;  %v3267_v43 = vsel %vm3266_vm13, %v4166_v36, %v3263_v34 }
 0x37d   :  { %v2057_v41 = vmax.f32 %v1986_v33, 0.0  ;;  %v2267_v42 = vpop.xlane.xlu0 %2266  ;;  %4173 = vrcp.f32 %v2623_v35  ;;  %v3272_v44 = vsel %vm3269_vm1, %v3271_v32, %v3267_v43  ;;  %v3298_v60 = vand.u32 2147483647, %v2623_v35 }
 0x37e   :  { %v3277_v37 = vmul.f32 %v4168_v19, %v3276_v31  ;;  %v2369_v47 = vadd.f32 %v5139_v20, %v2267_v42  ;;  %3646 = vst.msk [vmem:[%s5976_s11 + $0x148] sm:$0xff] %vm3604_vm4, %v3272_v44  ;;  %v3300_v63 = vand.u32 2147483648, %v2623_v35  ;;  %vm3294_vm6 = vweird.f32 %v2623_v35 }
 0x37f   :  { %v2125_v50 = vmul.f32 %v5785_v40, %v2057_v41  ;;  %vm5851_vm7 = vcmp.eq.f32.partialorder %v3298_v60, 8.507059e+37 }
 0x380   :  { %v4172_v25 = vpop.eup %4171  ;;  %v3278_v46 = vadd.f32 %v4168_v19, %v3277_v37  ;;  %v3974_v52 = vmul.f32 -1.442695, %v2369_v47  ;;  %v3301_v10 = vor.u32 1.1754944e-38, %v3300_v63 }
 0x381   :  { %v2624_v49 = vadd.f32 1.0, %v4172_v25  ;;  %v2310_v57 = vsel %vm2129_vm2, %v2125_v50, 0.0 }
 0x382   :  { %v3282_v51 = vsel %vm3281_vm3, %v4168_v19, %v3278_v46  ;;  %v1988_v54 = vpop.f32.mrf.mxu3  ;;  %2311 = vadd.xlane.f32.xlu0 %v2310_v57 }
 0x383   :  { %v3287_v53 = vsel %vm3284_vm0, %v3286_v45, %v3282_v51  ;;  %4175 = vrcp.f32 %v2624_v49  ;;  %v1989_v56 = vadd.f32 %v5759_v39, %v1988_v54  ;;  %v4174_v28 = vpop.eup %4173  ;;  %v3313_v36 = vand.u32 2147483647, %v2624_v49 }
 0x384   :  { %3647 = vst.msk [vmem:[%s5976_s11 + $0x150] sm:$0xff] %vm3604_vm4, %v3287_v53  ;;  %4177 = vpow2.f32 %v3974_v52  ;;  %v3290_v58 = vmul.f32 %v4174_v28, %v2623_v35  ;;  %vm3295_vm5 = vweird.f32 %v4174_v28  ;;  %v3315_v13 = vand.u32 2147483648, %v2624_v49 }
 0x385   :  { %v2270_v29 = vpop.xlane.xlu1 %2269  ;;  %v2058_v59 = vmax.f32 %v1989_v56, 0.0  ;;  %vm3296_vm8 = vmor %vm3294_vm6, %vm3295_vm5  ;;  %vm3309_vm10 = vweird.f32 %v2624_v49  ;;  %vm3314_vm12 = vcmp.eq.f32.partialorder %v3313_v36, 8.507059e+37 }
 0x386   :  { %v2370_v61 = vadd.f32 %v5139_v20, %v2270_v29  ;;  %v3291_v62 = vsub.f32 1.0, %v3290_v58  ;;  %v3316_v27 = vor.u32 1.1754944e-38, %v3315_v13 }
 0x387   :  { %v2126_v0 = vmul.f32 %v5785_v40, %v2058_v59 }
 0x388   :  { %v3975_v2 = vmul.f32 -1.442695, %v2370_v61  ;;  %v3292_v3 = vmul.f32 %v4174_v28, %v3291_v62 }
 0x389   :  { %v4176_v1 = vpop.eup %4175  ;;  %v2313_v5 = vsel %vm2129_vm2, %v2126_v0, 0.0 }
 0x38a   :  { %v4178_v55 = vpop.eup %4177  ;;  %v3305_v4 = vmul.f32 %v4176_v1, %v2624_v49  ;;  %4179 = vpow2.f32 %v3975_v2  ;;  %v1991_v8 = vpop.f32.mrf.mxu3  ;;  %2314 = vadd.xlane.f32.xlu1 %v2313_v5  ;;  %v3293_v9 = vadd.f32 %v4174_v28, %v3292_v3  ;;  %vm3310_vm9 = vweird.f32 %v4176_v1 }
 0x38b   :  { %v2625_v7 = vadd.f32 1.0, %v4178_v55  ;;  %v1992_v12 = vadd.f32 %v5759_v39, %v1991_v8  ;;  %vm3311_vm11 = vmor %vm3309_vm10, %vm3310_vm9 }
 0x38c   :  { %v3306_v11 = vsub.f32 1.0, %v3305_v4  ;;  %v3297_v16 = vsel %vm3296_vm8, %v4174_v28, %v3293_v9 }
 0x38d   :  { %4181 = vrcp.f32 %v2625_v7  ;;  %v2273_v14 = vpop.xlane.xlu2 %2272  ;;  %v2059_v19 = vmax.f32 %v1992_v12, 0.0  ;;  %v3302_v15 = vsel %vm5851_vm7, %v3301_v10, %v3297_v16  ;;  %v3330_v38 = vand.u32 2147483648, %v2625_v7 }
 0x38e   :  { %v3307_v17 = vmul.f32 %v4176_v1, %v3306_v11  ;;  %v2371_v21 = vadd.f32 %v5139_v20, %v2273_v14  ;;  %3648 = vst.msk [vmem:[%s5976_s11 + $0x158] sm:$0xff] %vm3604_vm4, %v3302_v15  ;;  %v3328_v44 = vand.u32 2147483647, %v2625_v7  ;;  %vm3324_vm14 = vweird.f32 %v2625_v7 }
 0x38f   :  { %v2127_v18 = vmul.f32 %v5785_v40, %v2059_v19  ;;  %v3331_v52 = vor.u32 1.1754944e-38, %v3330_v38 }
 0x390   :  { %v3308_v22 = vadd.f32 %v4176_v1, %v3307_v17  ;;  %v3976_v24 = vmul.f32 -1.442695, %v2371_v21  ;;  %v4180_v26 = vpop.eup %4179  ;;  %vm3329_vm15 = vcmp.eq.f32.partialorder %v3328_v44, 8.507059e+37 }
 0x391   :  { %v2626_v30 = vadd.f32 1.0, %v4180_v26  ;;  %v2316_v31 = vsel %vm2129_vm2, %v2127_v18, 0.0 }
 0x392   :  { %v3312_v23 = vsel %vm3311_vm11, %v4176_v1, %v3308_v22  ;;  %4183 = vpow2.f32 %v3976_v24  ;;  %v1994_v32 = vpop.f32.mrf.mxu3  ;;  %2317 = vadd.xlane.f32.xlu2 %v2316_v31 }
 0x393   :  { %v4182_v33 = vpop.eup %4181  ;;  %v3317_v34 = vsel %vm3314_vm12, %v3316_v27, %v3312_v23  ;;  %4185 = vrcp.f32 %v2626_v30  ;;  %v1995_v35 = vadd.f32 %v5759_v39, %v1994_v32  ;;  %v3343_v59 = vand.u32 2147483647, %v2626_v30 }
 0x394   :  { %3649 = vst.msk [vmem:[%s5976_s11 + $0x160] sm:$0xff] %vm3604_vm4, %v3317_v34  ;;  %v3320_v48 = vmul.f32 %v4182_v33, %v2625_v7  ;;  %vm3325_vm13 = vweird.f32 %v4182_v33  ;;  %vm3339_vm0 = vweird.f32 %v2626_v30 }
 0x395   :  { %v2060_v41 = vmax.f32 %v1995_v35, 0.0  ;;  %v2276_v42 = vpop.xlane.xlu0 %2275  ;;  %vm3326_vm1 = vmor %vm3324_vm14, %vm3325_vm13 }
 0x396   :  { %v3321_v37 = vsub.f32 1.0, %v3320_v48  ;;  %v2372_v46 = vadd.f32 %v5139_v20, %v2276_v42 }
 0x397   :  { %v2128_v45 = vmul.f32 %v5785_v40, %v2060_v41  ;;  %v3345_v40 = vand.u32 2147483648, %v2626_v30 }
 0x398   :  { %v4184_v43 = vpop.eup %4183  ;;  %v3322_v25 = vmul.f32 %v4182_v33, %v3321_v37  ;;  %v3977_v51 = vmul.f32 -1.442695, %v2372_v46 }
 0x399   :  { %v2627_v47 = vadd.f32 1.0, %v4184_v43  ;;  %v4186_v49 = vpop.eup %4185  ;;  %v2319_v57 = vsel %vm2129_vm2, %v2128_v45, 0.0  ;;  %v3346_v0 = vor.u32 1.1754944e-38, %v3345_v40  ;;  %vm3344_vm2 = vcmp.eq.f32.partialorder %v3343_v59, 8.507059e+37 }
 0x39a   :  { %v3323_v50 = vadd.f32 %v4182_v33, %v3322_v25  ;;  %v3335_v39 = vmul.f32 %v4186_v49, %v2626_v30  ;;  %2320 = vadd.xlane.f32.xlu0 %v2319_v57  ;;  %vm3340_vm3 = vweird.f32 %v4186_v49 }
 0x39b   :  { %4187 = vrcp.f32 %v2627_v47  ;;  %vm3341_vm5 = vmor %vm3339_vm0, %vm3340_vm3  ;;  %v3360_v5 = vand.u32 2147483648, %v2627_v47  ;;  %v3358_v7 = vand.u32 2147483647, %v2627_v47  ;;  %vm3354_vm7 = vweird.f32 %v2627_v47 }
 0x39c   :  { %v3327_v53 = vsel %vm3326_vm1, %v4182_v33, %v3323_v50  ;;  %4189 = vpow2.f32 %v3977_v51  ;;  %v3336_v56 = vsub.f32 1.0, %v3335_v39 }
 0x39d   :  { %v3332_v54 = vsel %vm3329_vm15, %v3331_v52, %v3327_v53  ;;  %v2279_v28 = vpop.xlane.xlu1 %2278  ;;  %v3361_v12 = vor.u32 1.1754944e-38, %v3360_v5  ;;  %vm3359_vm9 = vcmp.eq.f32.partialorder %v3358_v7, 8.507059e+37 }
 0x39e   :  { %3650 = vst.msk [vmem:[%s5976_s11 + $0x168] sm:$0xff] %vm3604_vm4, %v3332_v54  ;;  %v2373_v29 = vadd.f32 %v5139_v20, %v2279_v28  ;;  %v3337_v58 = vmul.f32 %v4186_v49, %v3336_v56 }
 0x3a0   :  { %v3978_v60 = vmul.f32 -1.442695, %v2373_v29  ;;  %v3338_v62 = vadd.f32 %v4186_v49, %v3337_v58 }
 0x3a1   :  { %v4188_v61 = vpop.eup %4187 }
 0x3a2   :  { %v4190_v63 = vpop.eup %4189  ;;  %v3350_v1 = vmul.f32 %v4188_v61, %v2627_v47  ;;  %4191 = vpow2.f32 %v3978_v60  ;;  %v3342_v2 = vsel %vm3341_vm5, %v4186_v49, %v3338_v62  ;;  %vm3355_vm6 = vweird.f32 %v4188_v61 }
 0x3a3   :  { %v2628_v55 = vadd.f32 1.0, %v4190_v63  ;;  %v3347_v3 = vsel %vm3344_vm2, %v3346_v0, %v3342_v2  ;;  %vm3356_vm8 = vmor %vm3354_vm7, %vm3355_vm6 }
 0x3a4   :  { %v3351_v4 = vsub.f32 1.0, %v3350_v1  ;;  %3651 = vst.msk [vmem:[%s5976_s11 + $0x170] sm:$0xff] %vm3604_vm4, %v3347_v3 }
 0x3a5   :  { %4193 = vrcp.f32 %v2628_v55  ;;  %v2282_v8 = vpop.xlane.xlu2 %2281  ;;  %v3375_v24 = vand.u32 2147483648, %v2628_v55  ;;  %v3373_v27 = vand.u32 2147483647, %v2628_v55  ;;  %vm3369_vm11 = vweird.f32 %v2628_v55 }
 0x3a6   :  { %v3352_v6 = vmul.f32 %v4188_v61, %v3351_v4  ;;  %v2374_v9 = vadd.f32 %v5139_v20, %v2282_v8 }
 0x3a7   :  { %v3376_v34 = vor.u32 1.1754944e-38, %v3375_v24  ;;  %vm3374_vm13 = vcmp.eq.f32.partialorder %v3373_v27, 8.507059e+37 }
 0x3a8   :  { %v4192_v10 = vpop.eup %4191  ;;  %v3353_v11 = vadd.f32 %v4188_v61, %v3352_v6  ;;  %v3979_v13 = vmul.f32 -1.442695, %v2374_v9 }
 0x3a9   :  { %v2629_v36 = vadd.f32 1.0, %v4192_v10 }
 0x3aa   :  { %v3357_v14 = vsel %vm3356_vm8, %v4188_v61, %v3353_v11 }
 0x3ab   :  { %v4194_v16 = vpop.eup %4193  ;;  %v3362_v17 = vsel %vm3359_vm9, %v3361_v12, %v3357_v14  ;;  %4195 = vrcp.f32 %v2629_v36  ;;  %v3390_v41 = vand.u32 2147483648, %v2629_v36  ;;  %v3388_v43 = vand.u32 2147483647, %v2629_v36 }
 0x3ac   :  { %3652 = vst.msk [vmem:[%s5976_s11 + $0x178] sm:$0xff] %vm3604_vm4, %v3362_v17  ;;  %v3365_v19 = vmul.f32 %v4194_v16, %v2628_v55  ;;  %4197 = vpow2.f32 %v3979_v13  ;;  %vm3370_vm10 = vweird.f32 %v4194_v16  ;;  %vm3384_vm1 = vweird.f32 %v2629_v36 }
 0x3ad   :  { %v2285_v21 = vpop.xlane.xlu0 %2284  ;;  %vm3371_vm12 = vmor %vm3369_vm11, %vm3370_vm10  ;;  %v3391_v49 = vor.u32 1.1754944e-38, %v3390_v41  ;;  %vm3389_vm3 = vcmp.eq.f32.partialorder %v3388_v43, 8.507059e+37 }
 0x3ae   :  { %v2375_v15 = vadd.f32 %v5139_v20, %v2285_v21  ;;  %v3366_v22 = vsub.f32 1.0, %v3365_v19 }
 0x3b0   :  { %v3980_v18 = vmul.f32 -1.442695, %v2375_v15  ;;  %v3367_v26 = vmul.f32 %v4194_v16, %v3366_v22 }
 0x3b1   :  { %v4196_v23 = vpop.eup %4195 }
 0x3b2   :  { %4199 = vpow2.f32 %v3980_v18  ;;  %v4198_v30 = vpop.eup %4197  ;;  %v3368_v31 = vadd.f32 %v4194_v16, %v3367_v26  ;;  %v3380_v33 = vmul.f32 %v4196_v23, %v2629_v36  ;;  %vm3385_vm14 = vweird.f32 %v4196_v23 }
 0x3b3   :  { %v2630_v32 = vadd.f32 1.0, %v4198_v30  ;;  %vm3386_vm15 = vmor %vm3384_vm1, %vm3385_vm14 }
 0x3b4   :  { %v3372_v48 = vsel %vm3371_vm12, %v4194_v16, %v3368_v31  ;;  %v3381_v35 = vsub.f32 1.0, %v3380_v33 }
 0x3b5   :  { %v2288_v37 = vpop.xlane.xlu1 %2287  ;;  %v3377_v38 = vsel %vm3374_vm13, %v3376_v34, %v3372_v48  ;;  %4201 = vrcp.f32 %v2630_v32  ;;  %v3405_v57 = vand.u32 2147483648, %v2630_v32  ;;  %v3403_v29 = vand.u32 2147483647, %v2630_v32 }
 0x3b6   :  { %3653 = vst.msk [vmem:[%s5976_s11 + $0x180] sm:$0xff] %vm3604_vm4, %v3377_v38  ;;  %v3382_v42 = vmul.f32 %v4196_v23, %v3381_v35  ;;  %v2376_v25 = vadd.f32 %v5139_v20, %v2288_v37  ;;  %vm3399_vm5 = vweird.f32 %v2630_v32 }
 0x3b7   :  { %v3406_v63 = vor.u32 1.1754944e-38, %v3405_v57  ;;  %vm3404_vm6 = vcmp.eq.f32.partialorder %v3403_v29, 8.507059e+37 }
 0x3b8   :  { %v4200_v44 = vpop.eup %4199  ;;  %v3383_v46 = vadd.f32 %v4196_v23, %v3382_v42  ;;  %v3981_v45 = vmul.f32 -1.442695, %v2376_v25 }
 0x3b9   :  { %v2631_v47 = vadd.f32 1.0, %v4200_v44 }
 0x3ba   :  { %v3387_v50 = vsel %vm3386_vm15, %v4196_v23, %v3383_v46 }
 0x3bb   :  { %4203 = vrcp.f32 %v2631_v47  ;;  %v4202_v51 = vpop.eup %4201  ;;  %v3392_v52 = vsel %vm3389_vm3, %v3391_v49, %v3387_v50  ;;  %v3420_v2 = vand.u32 2147483648, %v2631_v47  ;;  %v3418_v4 = vand.u32 2147483647, %v2631_v47 }
 0x3bc   :  { %4205 = vpow2.f32 %v3981_v45  ;;  %3654 = vst.msk [vmem:[%s5976_s11 + $0x188] sm:$0xff] %vm3604_vm4, %v3392_v52  ;;  %v3395_v39 = vmul.f32 %v4202_v51, %v2630_v32  ;;  %vm3400_vm0 = vweird.f32 %v4202_v51  ;;  %vm3414_vm8 = vweird.f32 %v2631_v47 }
 0x3bd   :  { %v2291_v53 = vpop.xlane.xlu2 %2290  ;;  %vm3401_vm2 = vmor %vm3399_vm5, %vm3400_vm0  ;;  %v3421_v9 = vor.u32 1.1754944e-38, %v3420_v2  ;;  %vm3419_vm10 = vcmp.eq.f32.partialorder %v3418_v4, 8.507059e+37 }
 0x3be   :  { %v3396_v54 = vsub.f32 1.0, %v3395_v39  ;;  %v2377_v56 = vadd.f32 %v5139_v20, %v2291_v53 }
 0x3c0   :  { %v3397_v40 = vmul.f32 %v4202_v51, %v3396_v54  ;;  %v3982_v58 = vmul.f32 -1.442695, %v2377_v56 }
 0x3c1   :  { %v4204_v28 = vpop.eup %4203 }
 0x3c2   :  { %v4206_v59 = vpop.eup %4205  ;;  %v3410_v60 = vmul.f32 %v4204_v28, %v2631_v47  ;;  %v3398_v61 = vadd.f32 %v4202_v51, %v3397_v40  ;;  %4207 = vpow2.f32 %v3982_v58  ;;  %vm3415_vm7 = vweird.f32 %v4204_v28 }
 0x3c3   :  { %v2632_v62 = vadd.f32 1.0, %v4206_v59  ;;  %vm3416_vm9 = vmor %vm3414_vm8, %vm3415_vm7 }
 0x3c4   :  { %v3411_v0 = vsub.f32 1.0, %v3410_v60  ;;  %v3402_v1 = vsel %vm3401_vm2, %v4202_v51, %v3398_v61 }
 0x3c5   :  { %4209 = vrcp.f32 %v2632_v62  ;;  %v3407_v55 = vsel %vm3404_vm6, %v3406_v63, %v3402_v1  ;;  %v2294_v5 = vpop.xlane.xlu0 %2293  ;;  %v3435_v19 = vand.u32 2147483648, %v2632_v62  ;;  %v3433_v22 = vand.u32 2147483647, %v2632_v62 }
 0x3c6   :  { %v3412_v3 = vmul.f32 %v4204_v28, %v3411_v0  ;;  %3655 = vst.msk [vmem:[%s5976_s11 + $0x190] sm:$0xff] %vm3604_vm4, %v3407_v55  ;;  %v2378_v6 = vadd.f32 %v5139_v20, %v2294_v5  ;;  %vm3429_vm12 = vweird.f32 %v2632_v62 }
 0x3c7   :  { %v3436_v30 = vor.u32 1.1754944e-38, %v3435_v19  ;;  %vm3434_vm14 = vcmp.eq.f32.partialorder %v3433_v22, 8.507059e+37 }
 0x3c8   :  { %v3413_v7 = vadd.f32 %v4204_v28, %v3412_v3  ;;  %v4208_v8 = vpop.eup %4207  ;;  %v3983_v10 = vmul.f32 -1.442695, %v2378_v6 }
 0x3c9   :  { %v2633_v12 = vadd.f32 1.0, %v4208_v8 }
 0x3ca   :  { %v3417_v11 = vsel %vm3416_vm9, %v4204_v28, %v3413_v7  ;;  %4211 = vpow2.f32 %v3983_v10 }
 0x3cb   :  { %v4210_v36 = vpop.eup %4209  ;;  %v3422_v13 = vsel %vm3419_vm10, %v3421_v9, %v3417_v11  ;;  %4213 = vrcp.f32 %v2633_v12  ;;  %v3450_v48 = vand.u32 2147483648, %v2633_v12  ;;  %v3448_v38 = vand.u32 2147483647, %v2633_v12 }
 0x3cc   :  { %3656 = vst.msk [vmem:[%s5976_s11 + $0x198] sm:$0xff] %vm3604_vm4, %v3422_v13  ;;  %v3425_v14 = vmul.f32 %v4210_v36, %v2632_v62  ;;  %vm3430_vm11 = vweird.f32 %v4210_v36  ;;  %vm3444_vm15 = vweird.f32 %v2633_v12 }
 0x3cd   :  { %v2297_v17 = vpop.xlane.xlu1 %2296  ;;  %vm3431_vm13 = vmor %vm3429_vm12, %vm3430_vm11  ;;  %v3451_v46 = vor.u32 1.1754944e-38, %v3450_v48  ;;  %vm3449_vm0 = vcmp.eq.f32.partialorder %v3448_v38, 8.507059e+37 }
 0x3ce   :  { %v3426_v16 = vsub.f32 1.0, %v3425_v14  ;;  %v2379_v21 = vadd.f32 %v5139_v20, %v2297_v17 }
 0x3d0   :  { %v3427_v15 = vmul.f32 %v4210_v36, %v3426_v16  ;;  %v4212_v24 = vpop.eup %4211  ;;  %v3984_v18 = vmul.f32 -1.442695, %v2379_v21 }
 0x3d1   :  { %v4214_v26 = vpop.eup %4213  ;;  %v2634_v23 = vadd.f32 1.0, %v4212_v24 }
 0x3d2   :  { %v3428_v27 = vadd.f32 %v4210_v36, %v3427_v15  ;;  %v3440_v31 = vmul.f32 %v4214_v26, %v2633_v12  ;;  %4215 = vpow2.f32 %v3984_v18  ;;  %vm3445_vm1 = vweird.f32 %v4214_v26 }
 0x3d3   :  { %4217 = vrcp.f32 %v2634_v23  ;;  %vm3446_vm3 = vmor %vm3444_vm15, %vm3445_vm1  ;;  %v3465_v52 = vand.u32 2147483648, %v2634_v23  ;;  %v3463_v54 = vand.u32 2147483647, %v2634_v23  ;;  %vm3459_vm2 = vweird.f32 %v2634_v23 }
 0x3d4   :  { %v3432_v33 = vsel %vm3431_vm13, %v4210_v36, %v3428_v27  ;;  %v3441_v32 = vsub.f32 1.0, %v3440_v31 }
 0x3d5   :  { %v3437_v34 = vsel %vm3434_vm14, %v3436_v30, %v3432_v33  ;;  %v2300_v35 = vpop.xlane.xlu2 %2299  ;;  %v3466_v58 = vor.u32 1.1754944e-38, %v3465_v52  ;;  %vm3464_vm7 = vcmp.eq.f32.partialorder %v3463_v54, 8.507059e+37 }
 0x3d6   :  { %3657 = vst.msk [vmem:[%s5976_s11 + $0x1a0] sm:$0xff] %vm3604_vm4, %v3437_v34  ;;  %v3442_v37 = vmul.f32 %v4214_v26, %v3441_v32  ;;  %v2380_v41 = vadd.f32 %v5139_v20, %v2300_v35 }
 0x3d8   :  { %v4216_v42 = vpop.eup %4215  ;;  %v3443_v43 = vadd.f32 %v4214_v26, %v3442_v37  ;;  %v3985_v25 = vmul.f32 -1.442695, %v2380_v41 }
 0x3d9   :  { %v4218_v44 = vpop.eup %4217  ;;  %v2635_v47 = vadd.f32 1.0, %v4216_v42 }
 0x3da   :  { %v3447_v45 = vsel %vm3446_vm3, %v4214_v26, %v3443_v43  ;;  %v3455_v49 = vmul.f32 %v4218_v44, %v2634_v23  ;;  %4219 = vpow2.f32 %v3985_v25  ;;  %vm3460_vm5 = vweird.f32 %v4218_v44 }
 0x3db   :  { %v3452_v50 = vsel %vm3449_vm0, %v3451_v46, %v3447_v45  ;;  %4221 = vrcp.f32 %v2635_v47  ;;  %vm3461_vm6 = vmor %vm3459_vm2, %vm3460_vm5  ;;  %v3480_v0 = vand.u32 2147483648, %v2635_v47  ;;  %v3478_v2 = vand.u32 2147483647, %v2635_v47 }
 0x3dc   :  { %3658 = vst.msk [vmem:[%s5976_s11 + $0x1a8] sm:$0xff] %vm3604_vm4, %v3452_v50  ;;  %v3456_v51 = vsub.f32 1.0, %v3455_v49  ;;  %vm3474_vm9 = vweird.f32 %v2635_v47 }
 0x3dd   :  { %v2303_v39 = vpop.xlane.xlu0 %2302  ;;  %v3481_v5 = vor.u32 1.1754944e-38, %v3480_v0  ;;  %vm3479_vm11 = vcmp.eq.f32.partialorder %v3478_v2, 8.507059e+37 }
 0x3de   :  { %v3457_v53 = vmul.f32 %v4218_v44, %v3456_v51  ;;  %v2381_v56 = vadd.f32 %v5139_v20, %v2303_v39 }
 0x3e0   :  { %v4220_v57 = vpop.eup %4219  ;;  %v3458_v28 = vadd.f32 %v4218_v44, %v3457_v53  ;;  %v3986_v40 = vmul.f32 -1.442695, %v2381_v56 }
 0x3e1   :  { %v4222_v29 = vpop.eup %4221  ;;  %v2636_v59 = vadd.f32 1.0, %v4220_v57 }
 0x3e2   :  { %v3462_v60 = vsel %vm3461_vm6, %v4218_v44, %v3458_v28  ;;  %v3470_v61 = vmul.f32 %v4222_v29, %v2635_v47  ;;  %4223 = vpow2.f32 %v3986_v40  ;;  %vm3475_vm8 = vweird.f32 %v4222_v29 }
 0x3e3   :  { %v3467_v62 = vsel %vm3464_vm7, %v3466_v58, %v3462_v60  ;;  %4225 = vrcp.f32 %v2636_v59  ;;  %vm3476_vm10 = vmor %vm3474_vm9, %vm3475_vm8  ;;  %v3495_v13 = vand.u32 2147483648, %v2636_v59  ;;  %v3493_v16 = vand.u32 2147483647, %v2636_v59 }
 0x3e4   :  { %3659 = vst.msk [vmem:[%s5976_s11 + $0x1b0] sm:$0xff] %vm3604_vm4, %v3467_v62  ;;  %v3471_v63 = vsub.f32 1.0, %v3470_v61  ;;  %vm3489_vm13 = vweird.f32 %v2636_v59 }
 0x3e5   :  { %v2306_v7 = vpop.xlane.xlu1 %2305  ;;  %v3496_v22 = vor.u32 1.1754944e-38, %v3495_v13  ;;  %vm3494_vm1 = vcmp.eq.f32.partialorder %v3493_v16, 8.507059e+37 }
 0x3e6   :  { %v3472_v1 = vmul.f32 %v4222_v29, %v3471_v63  ;;  %v2382_v10 = vadd.f32 %v5139_v20, %v2306_v7 }
 0x3e8   :  { %v4224_v55 = vpop.eup %4223  ;;  %v3473_v3 = vadd.f32 %v4222_v29, %v3472_v1  ;;  %v3987_v36 = vmul.f32 -1.442695, %v2382_v10 }
 0x3e9   :  { %v4226_v4 = vpop.eup %4225  ;;  %v2637_v6 = vadd.f32 1.0, %v4224_v55 }
 0x3ea   :  { %v3477_v8 = vsel %vm3476_vm10, %v4222_v29, %v3473_v3  ;;  %v3485_v9 = vmul.f32 %v4226_v4, %v2636_v59  ;;  %vm3490_vm12 = vweird.f32 %v4226_v4 }
 0x3eb   :  { %v3482_v11 = vsel %vm3479_vm11, %v3481_v5, %v3477_v8  ;;  %4227 = vrcp.f32 %v2637_v6  ;;  %vm3491_vm14 = vmor %vm3489_vm13, %vm3490_vm12  ;;  %v3510_v31 = vand.u32 2147483648, %v2637_v6  ;;  %v3508_v32 = vand.u32 2147483647, %v2637_v6 }
 0x3ec   :  { %3660 = vst.msk [vmem:[%s5976_s11 + $0x1b8] sm:$0xff] %vm3604_vm4, %v3482_v11  ;;  %v3486_v12 = vsub.f32 1.0, %v3485_v9  ;;  %4229 = vpow2.f32 %v3987_v36  ;;  %vm3504_vm3 = vweird.f32 %v2637_v6 }
 0x3ed   :  { %v2309_v17 = vpop.xlane.xlu2 %2308  ;;  %v3511_v37 = vor.u32 1.1754944e-38, %v3510_v31  ;;  %vm3509_vm5 = vcmp.eq.f32.partialorder %v3508_v32, 8.507059e+37 }
 0x3ee   :  { %v3487_v14 = vmul.f32 %v4226_v4, %v3486_v12  ;;  %v2383_v21 = vadd.f32 %v5139_v20, %v2309_v17 }
 0x3f0   :  { %v3488_v19 = vadd.f32 %v4226_v4, %v3487_v14  ;;  %v3988_v26 = vmul.f32 -1.442695, %v2383_v21 }
 0x3f1   :  { %v4228_v15 = vpop.eup %4227 }
 0x3f2   :  { %v3492_v24 = vsel %vm3491_vm14, %v4226_v4, %v3488_v19  ;;  %v3500_v18 = vmul.f32 %v4228_v15, %v2637_v6  ;;  %v4230_v23 = vpop.eup %4229  ;;  %4231 = vpow2.f32 %v3988_v26  ;;  %vm3505_vm15 = vweird.f32 %v4228_v15 }
 0x3f3   :  { %v3497_v27 = vsel %vm3494_vm1, %v3496_v22, %v3492_v24  ;;  %v2638_v33 = vadd.f32 1.0, %v4230_v23  ;;  %vm3506_vm0 = vmor %vm3504_vm3, %vm3505_vm15 }
 0x3f4   :  { %3661 = vst.msk [vmem:[%s5976_s11 + $0x1c0] sm:$0xff] %vm3604_vm4, %v3497_v27  ;;  %v3501_v30 = vsub.f32 1.0, %v3500_v18 }
 0x3f5   :  { %4233 = vrcp.f32 %v2638_v33  ;;  %v2312_v35 = vpop.xlane.xlu0 %2311  ;;  %v3525_v51 = vand.u32 2147483648, %v2638_v33  ;;  %v3523_v53 = vand.u32 2147483647, %v2638_v33  ;;  %vm3519_vm6 = vweird.f32 %v2638_v33 }
 0x3f6   :  { %v3502_v34 = vmul.f32 %v4228_v15, %v3501_v30  ;;  %v2384_v38 = vadd.f32 %v5139_v20, %v2312_v35 }
 0x3f7   :  { %v3526_v40 = vor.u32 1.1754944e-38, %v3525_v51  ;;  %vm3524_vm8 = vcmp.eq.f32.partialorder %v3523_v53, 8.507059e+37 }
 0x3f8   :  { %v3503_v48 = vadd.f32 %v4228_v15, %v3502_v34  ;;  %v4232_v41 = vpop.eup %4231  ;;  %v3989_v44 = vmul.f32 -1.442695, %v2384_v38 }
 0x3f9   :  { %v2639_v25 = vadd.f32 1.0, %v4232_v41 }
 0x3fa   :  { %v3507_v42 = vsel %vm3506_vm0, %v4228_v15, %v3503_v48 }
 0x3fb   :  { %v3512_v43 = vsel %vm3509_vm5, %v3511_v37, %v3507_v42  ;;  %v4234_v46 = vpop.eup %4233  ;;  %4235 = vrcp.f32 %v2639_v25  ;;  %v3540_v62 = vand.u32 2147483648, %v2639_v25  ;;  %v3538_v0 = vand.u32 2147483647, %v2639_v25 }
 0x3fc   :  { %3662 = vst.msk [vmem:[%s5976_s11 + $0x1c8] sm:$0xff] %vm3604_vm4, %v3512_v43  ;;  %v3515_v47 = vmul.f32 %v4234_v46, %v2638_v33  ;;  %4237 = vpow2.f32 %v3989_v44  ;;  %vm3520_vm2 = vweird.f32 %v4234_v46  ;;  %vm3534_vm10 = vweird.f32 %v2639_v25 }
 0x3fd   :  { %v2315_v45 = vpop.xlane.xlu1 %2314  ;;  %vm3521_vm7 = vmor %vm3519_vm6, %vm3520_vm2  ;;  %v3541_v5 = vor.u32 1.1754944e-38, %v3540_v62  ;;  %vm3539_vm12 = vcmp.eq.f32.partialorder %v3538_v0, 8.507059e+37 }
 0x3fe   :  { %v2385_v49 = vadd.f32 %v5139_v20, %v2315_v45  ;;  %v3516_v50 = vsub.f32 1.0, %v3515_v47 }
 0x400   :  { %v3990_v52 = vmul.f32 -1.442695, %v2385_v49  ;;  %v3517_v39 = vmul.f32 %v4234_v46, %v3516_v50 }
 0x401   :  { %v4236_v54 = vpop.eup %4235 }
 0x402   :  { %4239 = vpow2.f32 %v3990_v52  ;;  %v4238_v56 = vpop.eup %4237  ;;  %v3518_v57 = vadd.f32 %v4234_v46, %v3517_v39  ;;  %v3530_v28 = vmul.f32 %v4236_v54, %v2639_v25  ;;  %vm3535_vm9 = vweird.f32 %v4236_v54 }
 0x403   :  { %v2640_v29 = vadd.f32 1.0, %v4238_v56  ;;  %vm3536_vm11 = vmor %vm3534_vm10, %vm3535_vm9 }
 0x404   :  { %v3522_v58 = vsel %vm3521_vm7, %v4234_v46, %v3518_v57  ;;  %v3531_v59 = vsub.f32 1.0, %v3530_v28 }
 0x405   :  { %v2318_v60 = vpop.xlane.xlu2 %2317  ;;  %v3527_v61 = vsel %vm3524_vm8, %v3526_v40, %v3522_v58  ;;  %4241 = vrcp.f32 %v2640_v29  ;;  %v3553_v11 = vand.u32 2147483647, %v2640_v29  ;;  %v3555_v12 = vand.u32 2147483648, %v2640_v29 }
 0x406   :  { %3663 = vst.msk [vmem:[%s5976_s11 + $0x1d0] sm:$0xff] %vm3604_vm4, %v3527_v61  ;;  %v3532_v63 = vmul.f32 %v4236_v54, %v3531_v59  ;;  %v2386_v1 = vadd.f32 %v5139_v20, %v2318_v60  ;;  %vm3549_vm14 = vweird.f32 %v2640_v29 }
 0x407   :  { %vm3554_vm15 = vcmp.eq.f32.partialorder %v3553_v11, 8.507059e+37  ;;  %v3556_v24 = vor.u32 1.1754944e-38, %v3555_v12 }
 0x408   :  { %v4240_v2 = vpop.eup %4239  ;;  %v3533_v55 = vadd.f32 %v4236_v54, %v3532_v63  ;;  %v3991_v4 = vmul.f32 -1.442695, %v2386_v1 }
 0x409   :  { %v2641_v3 = vadd.f32 1.0, %v4240_v2 }
 0x40a   :  { %v3537_v6 = vsel %vm3536_vm11, %v4236_v54, %v3533_v55 }
 0x40b   :  { %4243 = vrcp.f32 %v2641_v3  ;;  %v4242_v7 = vpop.eup %4241  ;;  %v3542_v8 = vsel %vm3539_vm12, %v3541_v5, %v3537_v6  ;;  %v3568_v27 = vand.u32 2147483647, %v2641_v3  ;;  %v3570_v23 = vand.u32 2147483648, %v2641_v3 }
 0x40c   :  { %4245 = vpow2.f32 %v3991_v4  ;;  %3664 = vst.msk [vmem:[%s5976_s11 + $0x1d8] sm:$0xff] %vm3604_vm4, %v3542_v8  ;;  %v3545_v9 = vmul.f32 %v4242_v7, %v2640_v29  ;;  %vm3550_vm13 = vweird.f32 %v4242_v7  ;;  %vm3564_vm0 = vweird.f32 %v2641_v3 }
 0x40d   :  { %v2321_v36 = vpop.xlane.xlu0 %2320  ;;  %vm3551_vm1 = vmor %vm3549_vm14, %vm3550_vm13  ;;  %v3571_v33 = vor.u32 1.1754944e-38, %v3570_v23  ;;  %vm3569_vm2 = vcmp.eq.f32.partialorder %v3568_v27, 8.507059e+37 }
 0x40e   :  { %v3546_v10 = vsub.f32 1.0, %v3545_v9  ;;  %v2387_v16 = vadd.f32 %v5139_v20, %v2321_v36 }
 0x410   :  { %v3547_v14 = vmul.f32 %v4242_v7, %v3546_v10  ;;  %v3992_v22 = vmul.f32 -1.442695, %v2387_v16 }
 0x411   :  { %v4244_v13 = vpop.eup %4243 }
 0x412   :  { %v4246_v17 = vpop.eup %4245  ;;  %v3560_v19 = vmul.f32 %v4244_v13, %v2641_v3  ;;  %v3548_v21 = vadd.f32 %v4242_v7, %v3547_v14  ;;  %vm3565_vm3 = vweird.f32 %v4244_v13 }
 0x413   :  { %v2642_v15 = vadd.f32 1.0, %v4246_v17  ;;  %vm3566_vm5 = vmor %vm3564_vm0, %vm3565_vm3 }
 0x414   :  { %v3561_v18 = vsub.f32 1.0, %v3560_v19  ;;  %v3552_v26 = vsel %vm3551_vm1, %v4242_v7, %v3548_v21 }
 0x415   :  { %4247 = vrcp.f32 %v2642_v15  ;;  %v3557_v30 = vsel %vm3554_vm15, %v3556_v24, %v3552_v26  ;;  %v3585_v42 = vand.u32 2147483648, %v2642_v15  ;;  %v3583_v25 = vand.u32 2147483647, %v2642_v15 }
 0x416   :  { %v3562_v31 = vmul.f32 %v4244_v13, %v3561_v18  ;;  %4249 = vpow2.f32 %v3992_v22  ;;  %3665 = vst.msk [vmem:[%s5976_s11 + $0x1e0] sm:$0xff] %vm3604_vm4, %v3557_v30  ;;  %vm3579_vm7 = vweird.f32 %v2642_v15 }
 0x417   :  { %v3586_v46 = vor.u32 1.1754944e-38, %v3585_v42  ;;  %vm3584_vm9 = vcmp.eq.f32.partialorder %v3583_v25, 8.507059e+37 }
 0x418   :  { %v3563_v20 = vadd.f32 %v4244_v13, %v3562_v31 }
 0x41a   :  { %v3567_v34 = vsel %vm3566_vm5, %v4244_v13, %v3563_v20 }
 0x41b   :  { %v4248_v32 = vpop.eup %4247  ;;  %v3572_v48 = vsel %vm3569_vm2, %v3571_v33, %v3567_v34 }
 0x41c   :  { %v4250_v35 = vpop.eup %4249  ;;  %3666 = vst.msk [vmem:[%s5976_s11 + $0x1e8] sm:$0xff] %vm3604_vm4, %v3572_v48  ;;  %v3575_v37 = vmul.f32 %v4248_v32, %v2642_v15  ;;  %vm3580_vm6 = vweird.f32 %v4248_v32 }
 0x41d   :  { %v2643_v38 = vadd.f32 1.0, %v4250_v35  ;;  %vm3581_vm8 = vmor %vm3579_vm7, %vm3580_vm6 }
 0x41e   :  { %v3576_v41 = vsub.f32 1.0, %v3575_v37 }
 0x41f   :  { %4251 = vrcp.f32 %v2643_v38  ;;  %v3600_v52 = vand.u32 2147483648, %v2643_v38  ;;  %v3598_v53 = vand.u32 2147483647, %v2643_v38  ;;  %vm3594_vm11 = vweird.f32 %v2643_v38 }
 0x420   :  { %v3577_v43 = vmul.f32 %v4248_v32, %v3576_v41 }
 0x421   :  { %v3601_v56 = vor.u32 1.1754944e-38, %v3600_v52  ;;  %vm3599_vm13 = vcmp.eq.f32.partialorder %v3598_v53, 8.507059e+37 }
 0x422   :  { %v3578_v44 = vadd.f32 %v4248_v32, %v3577_v43 }
 0x424   :  { %v3582_v47 = vsel %vm3581_vm8, %v4248_v32, %v3578_v44 }
 0x425   :  { %v4252_v45 = vpop.eup %4251  ;;  %v3587_v49 = vsel %vm3584_vm9, %v3586_v46, %v3582_v47 }
 0x426   :  { %3667 = vst.msk [vmem:[%s5976_s11 + $0x1f0] sm:$0xff] %vm3604_vm4, %v3587_v49  ;;  %v3590_v50 = vmul.f32 %v4252_v45, %v2643_v38  ;;  %vm3595_vm10 = vweird.f32 %v4252_v45 }
 0x427   :  { %vm3596_vm12 = vmor %vm3594_vm11, %vm3595_vm10 }
 0x428   :  { %v3591_v51 = vsub.f32 1.0, %v3590_v50 }
 0x42a   :  { %v3592_v39 = vmul.f32 %v4252_v45, %v3591_v51 }
 0x42c   :  { %v3593_v54 = vadd.f32 %v4252_v45, %v3592_v39 }
 0x42e   :  { %v3597_v57 = vsel %vm3596_vm12, %v4252_v45, %v3593_v54 }
 0x42f   :  { %v3602_v28 = vsel %vm3599_vm13, %v3601_v56, %v3597_v57 }
 0x430   :  { %3668 = vst.msk [vmem:[%s5976_s11 + $0x1f8] sm:$0xff] %vm3604_vm4, %v3602_v28 }

</bundles_post_ra>
